<compile_context>
chip_gen: v7x
topology: tpu7x:2x2x1
jax: 0.10.0
libtpu: 0.0.40
codegen_flags: <defaults>
</compile_context>

<pallas_src>
import jax
import jax.numpy as jnp
import numpy as np
from jax import lax
from jax.experimental import pallas as pl
from jax.experimental.pallas import tpu as pltpu

LANE = 128
_MIB = 1024 * 1024

_CompilerParams = getattr(pltpu, "CompilerParams", None)
if _CompilerParams is None:  # older-jax fallback
    _CompilerParams = getattr(pltpu, "TPUCompilerParams")


def _round_up(x, m):
    return ((x + m - 1) // m) * m


def _tpu_vmem_capacity_bytes():
    """Physical per-core VMEM, with a conservative fallback (v7x = 64 MiB)."""
    try:
        info = pltpu.get_tpu_info()
        for name in ("vmem_capacity_bytes", "vmem_size_bytes", "vmem_bytes"):
            v = getattr(info, name, None)
            if isinstance(v, (int, np.integer)) and int(v) > 0:
                return int(v)
    except Exception:
        pass
    return 64 * _MIB


def _elementwise_dtype():
    """bf16 for the depthwise/ReLU6 chain on VPUs that support it (v6e/v7x)."""
    try:
        kind = jax.devices()[0].device_kind.lower()
    except Exception:
        kind = ""
    if ("v6" in kind) or ("v7" in kind) or ("7x" in kind):
        return jnp.bfloat16
    return jnp.float32


def _pick_strip_rows(*, Ho, Wo, Wp2k, cin_p, chid_p, cout_p, stride,
                     dw_bytes, budget_bytes, cap=32):
    """Largest divisor of Ho (<= cap) whose per-step VMEM stays under budget."""
    best = 1
    for th in range(1, min(Ho, cap) + 1):
        if Ho % th:
            continue
        th_in = (th - 1) * stride + 3
        need = (2 * th_in * Wp2k * cin_p * 2                  # x double buffer (bf16)
                + th_in * Wp2k * chid_p * (4 + dw_bytes)      # f32 expand out + h scratch
                + 2 * th * Wo * cout_p * 4                    # output double buffer
                + 4 * th * Wo * chid_p * dw_bytes)            # acc / window temporaries
        if need <= budget_bytes:
            best = th
    return best


def _build_kernel(*, H, W, Wp2k, TH, TH_in, Wo, stride, expand_ratio, n_strips,
                  cin_p, chid_p, cout_p, use_res, dw_dtype, mxu_dtype):
    row_step = TH * stride
    # Does the last strip include the bottom spatial-pad row (global row H+1)?
    last_has_bottom_pad = ((n_strips - 1) * row_step + TH_in - 1) == (H + 1)

    def kernel(*refs):
        if expand_ratio != 1:
            (x_hbm, w1_ref, b1_ref, dw_ref, b2_ref, w3_ref, b3_ref,
             o_ref, xbuf, sem, h_scr) = refs
        else:
            (x_hbm, dw_ref, b2_ref, w3_ref, b3_ref,
             o_ref, xbuf, sem) = refs
            h_scr = None

        n = pl.program_id(0)
        s = pl.program_id(1)
        slot = s % 2

        # ---- strip-level input delivery (manual double-buffered DMA) -------
        def start_copy(strip, to_slot):
            pltpu.make_async_copy(
                x_hbm.at[n, pl.ds(strip * row_step, TH_in)],
                xbuf.at[to_slot],
                sem.at[to_slot]).start()

        @pl.when(s == 0)                       # prime first strip of this image
        def _():
            start_copy(0, 0)

        if n_strips > 1:                       # prefetch the next strip
            @pl.when(s + 1 < n_strips)
            def _():
                start_copy(s + 1, 1 - slot)

        pltpu.make_async_copy(                 # wait for the current strip
            x_hbm.at[n, pl.ds(s * row_step, TH_in)],
            xbuf.at[slot],
            sem.at[slot]).wait()

        # ---- 1x1 expand conv (MXU, folded BN) + bias + ReLU6 ----------------
        if expand_ratio != 1:
            xs = xbuf[slot]                                   # (TH_in, Wp2k, cin_p) bf16
            hflat = jnp.dot(xs.reshape(TH_in * Wp2k, cin_p), w1_ref[...],
                            preferred_element_type=jnp.float32)
            hflat = jnp.clip(hflat + b1_ref[...], 0.0, 6.0)
            h_scr[...] = hflat.astype(dw_dtype).reshape(TH_in, Wp2k, chid_p)
            # Zero the spatial-pad positions so the depthwise sees zero padding
            # (ReLU6(bias) != 0 there otherwise).  Only border rows/cols touched.
            zcol = jnp.zeros((TH_in, chid_p), dw_dtype)
            zrow = jnp.zeros((Wp2k, chid_p), dw_dtype)
            h_scr[:, 0, :] = zcol                             # left pad column
            h_scr[:, W + 1, :] = zcol                         # right pad column

            @pl.when(s == 0)
            def _():
                h_scr[0] = zrow                               # top pad row
            if last_has_bottom_pad:
                @pl.when(s == n_strips - 1)
                def _():
                    h_scr[TH_in - 1] = zrow                   # bottom pad row
        # else: the (already zero-padded) raw input is the depthwise input.

        # ---- 3x3 depthwise conv (folded BN) + bias + ReLU6 ------------------
        def window(di, dj):
            if stride == 1:
                ri, ci = pl.ds(di, TH), pl.ds(dj, Wo)
            else:
                ri, ci = pl.ds(di, TH, stride=2), pl.ds(dj, Wo, stride=2)
            if expand_ratio != 1:
                return h_scr[ri, ci, :]
            return xbuf[slot, ri, ci, :].astype(dw_dtype)

        taps = dw_ref[...]                                    # (9, chid_p) dw_dtype
        acc = jnp.zeros((TH, Wo, chid_p), dw_dtype)
        for di in range(3):
            for dj in range(3):
                k = di * 3 + dj
                acc = acc + window(di, dj) * taps[k:k + 1, :]
        y = jnp.clip(acc + b2_ref[...], 0.0, 6.0)             # (TH, Wo, chid_p)

        # ---- 1x1 project conv (MXU, folded BN) + bias (linear) --------------
        z = jnp.dot(y.reshape(TH * Wo, chid_p).astype(mxu_dtype), w3_ref[...],
                    preferred_element_type=jnp.float32)
        z = (z + b3_ref[...]).reshape(TH, Wo, cout_p)

        if use_res:
            res = xbuf[slot, pl.ds(1, TH), pl.ds(1, Wo), :].astype(jnp.float32)
            z = z + res

        o_ref[...] = z.astype(o_ref.dtype)

    return kernel


def inverted_residual_forward(x_nchw, params, *, inp, oup, stride, expand_ratio,
                              mxu_dtype=jnp.bfloat16, dw_dtype=None):
    """Forward of InvertedResidual. Input/output are NCHW like PyTorch."""
    N, C, H, W = x_nchw.shape
    assert C == inp and stride in (1, 2)
    hidden = int(round(inp * expand_ratio))
    use_res = (stride == 1) and (inp == oup)
    Ho = (H + 2 - 3) // stride + 1
    Wo = (W + 2 - 3) // stride + 1
    Wp2k = _round_up(W + 2, 16)              # sublane-aligned for f32 and bf16

    cin_p = _round_up(inp, LANE)
    chid_p = _round_up(hidden, LANE)
    cout_p = _round_up(oup, LANE)

    if dw_dtype is None:
        dw_dtype = _elementwise_dtype()
    dw_bytes = 2 if dw_dtype == jnp.bfloat16 else 4

    eps = 1e-5

    def fold(gamma, beta, mean, var):
        sc = gamma / jnp.sqrt(var + eps)
        return sc.astype(jnp.float32), (beta - mean * sc).astype(jnp.float32)

    def pad2(a, r, c):
        return jnp.pad(a, ((0, r - a.shape[0]), (0, c - a.shape[1])))

    # ---- fold BN scales into weights; pad channel dims to lane multiples ----
    args = []
    weight_bytes = 0
    if expand_ratio != 1:
        s1, b1 = fold(*params['bn1'])
        w1 = jnp.transpose(params['w1'][:, :, 0, 0] * s1[:, None])     # (inp, hidden)
        args += [pad2(w1, cin_p, chid_p).astype(mxu_dtype),
                 pad2(b1.reshape(1, -1), 1, chid_p)]
        weight_bytes += cin_p * chid_p * 2

    s2, b2 = fold(*params['bn2'])
    dw = jnp.transpose(params['dw'].reshape(hidden, 9) * s2[:, None])   # (9, hidden)
    s3, b3 = fold(*params['bn3'])
    w3 = jnp.transpose(params['w3'][:, :, 0, 0] * s3[:, None])          # (hidden, oup)
    args += [pad2(dw, 9, chid_p).astype(dw_dtype),
             pad2(b2.reshape(1, -1), 1, chid_p).astype(dw_dtype),
             pad2(w3, chid_p, cout_p).astype(mxu_dtype),
             pad2(b3.reshape(1, -1), 1, cout_p)]
    weight_bytes += chid_p * cout_p * 2 + 9 * chid_p * dw_bytes + 16 * chid_p

    # NCHW -> NHWC, bf16, spatial zero-pad (+1 halo, width rounded to x16),
    # channel zero-pad to a lane multiple.  Stays in HBM (pl.ANY) in the kernel.
    x_nhwc = jnp.transpose(x_nchw, (0, 2, 3, 1)).astype(jnp.bfloat16)
    x_p = jnp.pad(x_nhwc, ((0, 0), (1, 1), (1, Wp2k - W - 1), (0, cin_p - inp)))

    # Generation-aware VMEM limit / strip budget.
    vmem_cap = _tpu_vmem_capacity_bytes()
    vmem_limit = min(int(vmem_cap * 3 // 4), 96 * _MIB)
    budget = max(2 * _MIB, vmem_limit - 2 * weight_bytes - 6 * _MIB)

    TH = _pick_strip_rows(Ho=Ho, Wo=Wo, Wp2k=Wp2k, cin_p=cin_p, chid_p=chid_p,
                          cout_p=cout_p, stride=stride, dw_bytes=dw_bytes,
                          budget_bytes=budget)
    TH_in = (TH - 1) * stride + 3
    n_strips = Ho // TH

    kernel = _build_kernel(H=H, W=W, Wp2k=Wp2k, TH=TH, TH_in=TH_in, Wo=Wo,
                           stride=stride, expand_ratio=expand_ratio,
                           n_strips=n_strips, cin_p=cin_p, chid_p=chid_p,
                           cout_p=cout_p, use_res=use_res,
                           dw_dtype=dw_dtype, mxu_dtype=mxu_dtype)

    w_specs = []
    if expand_ratio != 1:
        w_specs += [pl.BlockSpec((cin_p, chid_p), lambda n, s: (0, 0)),
                    pl.BlockSpec((1, chid_p), lambda n, s: (0, 0))]
    w_specs += [pl.BlockSpec((9, chid_p), lambda n, s: (0, 0)),
                pl.BlockSpec((1, chid_p), lambda n, s: (0, 0)),
                pl.BlockSpec((chid_p, cout_p), lambda n, s: (0, 0)),
                pl.BlockSpec((1, cout_p), lambda n, s: (0, 0))]

    scratch = [pltpu.VMEM((2, TH_in, Wp2k, cin_p), jnp.bfloat16),   # input strips
               pltpu.SemaphoreType.DMA((2,))]
    if expand_ratio != 1:
        scratch.append(pltpu.VMEM((TH_in, Wp2k, chid_p), dw_dtype))  # expand output

    out_nhwc_p = pl.pallas_call(
        kernel,
        out_shape=jax.ShapeDtypeStruct((N, Ho, Wo, cout_p), x_nchw.dtype),
        grid_spec=pltpu.PrefetchScalarGridSpec(
            num_scalar_prefetch=0,
            grid=(N, n_strips),
            in_specs=[pl.BlockSpec(memory_space=pl.ANY)] + w_specs,
            out_specs=pl.BlockSpec((None, TH, Wo, cout_p),
                                   lambda n, s: (n, s, 0, 0)),
            scratch_shapes=scratch),
        compiler_params=_CompilerParams(
            dimension_semantics=("parallel", "arbitrary"),
            vmem_limit_bytes=vmem_limit),
    )(x_p, *args)

    out = out_nhwc_p[..., :oup]                  # drop channel padding
    return jnp.transpose(out, (0, 3, 1, 2))      # NHWC -> NCHW


def reference_forward(x, params, stride, expand_ratio, inp, oup):
    """Pure-JAX (lax.conv) reference matching PyTorch eval-mode semantics."""
    hidden = int(round(inp * expand_ratio))
    eps = 1e-5

    def bn(y, g, b, m, v):
        g, b, m, v = (t[None, :, None, None] for t in (g, b, m, v))
        return (y - m) / jnp.sqrt(v + eps) * g + b

    out = x
    if expand_ratio != 1:
        out = lax.conv_general_dilated(out, params['w1'], (1, 1), 'VALID',
                                       dimension_numbers=('NCHW', 'OIHW', 'NCHW'))
        out = jnp.clip(bn(out, *params['bn1']), 0.0, 6.0)
    out = lax.conv_general_dilated(out, params['dw'], (stride, stride),
                                   ((1, 1), (1, 1)),
                                   dimension_numbers=('NCHW', 'OIHW', 'NCHW'),
                                   feature_group_count=hidden)
    out = jnp.clip(bn(out, *params['bn2']), 0.0, 6.0)
    out = lax.conv_general_dilated(out, params['w3'], (1, 1), 'VALID',
                                   dimension_numbers=('NCHW', 'OIHW', 'NCHW'))
    out = bn(out, *params['bn3'])
    if stride == 1 and inp == oup:
        out = x + out
    return out


if __name__ == "__main__":
    key = jax.random.PRNGKey(0)
    N, inp, H, W = 2, 4, 16, 16
    oup, stride, expand_ratio = 4, 1, 6          # inp==oup & stride==1 -> residual path
    hidden = int(round(inp * expand_ratio))

    keys = jax.random.split(key, 8)

    def bn_params(k, c):
        k1, k2, k3, k4 = jax.random.split(k, 4)
        gamma = jax.random.uniform(k1, (c,), minval=0.5, maxval=1.5, dtype=jnp.float32)
        beta = 0.1 * jax.random.normal(k2, (c,), jnp.float32)
        mean = 0.1 * jax.random.normal(k3, (c,), jnp.float32)
        var = jax.random.uniform(k4, (c,), minval=0.5, maxval=1.5, dtype=jnp.float32)
        return (gamma, beta, mean, var)

    params = {
        'w1': 0.1 * jax.random.normal(keys[0], (hidden, inp, 1, 1), jnp.float32),
        'bn1': bn_params(keys[1], hidden),
        'dw': 0.1 * jax.random.normal(keys[2], (hidden, 1, 3, 3), jnp.float32),
        'bn2': bn_params(keys[3], hidden),
        'w3': 0.1 * jax.random.normal(keys[4], (oup, hidden, 1, 1), jnp.float32),
        'bn3': bn_params(keys[5], oup),
    }
    x = jax.random.normal(keys[6], (N, inp, H, W), jnp.float32)

    out = inverted_residual_forward(x, params, inp=inp, oup=oup,
                                    stride=stride, expand_ratio=expand_ratio)
    out = jax.block_until_ready(out)

    ref = reference_forward(x, params, stride, expand_ratio, inp, oup)
    assert out.shape == ref.shape, (out.shape, ref.shape)
    # bf16 input + bf16 MXU operands (and bf16 depthwise on v6e/v7x) ->
    # loose-but-meaningful tolerance.
    np.testing.assert_allclose(np.asarray(out), np.asarray(ref),
                               rtol=7.5e-2, atol=7.5e-2)

    print("KERNEL_OK")
</pallas_src>

<mosaic_0001>
module attributes {stable_mosaic.version = 11 : i64} {
  func.func @kernel(%arg0: i32, %arg1: i32, %arg2: memref<2x18x32x128xbf16, #tpu.memory_space<any>>, %arg3: memref<128x128xbf16, #tpu.memory_space<vmem>>, %arg4: memref<1x128xf32, #tpu.memory_space<vmem>>, %arg5: memref<9x128xf32, #tpu.memory_space<vmem>>, %arg6: memref<1x128xf32, #tpu.memory_space<vmem>>, %arg7: memref<128x128xbf16, #tpu.memory_space<vmem>>, %arg8: memref<1x128xf32, #tpu.memory_space<vmem>>, %arg9: memref<1x16x16x128xf32, #tpu.memory_space<vmem>>, %arg10: memref<2x18x32x128xbf16, #tpu.memory_space<vmem>>, %arg11: memref<2x!tpu.dma_semaphore, #tpu.memory_space<semaphore_mem>>, %arg12: memref<18x32x128xf32, #tpu.memory_space<vmem>>) attributes {dimension_semantics = [#tpu.dimension_semantics<parallel>, #tpu.dimension_semantics<arbitrary>], iteration_bounds = array<i64: 2, 1>, scalar_prefetch = 0 : i64, scratch_operands = 3 : i64, tpu.core_type = #tpu.core_type<tc>, window_params = [{}, {pipeline_mode = #tpu.pipeline_mode<synchronous>, transform_indices = @transform_1, window_bounds = array<i64: 128, 128>}, {pipeline_mode = #tpu.pipeline_mode<synchronous>, transform_indices = @transform_2, window_bounds = array<i64: 1, 128>}, {pipeline_mode = #tpu.pipeline_mode<synchronous>, transform_indices = @transform_3, window_bounds = array<i64: 9, 128>}, {pipeline_mode = #tpu.pipeline_mode<synchronous>, transform_indices = @transform_4, window_bounds = array<i64: 1, 128>}, {pipeline_mode = #tpu.pipeline_mode<synchronous>, transform_indices = @transform_5, window_bounds = array<i64: 128, 128>}, {pipeline_mode = #tpu.pipeline_mode<synchronous>, transform_indices = @transform_6, window_bounds = array<i64: 1, 128>}, {transform_indices = @transform_7, window_bounds = array<i64: 1, 16, 16, 128>}]} {
    %c2_i32 = arith.constant 2 : i32
    %c0_i32 = arith.constant 0 : i32
    %0 = arith.cmpi eq, %c2_i32, %c0_i32 : i32
    %c1_i32 = arith.constant 1 : i32
    %1 = arith.select %0, %c1_i32, %c2_i32 : i32
    %2 = arith.remsi %arg1, %1 : i32
    %c0_i32_0 = arith.constant 0 : i32
    %3 = arith.cmpi ne, %2, %c0_i32_0 : i32
    %c0_i32_1 = arith.constant 0 : i32
    %4 = arith.cmpi slt, %2, %c0_i32_1 : i32
    %c0_i32_2 = arith.constant 0 : i32
    %5 = arith.cmpi slt, %1, %c0_i32_2 : i32
    %6 = arith.xori %4, %5 : i1
    %7 = arith.andi %6, %3 : i1
    %8 = arith.addi %2, %1 : i32
    %9 = arith.select %7, %8, %2 : i32
    %c0_i32_3 = arith.constant 0 : i32
    %10 = arith.cmpi eq, %arg1, %c0_i32_3 : i32
    %11 = arith.extui %10 : i1 to i32
    %c0_i32_4 = arith.constant 0 : i32
    %12 = arith.cmpi ne, %11, %c0_i32_4 : i32
    scf.if %12 {
      %c0_i32_76 = arith.constant 0 : i32
      %c0_i32_77 = arith.constant 0 : i32
      %c0_i32_78 = arith.constant 0 : i32
      %c0_i32_79 = arith.constant 0 : i32
      %c0_i32_80 = arith.constant 0 : i32
      %129 = tpu.memref_slice %arg2[%arg0, %c0_i32_78, %c0_i32_79, %c0_i32_80] : memref<2x18x32x128xbf16, #tpu.memory_space<any>> -> memref<1x18x32x128xbf16, #tpu.memory_space<any>>
      %130 = tpu.memref_squeeze %129 : memref<1x18x32x128xbf16, #tpu.memory_space<any>> -> memref<18x32x128xbf16, #tpu.memory_space<any>>
      %c0_i32_81 = arith.constant 0 : i32
      %c0_i32_82 = arith.constant 0 : i32
      %c0_i32_83 = arith.constant 0 : i32
      %131 = tpu.memref_slice %arg10[%c0_i32_76, %c0_i32_81, %c0_i32_82, %c0_i32_83] : memref<2x18x32x128xbf16, #tpu.memory_space<vmem>> -> memref<1x18x32x128xbf16, #tpu.memory_space<vmem>>
      %132 = tpu.memref_squeeze %131 : memref<1x18x32x128xbf16, #tpu.memory_space<vmem>> -> memref<18x32x128xbf16, #tpu.memory_space<vmem>>
      %133 = tpu.memref_slice %arg11[%c0_i32_77] : memref<2x!tpu.dma_semaphore, #tpu.memory_space<semaphore_mem>> -> memref<1x!tpu.dma_semaphore, #tpu.memory_space<semaphore_mem>>
      %134 = tpu.memref_squeeze %133 : memref<1x!tpu.dma_semaphore, #tpu.memory_space<semaphore_mem>> -> memref<!tpu.dma_semaphore, #tpu.memory_space<semaphore_mem>>
      tpu.enqueue_dma source(%130 : memref<18x32x128xbf16, #tpu.memory_space<any>>) target(%132 : memref<18x32x128xbf16, #tpu.memory_space<vmem>>) target_semaphore(%134 : memref<!tpu.dma_semaphore, #tpu.memory_space<semaphore_mem>>)
    } else {
    }
    %c16_i32 = arith.constant 16 : i32
    %13 = arith.muli %arg1, %c16_i32 : i32
    %c0_i32_5 = arith.constant 0 : i32
    %c0_i32_6 = arith.constant 0 : i32
    %14 = tpu.memref_slice %arg2[%arg0, %13, %c0_i32_5, %c0_i32_6] : memref<2x18x32x128xbf16, #tpu.memory_space<any>> -> memref<1x18x32x128xbf16, #tpu.memory_space<any>>
    %15 = tpu.memref_squeeze %14 : memref<1x18x32x128xbf16, #tpu.memory_space<any>> -> memref<18x32x128xbf16, #tpu.memory_space<any>>
    %c0_i32_7 = arith.constant 0 : i32
    %c0_i32_8 = arith.constant 0 : i32
    %c0_i32_9 = arith.constant 0 : i32
    %16 = tpu.memref_slice %arg10[%9, %c0_i32_7, %c0_i32_8, %c0_i32_9] : memref<2x18x32x128xbf16, #tpu.memory_space<vmem>> -> memref<1x18x32x128xbf16, #tpu.memory_space<vmem>>
    %17 = tpu.memref_squeeze %16 : memref<1x18x32x128xbf16, #tpu.memory_space<vmem>> -> memref<18x32x128xbf16, #tpu.memory_space<vmem>>
    %18 = tpu.memref_slice %arg11[%9] : memref<2x!tpu.dma_semaphore, #tpu.memory_space<semaphore_mem>> -> memref<1x!tpu.dma_semaphore, #tpu.memory_space<semaphore_mem>>
    %19 = tpu.memref_squeeze %18 : memref<1x!tpu.dma_semaphore, #tpu.memory_space<semaphore_mem>> -> memref<!tpu.dma_semaphore, #tpu.memory_space<semaphore_mem>>
    tpu.wait_dma2 semaphore(%19 : memref<!tpu.dma_semaphore, #tpu.memory_space<semaphore_mem>>) src(%15 : memref<18x32x128xbf16, #tpu.memory_space<any>>) dst(%17 : memref<18x32x128xbf16, #tpu.memory_space<vmem>>)
    %20 = arith.index_cast %9 : i32 to index
    %c0 = arith.constant 0 : index
    %c0_10 = arith.constant 0 : index
    %c0_11 = arith.constant 0 : index
    %21 = vector.load %arg10[%20, %c0, %c0_10, %c0_11] : memref<2x18x32x128xbf16, #tpu.memory_space<vmem>>, vector<1x18x32x128xbf16>
    %22 = vector.shape_cast %21 : vector<1x18x32x128xbf16> to vector<18x32x128xbf16>
    %23 = vector.shape_cast %22 : vector<18x32x128xbf16> to vector<576x128xbf16>
    %c0_12 = arith.constant 0 : index
    %c0_13 = arith.constant 0 : index
    %24 = vector.load %arg3[%c0_12, %c0_13] : memref<128x128xbf16, #tpu.memory_space<vmem>>, vector<128x128xbf16>
    %cst = arith.constant dense<0.000000e+00> : vector<576x128xf32>
    %25 = tpu.matmul %23, %24, %cst {dimension_numbers = #tpu.dot_dimension_numbers<[1], [0], [0], [1], [0, 0, 1, 1], [], []>} : vector<576x128xbf16>, vector<128x128xbf16>, vector<576x128xf32> -> vector<576x128xf32>
    %c0_14 = arith.constant 0 : index
    %c0_15 = arith.constant 0 : index
    %26 = vector.load %arg4[%c0_14, %c0_15] : memref<1x128xf32, #tpu.memory_space<vmem>>, vector<1x128xf32>
    %27 = vector.broadcast %26 : vector<1x128xf32> to vector<576x128xf32>
    %28 = arith.addf %25, %27 : vector<576x128xf32>
    %cst_16 = arith.constant 0.000000e+00 : f32
    %cst_17 = arith.constant 6.000000e+00 : f32
    %29 = vector.broadcast %cst_16 : f32 to vector<576x128xf32>
    %30 = arith.maximumf %29, %28 : vector<576x128xf32>
    %31 = vector.broadcast %cst_17 : f32 to vector<576x128xf32>
    %32 = arith.minimumf %31, %30 : vector<576x128xf32>
    %33 = vector.shape_cast %32 : vector<576x128xf32> to vector<18x32x128xf32>
    %c0_18 = arith.constant 0 : index
    %c0_19 = arith.constant 0 : index
    %c0_20 = arith.constant 0 : index
    %34 = vector.load %arg12[%c0_18, %c0_19, %c0_20] : memref<18x32x128xf32, #tpu.memory_space<vmem>>, vector<18x32x128xf32>
    tpu.vector_store %arg12[%c0_18, %c0_19, %c0_20], %33 {strides = array<i32>} : memref<18x32x128xf32, #tpu.memory_space<vmem>>, vector<18x32x128xf32>,
    %cst_21 = arith.constant 0.000000e+00 : f32
    %35 = vector.broadcast %cst_21 : f32 to vector<18x128xf32>
    %cst_22 = arith.constant 0.000000e+00 : f32
    %36 = vector.broadcast %cst_22 : f32 to vector<32x128xf32>
    %c0_23 = arith.constant 0 : index
    %c0_24 = arith.constant 0 : index
    %c0_25 = arith.constant 0 : index
    %37 = vector.load %arg12[%c0_23, %c0_24, %c0_25] : memref<18x32x128xf32, #tpu.memory_space<vmem>>, vector<18x1x128xf32>
    %38 = vector.shape_cast %37 : vector<18x1x128xf32> to vector<18x128xf32>
    %39 = vector.shape_cast %35 : vector<18x128xf32> to vector<18x1x128xf32>
    tpu.vector_store %arg12[%c0_23, %c0_24, %c0_25], %39 {strides = array<i32>} : memref<18x32x128xf32, #tpu.memory_space<vmem>>, vector<18x1x128xf32>,
    %c0_26 = arith.constant 0 : index
    %c17 = arith.constant 17 : index
    %c0_27 = arith.constant 0 : index
    %40 = vector.load %arg12[%c0_26, %c17, %c0_27] : memref<18x32x128xf32, #tpu.memory_space<vmem>>, vector<18x1x128xf32>
    %41 = vector.shape_cast %40 : vector<18x1x128xf32> to vector<18x128xf32>
    %42 = vector.shape_cast %35 : vector<18x128xf32> to vector<18x1x128xf32>
    tpu.vector_store %arg12[%c0_26, %c17, %c0_27], %42 {strides = array<i32>} : memref<18x32x128xf32, #tpu.memory_space<vmem>>, vector<18x1x128xf32>,
    %c0_i32_28 = arith.constant 0 : i32
    %43 = arith.cmpi eq, %arg1, %c0_i32_28 : i32
    %44 = arith.extui %43 : i1 to i32
    %c0_i32_29 = arith.constant 0 : i32
    %45 = arith.cmpi ne, %44, %c0_i32_29 : i32
    scf.if %45 {
      %c0_76 = arith.constant 0 : index
      %c0_77 = arith.constant 0 : index
      %c0_78 = arith.constant 0 : index
      %129 = vector.load %arg12[%c0_76, %c0_77, %c0_78] : memref<18x32x128xf32, #tpu.memory_space<vmem>>, vector<1x32x128xf32>
      %130 = vector.shape_cast %129 : vector<1x32x128xf32> to vector<32x128xf32>
      %131 = vector.shape_cast %36 : vector<32x128xf32> to vector<1x32x128xf32>
      tpu.vector_store %arg12[%c0_76, %c0_77, %c0_78], %131 {strides = array<i32>} : memref<18x32x128xf32, #tpu.memory_space<vmem>>, vector<1x32x128xf32>,
    } else {
    }
    %c0_i32_30 = arith.constant 0 : i32
    %46 = arith.cmpi eq, %arg1, %c0_i32_30 : i32
    %47 = arith.extui %46 : i1 to i32
    %c0_i32_31 = arith.constant 0 : i32
    %48 = arith.cmpi ne, %47, %c0_i32_31 : i32
    scf.if %48 {
      %c17_76 = arith.constant 17 : index
      %c0_77 = arith.constant 0 : index
      %c0_78 = arith.constant 0 : index
      %129 = vector.load %arg12[%c17_76, %c0_77, %c0_78] : memref<18x32x128xf32, #tpu.memory_space<vmem>>, vector<1x32x128xf32>
      %130 = vector.shape_cast %129 : vector<1x32x128xf32> to vector<32x128xf32>
      %131 = vector.shape_cast %36 : vector<32x128xf32> to vector<1x32x128xf32>
      tpu.vector_store %arg12[%c17_76, %c0_77, %c0_78], %131 {strides = array<i32>} : memref<18x32x128xf32, #tpu.memory_space<vmem>>, vector<1x32x128xf32>,
    } else {
    }
    %c0_32 = arith.constant 0 : index
    %c0_33 = arith.constant 0 : index
    %49 = vector.load %arg5[%c0_32, %c0_33] : memref<9x128xf32, #tpu.memory_space<vmem>>, vector<9x128xf32>
    %cst_34 = arith.constant 0.000000e+00 : f32
    %50 = vector.broadcast %cst_34 : f32 to vector<16x16x128xf32>
    %c0_35 = arith.constant 0 : index
    %c0_36 = arith.constant 0 : index
    %c0_37 = arith.constant 0 : index
    %51 = vector.load %arg12[%c0_35, %c0_36, %c0_37] : memref<18x32x128xf32, #tpu.memory_space<vmem>>, vector<16x16x128xf32>
    %52 = vector.extract_strided_slice %49 {offsets = [0, 0], sizes = [1, 128], strides = [1, 1]} : vector<9x128xf32> to vector<1x128xf32>
    %53 = vector.shape_cast %52 : vector<1x128xf32> to vector<1x1x128xf32>
    %54 = vector.broadcast %53 : vector<1x1x128xf32> to vector<16x16x128xf32>
    %55 = arith.mulf %51, %54 : vector<16x16x128xf32>
    %56 = arith.addf %50, %55 : vector<16x16x128xf32>
    %c0_38 = arith.constant 0 : index
    %c1 = arith.constant 1 : index
    %c0_39 = arith.constant 0 : index
    %57 = vector.load %arg12[%c0_38, %c1, %c0_39] : memref<18x32x128xf32, #tpu.memory_space<vmem>>, vector<16x16x128xf32>
    %58 = vector.extract_strided_slice %49 {offsets = [1, 0], sizes = [1, 128], strides = [1, 1]} : vector<9x128xf32> to vector<1x128xf32>
    %59 = vector.shape_cast %58 : vector<1x128xf32> to vector<1x1x128xf32>
    %60 = vector.broadcast %59 : vector<1x1x128xf32> to vector<16x16x128xf32>
    %61 = arith.mulf %57, %60 : vector<16x16x128xf32>
    %62 = arith.addf %56, %61 : vector<16x16x128xf32>
    %c0_40 = arith.constant 0 : index
    %c2 = arith.constant 2 : index
    %c0_41 = arith.constant 0 : index
    %63 = vector.load %arg12[%c0_40, %c2, %c0_41] : memref<18x32x128xf32, #tpu.memory_space<vmem>>, vector<16x16x128xf32>
    %64 = vector.extract_strided_slice %49 {offsets = [2, 0], sizes = [1, 128], strides = [1, 1]} : vector<9x128xf32> to vector<1x128xf32>
    %65 = vector.shape_cast %64 : vector<1x128xf32> to vector<1x1x128xf32>
    %66 = vector.broadcast %65 : vector<1x1x128xf32> to vector<16x16x128xf32>
    %67 = arith.mulf %63, %66 : vector<16x16x128xf32>
    %68 = arith.addf %62, %67 : vector<16x16x128xf32>
    %c1_42 = arith.constant 1 : index
    %c0_43 = arith.constant 0 : index
    %c0_44 = arith.constant 0 : index
    %69 = vector.load %arg12[%c1_42, %c0_43, %c0_44] : memref<18x32x128xf32, #tpu.memory_space<vmem>>, vector<16x16x128xf32>
    %70 = vector.extract_strided_slice %49 {offsets = [3, 0], sizes = [1, 128], strides = [1, 1]} : vector<9x128xf32> to vector<1x128xf32>
    %71 = vector.shape_cast %70 : vector<1x128xf32> to vector<1x1x128xf32>
    %72 = vector.broadcast %71 : vector<1x1x128xf32> to vector<16x16x128xf32>
    %73 = arith.mulf %69, %72 : vector<16x16x128xf32>
    %74 = arith.addf %68, %73 : vector<16x16x128xf32>
    %c1_45 = arith.constant 1 : index
    %c1_46 = arith.constant 1 : index
    %c0_47 = arith.constant 0 : index
    %75 = vector.load %arg12[%c1_45, %c1_46, %c0_47] : memref<18x32x128xf32, #tpu.memory_space<vmem>>, vector<16x16x128xf32>
    %76 = vector.extract_strided_slice %49 {offsets = [4, 0], sizes = [1, 128], strides = [1, 1]} : vector<9x128xf32> to vector<1x128xf32>
    %77 = vector.shape_cast %76 : vector<1x128xf32> to vector<1x1x128xf32>
    %78 = vector.broadcast %77 : vector<1x1x128xf32> to vector<16x16x128xf32>
    %79 = arith.mulf %75, %78 : vector<16x16x128xf32>
    %80 = arith.addf %74, %79 : vector<16x16x128xf32>
    %c1_48 = arith.constant 1 : index
    %c2_49 = arith.constant 2 : index
    %c0_50 = arith.constant 0 : index
    %81 = vector.load %arg12[%c1_48, %c2_49, %c0_50] : memref<18x32x128xf32, #tpu.memory_space<vmem>>, vector<16x16x128xf32>
    %82 = vector.extract_strided_slice %49 {offsets = [5, 0], sizes = [1, 128], strides = [1, 1]} : vector<9x128xf32> to vector<1x128xf32>
    %83 = vector.shape_cast %82 : vector<1x128xf32> to vector<1x1x128xf32>
    %84 = vector.broadcast %83 : vector<1x1x128xf32> to vector<16x16x128xf32>
    %85 = arith.mulf %81, %84 : vector<16x16x128xf32>
    %86 = arith.addf %80, %85 : vector<16x16x128xf32>
    %c2_51 = arith.constant 2 : index
    %c0_52 = arith.constant 0 : index
    %c0_53 = arith.constant 0 : index
    %87 = vector.load %arg12[%c2_51, %c0_52, %c0_53] : memref<18x32x128xf32, #tpu.memory_space<vmem>>, vector<16x16x128xf32>
    %88 = vector.extract_strided_slice %49 {offsets = [6, 0], sizes = [1, 128], strides = [1, 1]} : vector<9x128xf32> to vector<1x128xf32>
    %89 = vector.shape_cast %88 : vector<1x128xf32> to vector<1x1x128xf32>
    %90 = vector.broadcast %89 : vector<1x1x128xf32> to vector<16x16x128xf32>
    %91 = arith.mulf %87, %90 : vector<16x16x128xf32>
    %92 = arith.addf %86, %91 : vector<16x16x128xf32>
    %c2_54 = arith.constant 2 : index
    %c1_55 = arith.constant 1 : index
    %c0_56 = arith.constant 0 : index
    %93 = vector.load %arg12[%c2_54, %c1_55, %c0_56] : memref<18x32x128xf32, #tpu.memory_space<vmem>>, vector<16x16x128xf32>
    %94 = vector.extract_strided_slice %49 {offsets = [7, 0], sizes = [1, 128], strides = [1, 1]} : vector<9x128xf32> to vector<1x128xf32>
    %95 = vector.shape_cast %94 : vector<1x128xf32> to vector<1x1x128xf32>
    %96 = vector.broadcast %95 : vector<1x1x128xf32> to vector<16x16x128xf32>
    %97 = arith.mulf %93, %96 : vector<16x16x128xf32>
    %98 = arith.addf %92, %97 : vector<16x16x128xf32>
    %c2_57 = arith.constant 2 : index
    %c2_58 = arith.constant 2 : index
    %c0_59 = arith.constant 0 : index
    %99 = vector.load %arg12[%c2_57, %c2_58, %c0_59] : memref<18x32x128xf32, #tpu.memory_space<vmem>>, vector<16x16x128xf32>
    %100 = vector.extract_strided_slice %49 {offsets = [8, 0], sizes = [1, 128], strides = [1, 1]} : vector<9x128xf32> to vector<1x128xf32>
    %101 = vector.shape_cast %100 : vector<1x128xf32> to vector<1x1x128xf32>
    %102 = vector.broadcast %101 : vector<1x1x128xf32> to vector<16x16x128xf32>
    %103 = arith.mulf %99, %102 : vector<16x16x128xf32>
    %104 = arith.addf %98, %103 : vector<16x16x128xf32>
    %c0_60 = arith.constant 0 : index
    %c0_61 = arith.constant 0 : index
    %105 = vector.load %arg6[%c0_60, %c0_61] : memref<1x128xf32, #tpu.memory_space<vmem>>, vector<1x128xf32>
    %106 = vector.shape_cast %105 : vector<1x128xf32> to vector<1x1x128xf32>
    %107 = vector.broadcast %106 : vector<1x1x128xf32> to vector<16x16x128xf32>
    %108 = arith.addf %104, %107 : vector<16x16x128xf32>
    %cst_62 = arith.constant 0.000000e+00 : f32
    %cst_63 = arith.constant 6.000000e+00 : f32
    %109 = vector.broadcast %cst_62 : f32 to vector<16x16x128xf32>
    %110 = arith.maximumf %109, %108 : vector<16x16x128xf32>
    %111 = vector.broadcast %cst_63 : f32 to vector<16x16x128xf32>
    %112 = arith.minimumf %111, %110 : vector<16x16x128xf32>
    %113 = vector.shape_cast %112 : vector<16x16x128xf32> to vector<256x128xf32>
    %114 = arith.truncf %113 : vector<256x128xf32> to vector<256x128xbf16>
    %c0_64 = arith.constant 0 : index
    %c0_65 = arith.constant 0 : index
    %115 = vector.load %arg7[%c0_64, %c0_65] : memref<128x128xbf16, #tpu.memory_space<vmem>>, vector<128x128xbf16>
    %cst_66 = arith.constant dense<0.000000e+00> : vector<256x128xf32>
    %116 = tpu.matmul %114, %115, %cst_66 {dimension_numbers = #tpu.dot_dimension_numbers<[1], [0], [0], [1], [0, 0, 1, 1], [], []>} : vector<256x128xbf16>, vector<128x128xbf16>, vector<256x128xf32> -> vector<256x128xf32>
    %c0_67 = arith.constant 0 : index
    %c0_68 = arith.constant 0 : index
    %117 = vector.load %arg8[%c0_67, %c0_68] : memref<1x128xf32, #tpu.memory_space<vmem>>, vector<1x128xf32>
    %118 = vector.broadcast %117 : vector<1x128xf32> to vector<256x128xf32>
    %119 = arith.addf %116, %118 : vector<256x128xf32>
    %120 = vector.shape_cast %119 : vector<256x128xf32> to vector<16x16x128xf32>
    %121 = arith.index_cast %9 : i32 to index
    %c1_69 = arith.constant 1 : index
    %c1_70 = arith.constant 1 : index
    %c0_71 = arith.constant 0 : index
    %122 = vector.load %arg10[%121, %c1_69, %c1_70, %c0_71] : memref<2x18x32x128xbf16, #tpu.memory_space<vmem>>, vector<1x16x16x128xbf16>
    %123 = vector.shape_cast %122 : vector<1x16x16x128xbf16> to vector<16x16x128xbf16>
    %124 = arith.extf %123 : vector<16x16x128xbf16> to vector<16x16x128xf32>
    %125 = arith.addf %120, %124 : vector<16x16x128xf32>
    %c0_72 = arith.constant 0 : index
    %c0_73 = arith.constant 0 : index
    %c0_74 = arith.constant 0 : index
    %c0_75 = arith.constant 0 : index
    %126 = vector.load %arg9[%c0_72, %c0_73, %c0_74, %c0_75] : memref<1x16x16x128xf32, #tpu.memory_space<vmem>>, vector<1x16x16x128xf32>
    %127 = vector.shape_cast %126 : vector<1x16x16x128xf32> to vector<16x16x128xf32>
    %128 = vector.shape_cast %125 : vector<16x16x128xf32> to vector<1x16x16x128xf32>
    tpu.vector_store %arg9[%c0_72, %c0_73, %c0_74, %c0_75], %128 {strides = array<i32>} : memref<1x16x16x128xf32, #tpu.memory_space<vmem>>, vector<1x16x16x128xf32>,
    return
  }
  func.func @transform_1(%arg0: i32, %arg1: i32) -> (i32, i32) {
    %c0_i32 = arith.constant 0 : i32
    %c0_i32_0 = arith.constant 0 : i32
    %c0_i32_1 = arith.constant 0 : i32
    return %c0_i32, %c0_i32_0 : i32, i32
  }
  func.func @transform_2(%arg0: i32, %arg1: i32) -> (i32, i32) {
    %c0_i32 = arith.constant 0 : i32
    %c0_i32_0 = arith.constant 0 : i32
    %c0_i32_1 = arith.constant 0 : i32
    return %c0_i32, %c0_i32_0 : i32, i32
  }
  func.func @transform_3(%arg0: i32, %arg1: i32) -> (i32, i32) {
    %c0_i32 = arith.constant 0 : i32
    %c0_i32_0 = arith.constant 0 : i32
    %c0_i32_1 = arith.constant 0 : i32
    return %c0_i32, %c0_i32_0 : i32, i32
  }
  func.func @transform_4(%arg0: i32, %arg1: i32) -> (i32, i32) {
    %c0_i32 = arith.constant 0 : i32
    %c0_i32_0 = arith.constant 0 : i32
    %c0_i32_1 = arith.constant 0 : i32
    return %c0_i32, %c0_i32_0 : i32, i32
  }
  func.func @transform_5(%arg0: i32, %arg1: i32) -> (i32, i32) {
    %c0_i32 = arith.constant 0 : i32
    %c0_i32_0 = arith.constant 0 : i32
    %c0_i32_1 = arith.constant 0 : i32
    return %c0_i32, %c0_i32_0 : i32, i32
  }
  func.func @transform_6(%arg0: i32, %arg1: i32) -> (i32, i32) {
    %c0_i32 = arith.constant 0 : i32
    %c0_i32_0 = arith.constant 0 : i32
    %c0_i32_1 = arith.constant 0 : i32
    return %c0_i32, %c0_i32_0 : i32, i32
  }
  func.func @transform_7(%arg0: i32, %arg1: i32) -> (i32, i32, i32, i32) {
    %c0_i32 = arith.constant 0 : i32
    %c0_i32_0 = arith.constant 0 : i32
    %c0_i32_1 = arith.constant 0 : i32
    return %arg0, %arg1, %c0_i32, %c0_i32_0 : i32, i32, i32, i32
  }
}

</mosaic_0001>

<bundles_post_ra>
// kernel: tpu_custom_call.1
= control target key start
LH: loop header
LB: loop body
LE: loop exit
PB: predicated region body
PF: predicated region fallthrough
CT: control target
= control target key end

     0   :  { %s4618_s0 = inlined_call_operand.hbm [shape: bf16[2,18,32,128], index: 0, kind: input, shape index: {}]   ;;  %s4619_s1 = inlined_call_operand.hbm [shape: bf16[128,128], index: 1, kind: input, shape index: {}]   ;;  %s4620_s2 = inlined_call_operand.vmem [shape: f32[1,128], index: 2, kind: input, shape index: {}]   ;;  %s4621_s3 = inlined_call_operand.hbm [shape: f32[9,128], index: 3, kind: input, shape index: {}]   ;;  %s4622_s4 = inlined_call_operand.vmem [shape: f32[1,128], index: 4, kind: input, shape index: {}]   ;;  %s4623_s5 = inlined_call_operand.hbm [shape: bf16[128,128], index: 5, kind: input, shape index: {}]   ;;  %s4624_s6 = inlined_call_operand.vmem [shape: f32[1,128], index: 6, kind: input, shape index: {}]   ;;  %s4625_s7 = inlined_call_operand.hbm [shape: f32[2,16,16,128], index: 7, kind: output, shape index: {}]  }
   0x1   :  { %4635 = sst [smem:[#allocation25_spill]] %s4621_s3 }
   0x2   :  { %12 = vsyncpa [#allocation6], 0 }
   0x3   :  { %13 = vsyncpa [#allocation9], 0 }
   0x4   :  { %14 = vsyncpa [#allocation7], 0 }
   0x5   :  { %16 = vsyncpa [#allocation7 + $0x1], 0  ;;  %s3374_s24 = smov 0   ;;  %s3376_s25 = smov 0  }
   0x6   :  { %s3378_s26 = smov 0   ;;  %s3380_s27 = smov 0  }
   0x7   :  { %s3382_s28 = smov 0   ;;  %s3384_s29 = smov 0  }
   0x8 LB: > { %4636 = sst [smem:[#allocation20_spill]] %s3308_s26  ;;  %s2716_s30 = sadd.s32 4294967295, %s3320_s29   ;;  %s3320_s29 = sphi %s3384_s29, %s22_s29   ;;  %s3316_s28 = sphi %s3382_s28, %s4656_s28   ;;  %s3312_s27 = sphi %s3380_s27, %s4655_s27   ;;  %s3308_s26 = sphi %s3378_s26, %s4654_s26   ;;  %s3304_s25 = sphi %s3376_s25, %s4658_s25   ;;  %s3300_s24 = sphi %s3374_s24, %s4657_s24  }
   0x9   : > { %4637 = sst [smem:[#allocation21_spill]] %s3316_s28  ;;  %s2717_s8 = sadd.s32 4294967294, %s3320_s29  }
   0xa   : > { %s34_s9 = sadd.s32 1, %s3316_s28  ;;  %s169_s10 = sadd.s32 1, %s3308_s26 }
   0xb   : > { %p36_p0 = scmp.ge.s32.totalorder %s34_s9, 2  ;;  %p179_p1 = scmp.ne.s32.totalorder %s3308_s26, %s3304_s25 }
   0xc   : > { %p180_p2 = scmp.eq.s32.totalorder %s2716_s30, 1  ;;  %p185_p3 = scmp.ne.s32.totalorder %s3304_s25, %s3300_s24 }
   0xd   : > { %s4660_s9 = smov (%p36_p0, %s34_s9), 0  ;;  %p186_p5 = scmp.eq.s32.totalorder %s2717_s8, 1 }
   0xe   : > { %4638 = sst [smem:[#allocation22_spill]] %s4660_s9  ;;  %p3414_p4 = por %p180_p2, %p179_p1 }
   0xf   : > { %s164_s12 = ssub.s32 %s3316_s28, %s4660_s9  ;;  %p2718_p6 = scmp.ge.s32.totalorder %s3320_s29, 1 }
  0x10   : > { %s4639_s11 = scalar_select %p3414_p4, 1, 0 }
  0x11   : > { %p167_p7 = scmp.eq.s32.totalorder %s164_s12, 0  ;;  %p3421_p8 = por %p186_p5, %p185_p3 }
  0x12   : > { %p193_p9 = scmp.lt.s32.totalorder %s3320_s29, 3  ;;  %p3433_p11 = scmp.eq.s32.totalorder %s2716_s30, 0 }
  0x13   : > { %s4640_s13 = scalar_select %p3421_p8, 1, 0 }
  0x14   : > { %s3427_s14 = scalar_select %p167_p7, %s3308_s26, %s169_s10  }
  0x15   : > { %p3429_p10 = pnand %p2718_p6, %p193_p9  ;;  %s3322_s17 = smov [#allocation8]  }
  0x16   : > { %4641 = sst [smem:[#allocation23_spill]] %s3427_s14  ;;  %s221_s18 = sshll.u32 %s3322_s17, 4  ;;  %s222_s18 = int_to_ptr.vmem [resolvable:$true] %s221_s18 }
  0x17   : > { %s4642_s15 = scalar_select %p3429_p10, 1, 0 }
  0x18   : > { %s4643_s16 = scalar_select %p3433_p11, 1, 0 }
  0x19   : > { %p3023_p12 = pneg %p3429_p10  ;;  %s3323_s20 = smov [#allocation5]  }
  0x1a   : > { %s205_s21 = sshll.u32 %s3323_s20, 4  ;;  %s4645_s3 = sld [smem:[#allocation25_spill]]  ;;  %s206_s21 = int_to_ptr.vmem [resolvable:$true] %s205_s21 }
  0x1b   : > { %p3441_p13 = pnand %p3433_p11, %p3023_p12 }
  0x1d   : > { %p3453_p1 = pneg %p3441_p13 }
  0x20   : > { %s3124_s30 = scalar_lea.hbm %s4645_s3, 256 }
  0x21   : > { %p3125_p0 = scmp.ne.s32.totalorder %s4645_s3, %s3124_s30  ;;  %p3131_p5 = scmp.lt.u32.totalorder %s3124_s30, %s4645_s3 }
  0x23   : > { %p3127_p2 = pnand %p3453_p1, %p3125_p0 }
  0x25   : > { %p3128_p3 = pneg %p3127_p2 }
  0x27   : > { %p3133_p6 = pnand %p3131_p5, %p3128_p3 }
  0x29   : > { %3136 = shalt.err (!%p3133_p6)
}
  0x2a   : > { %s3137_s20 = scalar_lea.vmem %s222_s18, 256  ;;  %p3145_p8 = scmp.lt.s32.totalorder %s222_s18, %s222_s18 }
  0x2b   : > { %p3138_p7 = scmp.ne.s32.totalorder %s222_s18, %s3137_s20  ;;  %p3146_p4 = scmp.lt.s32.totalorder %s3137_s20, %s3137_s20 }
  0x2d   : > { %p3140_p9 = pnand %p3138_p7, %p3453_p1  ;;  %p3147_p11 = por %p3146_p4, %p3145_p8 }
  0x2f   : > { %p3141_p12 = pneg %p3140_p9 }
  0x31   : > { %p3148_p10 = pnand %p3147_p11, %p3141_p12 }
  0x33   : > { %3151 = shalt.err (!%p3148_p10)
}
  0x34   : > { %s3324_s22 = smov 128   ;;  %s3325_s23 = smov 8  }
  0x35   : > { %3029 = dma.hbm_to_vmem [thread:$0]  (!%p3441_p13), %s4645_s3, 256, %s222_s18, [#allocation9], %s3324_s22, %s3324_s22, %s3325_s23  }
  0x36   : > { %s3152_s17 = scalar_lea.hbm %s4619_s1, 1024 }
  0x37   : > { %p3153_p4 = scmp.ne.s32.totalorder %s4619_s1, %s3152_s17  ;;  %p3159_p11 = scmp.lt.u32.totalorder %s3152_s17, %s4619_s1 }
  0x39   : > { %p3155_p8 = pnand %p3153_p4, %p3453_p1 }
  0x3b   : > { %p3156_p10 = pneg %p3155_p8 }
  0x3d   : > { %p3161_p0 = pnand %p3159_p11, %p3156_p10 }
  0x3f   : > { %3164 = shalt.err (!%p3161_p0)
}
  0x40   : > { %s3165_s9 = scalar_lea.vmem %s206_s21, 1024  ;;  %p3173_p6 = scmp.lt.s32.totalorder %s206_s21, %s206_s21 }
  0x41   : > { %p3166_p2 = scmp.ne.s32.totalorder %s206_s21, %s3165_s9  ;;  %p3174_p7 = scmp.lt.s32.totalorder %s3165_s9, %s3165_s9 }
  0x43   : > { %p3168_p3 = pnand %p3166_p2, %p3453_p1  ;;  %p3175_p9 = por %p3174_p7, %p3173_p6 }
  0x45   : > { %p3169_p5 = pneg %p3168_p3 }
  0x47   : > { %p3176_p12 = pnand %p3175_p9, %p3169_p5 }
  0x49   : > { %3179 = shalt.err (!%p3176_p12)
}
  0x4a   : > { %s3326_s28 = smov 64   ;;  %s3327_s14 = smov 4  }
  0x4b   : > { %3026 = dma.hbm_to_vmem [thread:$0]  (!%p3441_p13), %s4619_s1, 1024, %s206_s21, [#allocation6], %s3326_s28, %s3326_s28, %s3327_s14  }
  0x4c   : > { %s3328_s22 = smov [#allocation10]   ;;  %s3180_s10 = scalar_lea.hbm %s4623_s5, 1024 }
  0x4d   : > { %s237_s23 = sshll.u32 %s3328_s22, 4  ;;  %p3181_p4 = scmp.ne.s32.totalorder %s4623_s5, %s3180_s10  ;;  %s238_s23 = int_to_ptr.vmem [resolvable:$true] %s237_s23 }
  0x4e   : > { %p3187_p11 = scmp.lt.u32.totalorder %s3180_s10, %s4623_s5 }
  0x4f   : > { %p3183_p8 = pnand %p3181_p4, %p3453_p1 }
  0x51   : > { %p3184_p10 = pneg %p3183_p8 }
  0x53   : > { %p3189_p0 = pnand %p3187_p11, %p3184_p10 }
  0x55   : > { %3192 = shalt.err (!%p3189_p0)
}
  0x56   : > { %s3193_s21 = scalar_lea.vmem %s238_s23, 1024  ;;  %p3201_p6 = scmp.lt.s32.totalorder %s238_s23, %s238_s23 }
  0x57   : > { %p3194_p2 = scmp.ne.s32.totalorder %s238_s23, %s3193_s21  ;;  %p3202_p7 = scmp.lt.s32.totalorder %s3193_s21, %s3193_s21 }
  0x59   : > { %p3196_p3 = pnand %p3194_p2, %p3453_p1  ;;  %p3203_p9 = por %p3202_p7, %p3201_p6 }
  0x5b   : > { %p3197_p5 = pneg %p3196_p3 }
  0x5d   : > { %p3204_p12 = pnand %p3203_p9, %p3197_p5 }
  0x5f   : > { %3207 = shalt.err (!%p3204_p12)
}
  0x60   : > { %3032 = dma.hbm_to_vmem [thread:$0]  (!%p3441_p13), %s4623_s5, 1024, %s238_s23, [#allocation9], %s3326_s28, %s3326_s28, %s3327_s14  }
  0x61   : > { %p4647_p4 = scmp.ne.s32.totalorder %s4642_s15, 0 }
  0x63   : > { %256 = sbr.rel (%p4647_p4) target bundleno = 843 (0x34b), region = 44 }
  0x6a   : > { %p4648_p8 = scmp.ne.s32.totalorder %s4643_s16, 0 }
  0x6c   : > { %3285 = dma.done.wait (%p4648_p8), [#allocation6], 1024  }
  0x6d   : > { %3287 = vsyncadd (%p4648_p8), [#allocation6], 4294966272 }
  0x6e   : > { %3289 = dma.done.wait (%p4648_p8), [#allocation9], 1280  }
  0x6f   : > { %3291 = vsyncadd (%p4648_p8), [#allocation9], 4294966016  ;;  %s286_s3 = sand.u32 1, %s3304_s25   ;;  %s2787_s19 = smul.u32 4608, %s3312_s27 }
  0x70   : > { %s2726_s15 = sshll.u32 %s286_s3, 8  ;;  %s3329_s22 = smov [#allocation2]  }
  0x71   : > { %s309_s14 = scalar_lea.hbm %s4618_s0, %s2787_s19  ;;  %s317_s23 = sshll.u32 %s3329_s22, 4  ;;  %s318_s23 = int_to_ptr.vmem [resolvable:$true] %s317_s23 }
  0x72   : > { %s3208_s30 = scalar_lea.hbm %s309_s14, 4608  ;;  %s3210_s16 = scalar_lea.hbm %s4618_s0, 9216 }
  0x73   : > { %p3209_p13 = scmp.ne.s32.totalorder %s309_s14, %s3208_s30  ;;  %p3211_p1 = scmp.lt.u32.totalorder %s309_s14, %s4618_s0 }
  0x74   : > { %p3212_p10 = scmp.lt.u32.totalorder %s3210_s16, %s3208_s30  ;;  %p3214_p0 = scmp.lt.u32.totalorder %s3208_s30, %s309_s14 }
  0x76   : > { %p3213_p11 = por %p3212_p10, %p3211_p1 }
  0x78   : > { %p3215_p2 = por %p3214_p0, %p3213_p11 }
  0x7a   : > { %p3216_p3 = pnand %p3215_p2, %p3209_p13 }
  0x7c   : > { %3219 = shalt.err (!%p3216_p3)  }
  0x7d   : > { %s3220_s9 = scalar_lea.vmem %s318_s23, 4608  ;;  %s3224_s21 = scalar_lea.vmem %s318_s23, 9216 }
  0x7e   : > { %p3221_p5 = scmp.ne.s32.totalorder %s318_s23, %s3220_s9  ;;  %p3225_p6 = scmp.lt.s32.totalorder %s318_s23, %s318_s23 }
  0x7f   : > { %p3226_p7 = scmp.lt.s32.totalorder %s3224_s21, %s3220_s9 }
  0x81   : > { %p3227_p9 = por %p3226_p7, %p3225_p6 }
  0x83   : > { %p3228_p12 = pnand %p3227_p9, %p3221_p5 }
  0x85   : > { %3231 = shalt.err (!%p3228_p12)  }
  0x86   : > { %320 = dma.hbm_to_vmem [thread:$0]  %s309_s14, 4608, %s318_s23, [#allocation3] }
  0x87   : > { %s3528_s26 = scalar_lea.vmem [#allocation11], %s2726_s15 }
  0x88   : > { %3292 = dma.done.wait [#allocation3], 4608 }
  0x89   : > { %3293 = vsyncadd [#allocation3], 4294962688  ;;  %v3103_v0 = vld [vmem:[#allocation5] sm:$0xff]   ;;  %v3104_v1 = vld [vmem:[#allocation5 + $0x8] sm:$0xff]   ;;  %v3330_v43 = vmov 0.0   ;;  %v1056_v53 = vlaneseq  ;;  %vm2408_vm0 = vcmask 1046528  }
  0x8a   : > { %2857 = vmatprep.subr.bf16.mxu0 %v3103_v0  ;;  %2993 = vmatprep.subr.bf16.mxu1 %v3103_v0  ;;  %v3105_v2 = vld [vmem:[#allocation5 + $0x10] sm:$0xff]   ;;  %v3106_v3 = vld [vmem:[#allocation5 + $0x18] sm:$0xff]   ;;  %v330_v4 = vld [vmem:[#allocation2] sm:$0xff]  ;;  %1016 = vst [vmem:[#allocation4 + $0x18] sm:$0xff] %v3330_v43  ;;  %s2788_s10 = sshll.u32 %s3312_s27, 12  ;;  %s2602_s16 = sshll.u32 %s3528_s26, 4  ;;  %s4565_s16 = int_to_ptr.vmem [resolvable:$true] %s2602_s16 }
  0x8b   : > { %2858 = vmatpush3.bf16.msra.mxu0 %v3103_v0  ;;  %3001 = vmatpush3.bf16.msra.mxu1 %v3103_v0  ;;  %v3107_v5 = vld [vmem:[#allocation5 + $0x20] sm:$0xff]   ;;  %v356_v6 = vld [vmem:[#allocation2 + $0xd0] sm:$0xff]  ;;  %v3108_v7 = vld [vmem:[#allocation5 + $0x28] sm:$0xff]   ;;  %1014 = vst [vmem:[#allocation4 + $0x8] sm:$0xff] %v3330_v43  ;;  %v3538_v55 = vshrl.u32 %v1056_v53, 7  ;;  %s4563_s9 = scalar_lea.hbm %s4625_s7, %s2788_s10  ;;  %s4572_s27 = scalar_lea.sflag [#allocation7], %s286_s3 }
  0x8c   : > { %2859 = vmatprep.subr.bf16.mxu0 %v3104_v1  ;;  %2994 = vmatprep.subr.bf16.mxu1 %v3104_v1  ;;  %v3109_v8 = vld [vmem:[#allocation5 + $0x30] sm:$0xff]   ;;  %v3110_v9 = vld [vmem:[#allocation5 + $0x38] sm:$0xff]   ;;  %v331_v10 = vld [vmem:[#allocation2 + $0x8] sm:$0xff]  ;;  %1019 = vst [vmem:[#allocation4 + $0x228] sm:$0xff] %v3330_v43  ;;  %s3232_s21 = scalar_lea.vmem %s4565_s16, 4096  ;;  %p4651_p8 = scmp.ne.s32.totalorder %s4639_s11, 0 }
  0x8d   : > { %2873 = vmatprep.mubr.bf16.mxu0 %v330_v4  ;;  %2925 = vmatprep.mubr.bf16.mxu1 %v356_v6  ;;  %v357_v11 = vld [vmem:[#allocation2 + $0xd8] sm:$0xff]  ;;  %v332_v12 = vld [vmem:[#allocation2 + $0x10] sm:$0xff]  ;;  %v358_v13 = vld [vmem:[#allocation2 + $0xe0] sm:$0xff]  ;;  %v1058_v0 = vsub.s32 0, %v3538_v55  ;;  %p3233_p4 = scmp.ne.s32.totalorder %s4565_s16, %s3232_s21  ;;  %s3331_s18 = smov [#allocation11]  }
  0x8e   : > { %v333_v14 = vld [vmem:[#allocation2 + $0x18] sm:$0xff]  ;;  %v359_v15 = vld [vmem:[#allocation2 + $0xe8] sm:$0xff]  ;;  %v334_v16 = vld [vmem:[#allocation2 + $0x20] sm:$0xff]  ;;  %s3236_s19 = sshll.u32 %s3331_s18, 4  ;;  %s3237_s19 = int_to_ptr.vmem [resolvable:$false] %s3236_s19 }
  0x8f   : > { %2860 = vmatpush3.bf16.msra.mxu0 %v3104_v1  ;;  %3002 = vmatpush3.bf16.msra.mxu1 %v3104_v1  ;;  %v360_v17 = vld [vmem:[#allocation2 + $0xf0] sm:$0xff]  ;;  %v335_v18 = vld [vmem:[#allocation2 + $0x28] sm:$0xff]  ;;  %v361_v19 = vld [vmem:[#allocation2 + $0xf8] sm:$0xff]  ;;  %p3234_p13 = pnand %p3233_p4, %p4651_p8  ;;  %s3238_s15 = scalar_lea.vmem %s3237_s19, 8192 }
  0x90   : > { %2861 = vmatprep.subr.bf16.mxu0 %v3105_v2  ;;  %2995 = vmatprep.subr.bf16.mxu1 %v3105_v2  ;;  %v336_v20 = vld [vmem:[#allocation2 + $0x30] sm:$0xff]  ;;  %v362_v21 = vld [vmem:[#allocation2 + $0x100] sm:$0xff]  ;;  %v337_v22 = vld [vmem:[#allocation2 + $0x38] sm:$0xff]  ;;  %p3239_p10 = scmp.lt.s32.totalorder %s4565_s16, %s3237_s19  ;;  %p3240_p11 = scmp.lt.s32.totalorder %s3238_s15, %s3232_s21 }
  0x91   : > { %v363_v23 = vld [vmem:[#allocation2 + $0x108] sm:$0xff]  ;;  %v338_v24 = vld [vmem:[#allocation2 + $0x40] sm:$0xff]  ;;  %v364_v25 = vld [vmem:[#allocation2 + $0x110] sm:$0xff]  ;;  %p3235_p1 = pneg %p3234_p13 }
  0x92   : > { %v339_v26 = vld [vmem:[#allocation2 + $0x48] sm:$0xff]  ;;  %v365_v27 = vld [vmem:[#allocation2 + $0x118] sm:$0xff]  ;;  %v340_v28 = vld [vmem:[#allocation2 + $0x50] sm:$0xff]  ;;  %p3241_p0 = por %p3240_p11, %p3239_p10 }
  0x93   : > { %2862 = vmatpush3.bf16.msra.mxu0 %v3105_v2  ;;  %3003 = vmatpush3.bf16.msra.mxu1 %v3105_v2  ;;  %v341_v29 = vld [vmem:[#allocation2 + $0x58] sm:$0xff]  ;;  %v342_v30 = vld [vmem:[#allocation2 + $0x60] sm:$0xff]  ;;  %v343_v31 = vld [vmem:[#allocation2 + $0x68] sm:$0xff] }
  0x94   : > { %2863 = vmatprep.subr.bf16.mxu0 %v3106_v3  ;;  %2996 = vmatprep.subr.bf16.mxu1 %v3106_v3  ;;  %v344_v32 = vld [vmem:[#allocation2 + $0x70] sm:$0xff]  ;;  %v345_v33 = vld [vmem:[#allocation2 + $0x78] sm:$0xff]  ;;  %v346_v34 = vld [vmem:[#allocation2 + $0x80] sm:$0xff]  ;;  %p3242_p2 = pnand %p3241_p0, %p3235_p1 }
  0x95   : > { %v347_v35 = vld [vmem:[#allocation2 + $0x88] sm:$0xff]  ;;  %v348_v36 = vld [vmem:[#allocation2 + $0x90] sm:$0xff]  ;;  %v349_v37 = vld [vmem:[#allocation2 + $0x98] sm:$0xff] }
  0x96   : > { %v350_v38 = vld [vmem:[#allocation2 + $0xa0] sm:$0xff]  ;;  %v351_v39 = vld [vmem:[#allocation2 + $0xa8] sm:$0xff]  ;;  %v352_v40 = vld [vmem:[#allocation2 + $0xb0] sm:$0xff] }
  0x97   : > { %2864 = vmatpush3.bf16.msra.mxu0 %v3106_v3  ;;  %3004 = vmatpush3.bf16.msra.mxu1 %v3106_v3  ;;  %v353_v41 = vld [vmem:[#allocation2 + $0xb8] sm:$0xff]  ;;  %v354_v42 = vld [vmem:[#allocation2 + $0xc0] sm:$0xff]  ;;  %v355_v44 = vld [vmem:[#allocation2 + $0xc8] sm:$0xff] }
  0x98   : > { %2865 = vmatprep.subr.bf16.mxu0 %v3107_v5  ;;  %2997 = vmatprep.subr.bf16.mxu1 %v3107_v5  ;;  %v3111_v45 = vld [vmem:[#allocation10] sm:$0xff]   ;;  %v3112_v46 = vld [vmem:[#allocation10 + $0x8] sm:$0xff]   ;;  %v3113_v47 = vld [vmem:[#allocation10 + $0x10] sm:$0xff]  }
  0x99   : > { %v3114_v48 = vld [vmem:[#allocation10 + $0x18] sm:$0xff]   ;;  %v3115_v49 = vld [vmem:[#allocation10 + $0x20] sm:$0xff]   ;;  %v3116_v50 = vld [vmem:[#allocation10 + $0x28] sm:$0xff]  }
  0x9a   : > { %v3117_v51 = vld [vmem:[#allocation10 + $0x30] sm:$0xff]   ;;  %v3118_v52 = vld [vmem:[#allocation10 + $0x38] sm:$0xff]  }
  0x9b   : > { %2866 = vmatpush3.bf16.msra.mxu0 %v3107_v5  ;;  %3005 = vmatpush3.bf16.msra.mxu1 %v3107_v5  ;;  %v3536_v54 = vld [vmem:[%s4620_s2] ss:$0 sm:$0xff]  ;;  %v1158_v5 = vsub.s32 1, %v3538_v55 }
  0x9c   : > { %2867 = vmatprep.subr.bf16.mxu0 %v3108_v7  ;;  %2998 = vmatprep.subr.bf16.mxu1 %v3108_v7 }
  0x9f   : > { %2868 = vmatpush3.bf16.msra.mxu0 %v3108_v7  ;;  %3006 = vmatpush3.bf16.msra.mxu1 %v3108_v7 }
  0xa0   : > { %2869 = vmatprep.subr.bf16.mxu0 %v3109_v8  ;;  %2999 = vmatprep.subr.bf16.mxu1 %v3109_v8 }
  0xa3   : > { %2870 = vmatpush3.bf16.msra.mxu0 %v3109_v8  ;;  %3007 = vmatpush3.bf16.msra.mxu1 %v3109_v8 }
  0xa4   : > { %2871 = vmatprep.subr.bf16.mxu0 %v3110_v9  ;;  %3000 = vmatprep.subr.bf16.mxu1 %v3110_v9 }
  0xa7   : > { %2872 = vmatpush3.bf16.msra.mxu0 %v3110_v9  ;;  %3008 = vmatpush3.bf16.msra.mxu1 %v3110_v9  ;;  %v1258_v9 = vsub.s32 2, %v3538_v55 }
  0xa8   : > { %2945 = vmatprep.subr.bf16.mxu1 %v3111_v45 }
  0xaa   : > { %2874 = vmatmul.mubr.bf16.vlgmr.msra.gmra.mrb[0].mxu0 %v331_v10  ;;  %2926 = vmatmul.mubr.bf16.vlgmr.msra.gmra.mrb[0].mxu1 %v357_v11 }
  0xab   : > { %2877 = vmatprep.mubr.bf16.mxu0 %v332_v12  ;;  %2929 = vmatprep.mubr.bf16.mxu1 %v358_v13  ;;  %v3548_v13 = vld [vmem:[#allocation8] sm:$0xff] }
  0xac   : > { %2946 = vmatpush3.bf16.msra.mxu1 %v3111_v45 }
  0xad   : > { %2947 = vmatprep.subr.bf16.mxu1 %v3112_v46 }
  0xb0   : > { %2948 = vmatpush3.bf16.msra.mxu1 %v3112_v46 }
  0xb1   : > { %2949 = vmatprep.subr.bf16.mxu1 %v3113_v47 }
  0xb2   : > { %2878 = vmatmul.mubr.bf16.gmra.mrb[4].mxu0 %v333_v14  ;;  %2930 = vmatmul.mubr.bf16.gmra.mrb[4].mxu1 %v359_v15 }
  0xb3   : > { %2881 = vmatprep.mubr.bf16.mxu0 %v334_v16  ;;  %2933 = vmatprep.mubr.bf16.mxu1 %v360_v17 }
  0xb4   : > { %2950 = vmatpush3.bf16.msra.mxu1 %v3113_v47 }
  0xb5   : > { %2951 = vmatprep.subr.bf16.mxu1 %v3114_v48 }
  0xb8   : > { %2952 = vmatpush3.bf16.msra.mxu1 %v3114_v48 }
  0xb9   : > { %2953 = vmatprep.subr.bf16.mxu1 %v3115_v49 }
  0xba   : > { %2882 = vmatmul.mubr.bf16.gmra.mrb[8].mxu0 %v335_v18  ;;  %2934 = vmatmul.mubr.bf16.gmra.mrb[8].mxu1 %v361_v19  ;;  %v1359_v18 = vsub.s32 3, %v3538_v55 }
  0xbb   : > { %2885 = vmatprep.mubr.bf16.mxu0 %v336_v20  ;;  %2937 = vmatprep.mubr.bf16.mxu1 %v362_v21  ;;  %v3553_v20 = vrot.slane %v3548_v13, %v1058_v0  ;;  %v3556_v21 = vrot.slane %v3548_v13, %v1158_v5 }
  0xbc   : > { %2954 = vmatpush3.bf16.msra.mxu1 %v3115_v49  ;;  %v3577_v53 = vrot.slane %v3548_v13, %v1359_v18 }
  0xbd   : > { %2955 = vmatprep.subr.bf16.mxu1 %v3116_v50 }
  0xc0   : > { %2956 = vmatpush3.bf16.msra.mxu1 %v3116_v50 }
  0xc1   : > { %2957 = vmatprep.subr.bf16.mxu1 %v3117_v51 }
  0xc2   : > { %2886 = vmatmul.mubr.bf16.gmra.mrb[12].mxu0 %v337_v22  ;;  %2938 = vmatmul.mubr.bf16.gmra.mrb[12].mxu1 %v363_v23  ;;  %v3559_v22 = vrot.slane %v3548_v13, %v1258_v9 }
  0xc3   : > { %2889 = vmatprep.mubr.bf16.mxu0 %v338_v24  ;;  %2941 = vmatprep.mubr.bf16.mxu1 %v364_v25 }
  0xc4   : > { %2958 = vmatpush3.bf16.msra.mxu1 %v3117_v51 }
  0xc5   : > { %2959 = vmatprep.subr.bf16.mxu1 %v3118_v52 }
  0xc8   : > { %2960 = vmatpush3.bf16.msra.mxu1 %v3118_v52  ;;  %v1060_v52 = vmul.f32 0.0, %v3553_v20 }
  0xca   : > { %2890 = vmatmul.mubr.bf16.gmra.mrb[16].mxu0 %v339_v26  ;;  %2942 = vmatmul.mubr.bf16.gmra.mrb[16].mxu1 %v365_v27  ;;  %v1459_v27 = vsub.s32 4, %v3538_v55 }
  0xcb   : > { %2893 = vmatprep.mubr.bf16.mxu0 %v340_v28  ;;  %v1559_v28 = vsub.s32 5, %v3538_v55 }
  0xd2   : > { %2894 = vmatmul.mubr.bf16.gmra.mrb[20].mxu0 %v341_v29 }
  0xd3   : > { %2897 = vmatprep.mubr.bf16.mxu0 %v342_v30 }
  0xda   : > { %2898 = vmatmul.mubr.bf16.gmra.mrb[24].mxu0 %v343_v31 }
  0xdb   : > { %2901 = vmatprep.mubr.bf16.mxu0 %v344_v32 }
  0xe2   : > { %2902 = vmatmul.mubr.bf16.gmra.mrb[28].mxu0 %v345_v33  ;;  %v1660_v33 = vsub.s32 6, %v3538_v55 }
  0xe3   : > { %2905 = vmatprep.mubr.bf16.mxu0 %v346_v34  ;;  %v1760_v34 = vsub.s32 7, %v3538_v55 }
  0xea   : > { %2906 = vmatmul.mubr.bf16.gmra.mrb[32].mxu0 %v347_v35 }
  0xeb   : > { %2909 = vmatprep.mubr.bf16.mxu0 %v348_v36 }
  0xf2   : > { %2910 = vmatmul.mubr.bf16.gmra.mrb[36].mxu0 %v349_v37 }
  0xf3   : > { %2913 = vmatprep.mubr.bf16.mxu0 %v350_v38 }
  0xfa   : > { %2914 = vmatmul.mubr.bf16.gmra.mrb[40].mxu0 %v351_v39 }
  0xfb   : > { %2917 = vmatprep.mubr.bf16.mxu0 %v352_v40 }
 0x102   : > { %2918 = vmatmul.mubr.bf16.gmra.mrb[44].mxu0 %v353_v41 }
 0x103   : > { %2921 = vmatprep.mubr.bf16.mxu0 %v354_v42 }
 0x10a   : > { %2922 = vmatmul.mubr.bf16.gmra.mrb[48].mxu0 %v355_v44 }
 0x17d   : > { %v2875_v56 = vpop.f32.mrb[0].mxu0  ;;  %v2927_v57 = vpop.f32.mrb[0].mxu1 }
 0x17e   : > { %v480_v58 = vadd.f32 %v2875_v56, %v3536_v54  ;;  %v471_v59 = vpop.f32.mrb[1].mxu0  ;;  %v688_v60 = vadd.f32 %v2927_v57, %v3536_v54  ;;  %v679_v61 = vpop.f32.mrb[1].mxu1 }
 0x17f   : > { %v472_v62 = vadd.f32 %v3536_v54, %v471_v59  ;;  %v2876_v63 = vpop.f32.mrb[2].mxu0  ;;  %v680_v1 = vadd.f32 %v3536_v54, %v679_v61  ;;  %v2928_v2 = vpop.f32.mrb[2].mxu1  ;;  %v3581_v59 = vrot.slane %v3548_v13, %v1459_v27 }
 0x180   : > { %v760_v3 = vmax.f32 %v480_v58, 0.0  ;;  %v474_v4 = vpop.f32.mrb[3].mxu0  ;;  %v812_v6 = vmax.f32 %v688_v60, 0.0  ;;  %v682_v7 = vpop.f32.mrb[3].mxu1  ;;  %v3584_v60 = vrot.slane %v3548_v13, %v1559_v28 }
 0x181   : > { %v758_v8 = vmax.f32 %v472_v62, 0.0  ;;  %v810_v10 = vmax.f32 %v680_v1, 0.0  ;;  %v683_v11 = vadd.f32 %v3536_v54, %v682_v7 }
 0x182   : > { %v832_v12 = vmin.f32 %v760_v3, 6.0  ;;  %v884_v14 = vmin.f32 %v812_v6, 6.0 }
 0x183   : > { %v830_v15 = vmin.f32 %v758_v8, 6.0  ;;  %v882_v16 = vmin.f32 %v810_v10, 6.0  ;;  %v811_v17 = vmax.f32 %v683_v11, 0.0  ;;  %v3596_v10 = vrot.slane %v3548_v13, %v1660_v33 }
 0x184   : > { %904 = vst [vmem:[#allocation4 + $0x10] sm:$0xff] %v832_v12  ;;  %956 = vst [vmem:[#allocation4 + $0x1b0] sm:$0xff] %v884_v14  ;;  %v3599_v11 = vrot.slane %v3548_v13, %v1760_v34 }
 0x185   : > { %992 = vst [vmem:[#allocation4 + $0x11] sm:$0x1] %v3330_v43  ;;  %902 = vst [vmem:[#allocation4] sm:$0xff] %v830_v15  ;;  %v2879_v19 = vpop.f32.mrb[4].mxu0  ;;  %v883_v23 = vmin.f32 %v811_v17, 6.0  ;;  %v2931_v24 = vpop.f32.mrb[4].mxu1 }
 0x186   : > { %1005 = vst [vmem:[#allocation4 + $0x1b1] sm:$0x1] %v3330_v43  ;;  %954 = vst [vmem:[#allocation4 + $0x1a0] sm:$0xff] %v882_v16  ;;  %v496_v25 = vadd.f32 %v2879_v19, %v3536_v54  ;;  %v487_v26 = vpop.f32.mrb[5].mxu0  ;;  %v704_v29 = vadd.f32 %v2931_v24, %v3536_v54  ;;  %v695_v30 = vpop.f32.mrb[5].mxu1 }
 0x187   : > { %1015 = vst [vmem:[#allocation4 + $0x10] sm:$0xff] %v3330_v43  ;;  %987 = vst [vmem:[#allocation4 + $0x1a0] sm:$0x1] %v3330_v43  ;;  %v488_v31 = vadd.f32 %v3536_v54, %v487_v26  ;;  %v2880_v32 = vpop.f32.mrb[6].mxu0  ;;  %v696_v35 = vadd.f32 %v3536_v54, %v695_v30  ;;  %v2932_v36 = vpop.f32.mrb[6].mxu1 }
 0x188   : > { %1013 = vst [vmem:[#allocation4] sm:$0xff] %v3330_v43  ;;  %955 = vst [vmem:[#allocation4 + $0x1a8] sm:$0xff] %v883_v23  ;;  %v764_v37 = vmax.f32 %v496_v25, 0.0  ;;  %v490_v38 = vpop.f32.mrb[7].mxu0  ;;  %v816_v39 = vmax.f32 %v704_v29, 0.0  ;;  %v698_v40 = vpop.f32.mrb[7].mxu1 }
 0x189   : > { %v762_v41 = vmax.f32 %v488_v31, 0.0  ;;  %v491_v42 = vadd.f32 %v3536_v54, %v490_v38  ;;  %v814_v44 = vmax.f32 %v696_v35, 0.0  ;;  %v699_v45 = vadd.f32 %v3536_v54, %v698_v40 }
 0x18a   : > { %v836_v46 = vmin.f32 %v764_v37, 6.0  ;;  %v888_v47 = vmin.f32 %v816_v39, 6.0 }
 0x18b   : > { %v834_v48 = vmin.f32 %v762_v41, 6.0  ;;  %v763_v49 = vmax.f32 %v491_v42, 0.0  ;;  %v886_v50 = vmin.f32 %v814_v44, 6.0  ;;  %v815_v51 = vmax.f32 %v699_v45, 0.0 }
 0x18c   : > { %908 = vst [vmem:[#allocation4 + $0x30] sm:$0xff] %v836_v46  ;;  %960 = vst [vmem:[#allocation4 + $0x1d0] sm:$0xff] %v888_v47 }
 0x18d   : > { %993 = vst [vmem:[#allocation4 + $0x31] sm:$0x1] %v3330_v43  ;;  %906 = vst [vmem:[#allocation4 + $0x20] sm:$0xff] %v834_v48  ;;  %v835_v55 = vmin.f32 %v763_v49, 6.0  ;;  %v2883_v56 = vpop.f32.mrb[8].mxu0  ;;  %v887_v61 = vmin.f32 %v815_v51, 6.0 }
 0x18e   : > { %v1125_v57 = vld [vmem:[#allocation4 + $0x9] sm:$0xff]  ;;  %1006 = vst [vmem:[#allocation4 + $0x1d1] sm:$0x1] %v3330_v43  ;;  %958 = vst [vmem:[#allocation4 + $0x1c0] sm:$0xff] %v886_v50  ;;  %v2935_v62 = vpop.f32.mrb[8].mxu1  ;;  %v512_v63 = vadd.f32 %v2883_v56, %v3536_v54  ;;  %v503_v0 = vpop.f32.mrb[9].mxu0 }
 0x18f   : > { %v1225_v58 = vld [vmem:[#allocation4 + $0xa] sm:$0xff]  ;;  %975 = vst [vmem:[#allocation4 + $0x20] sm:$0x1] %v3330_v43  ;;  %v1124_v1 = vld [vmem:[#allocation4 + $0x1] sm:$0xff]  ;;  %v1161_v2 = vmul.f32 %v3556_v21, %v1125_v57  ;;  %988 = vst [vmem:[#allocation4 + $0x1c0] sm:$0x1] %v3330_v43  ;;  %v720_v5 = vadd.f32 %v2935_v62, %v3536_v54  ;;  %v504_v7 = vadd.f32 %v3536_v54, %v503_v0 }
 0x190   : > { %v1224_v3 = vld [vmem:[#allocation4 + $0x2] sm:$0xff]  ;;  %v1261_v4 = vmul.f32 %v3559_v22, %v1225_v58  ;;  %v711_v6 = vpop.f32.mrb[9].mxu1  ;;  %907 = vst [vmem:[#allocation4 + $0x28] sm:$0xff] %v835_v55  ;;  %v2884_v8 = vpop.f32.mrb[10].mxu0  ;;  %v1160_v9 = vmul.f32 %v3556_v21, %v1124_v1  ;;  %959 = vst [vmem:[#allocation4 + $0x1c8] sm:$0xff] %v887_v61  ;;  %v768_v14 = vmax.f32 %v512_v63, 0.0  ;;  %v1362_v30 = vmul.f32 %v3577_v53, %v835_v55 }
 0x191   : > { %v2936_v12 = vpop.f32.mrb[10].mxu1  ;;  %v506_v15 = vpop.f32.mrb[11].mxu0  ;;  %v1193_v16 = vadd.f32 %v1161_v2, %v1060_v52  ;;  %v1260_v17 = vmul.f32 %v3559_v22, %v1224_v3  ;;  %v766_v19 = vmax.f32 %v504_v7, 0.0  ;;  %v820_v25 = vmax.f32 %v720_v5, 0.0 }
 0x192   : > { %v714_v18 = vpop.f32.mrb[11].mxu1  ;;  %v507_v23 = vadd.f32 %v3536_v54, %v506_v15  ;;  %v1192_v24 = vadd.f32 %v1160_v9, %v1060_v52  ;;  %v840_v26 = vmin.f32 %v768_v14, 6.0  ;;  %v712_v28 = vadd.f32 %v3536_v54, %v711_v6 }
 0x193   : > { %v1293_v27 = vadd.f32 %v1261_v4, %v1193_v16  ;;  %v838_v29 = vmin.f32 %v766_v19, 6.0  ;;  %v892_v31 = vmin.f32 %v820_v25, 6.0  ;;  %v1063_v33 = vmul.f32 %v3553_v20, %v835_v55 }
 0x194   : > { %v767_v13 = vmax.f32 %v507_v23, 0.0  ;;  %912 = vst [vmem:[#allocation4 + $0x50] sm:$0xff] %v840_v26  ;;  %v1292_v32 = vadd.f32 %v1260_v17, %v1192_v24  ;;  %v818_v34 = vmax.f32 %v712_v28, 0.0  ;;  %v3610_v39 = vadd.f32 %v3536_v54, %v714_v18  ;;  %v3635_v17 = vld [vmem:[#allocation8 + $0x8] ss:$0 sm:$0xff] }
 0x195   : > { %994 = vst [vmem:[#allocation4 + $0x51] sm:$0x1] %v3330_v43  ;;  %910 = vst [vmem:[#allocation4 + $0x40] sm:$0xff] %v838_v29  ;;  %v2887_v36 = vpop.f32.mrb[12].mxu0  ;;  %v1394_v38 = vadd.f32 %v1362_v30, %v1293_v27  ;;  %v3612_v40 = vpop.f32.mrb[12].mxu1 }
 0x196   : > { %v3607_v35 = vmin.f32 %v767_v13, 6.0  ;;  %v1325_v37 = vld [vmem:[#allocation4 + $0x20] sm:$0xff]  ;;  %964 = vst [vmem:[#allocation4 + $0x1f0] sm:$0xff] %v892_v31  ;;  %976 = vst [vmem:[#allocation4 + $0x40] sm:$0x1] %v3330_v43  ;;  %v528_v41 = vadd.f32 %v2887_v36, %v3536_v54  ;;  %v519_v42 = vpop.f32.mrb[13].mxu0 }
 0x197   : > { %v1361_v44 = vmul.f32 %v3577_v53, %v1325_v37  ;;  %v1425_v45 = vld [vmem:[#allocation4 + $0x21] sm:$0xff]  ;;  %v1426_v46 = vld [vmem:[#allocation4 + $0x29] sm:$0xff]  ;;  %v1062_v48 = vmul.f32 %v1325_v37, %v3553_v20  ;;  %1007 = vst [vmem:[#allocation4 + $0x1f1] sm:$0x1] %v3330_v43  ;;  %v890_v49 = vmin.f32 %v818_v34, 6.0  ;;  %v3619_v50 = vpop.f32.mrb[13].mxu1  ;;  %v520_v51 = vadd.f32 %v3536_v54, %v519_v42 }
 0x198   : > { %v1525_v47 = vld [vmem:[#allocation4 + $0x22] sm:$0xff]  ;;  %911 = vst [vmem:[#allocation4 + $0x48] sm:$0xff] %v3607_v35  ;;  %v2888_v52 = vpop.f32.mrb[14].mxu0  ;;  %v1461_v55 = vmul.f32 %v3581_v59, %v1425_v45  ;;  %v1462_v56 = vmul.f32 %v3581_v59, %v1426_v46  ;;  %v1526_v57 = vld [vmem:[#allocation4 + $0x2a] sm:$0xff]  ;;  %v2940_v61 = vpop.f32.mrb[14].mxu1  ;;  %v772_v62 = vmax.f32 %v528_v41, 0.0  ;;  %v1663_v6 = vmul.f32 %v3596_v10, %v3607_v35 }
 0x199   : > { %v1561_v58 = vmul.f32 %v3584_v60, %v1525_v47  ;;  %v522_v63 = vpop.f32.mrb[15].mxu0  ;;  %v1393_v0 = vadd.f32 %v1361_v44, %v1292_v32  ;;  %v1562_v1 = vmul.f32 %v3584_v60, %v1526_v57  ;;  %962 = vst [vmem:[#allocation4 + $0x1e0] sm:$0xff] %v890_v49  ;;  %v3627_v2 = vpop.f32.mrb[15].mxu1  ;;  %v770_v3 = vmax.f32 %v520_v51, 0.0 }
 0x19a   : > { %v523_v4 = vadd.f32 %v3536_v54, %v522_v63  ;;  %v1494_v5 = vadd.f32 %v1462_v56, %v1394_v38  ;;  %989 = vst [vmem:[#allocation4 + $0x1e0] sm:$0x1] %v3330_v43  ;;  %v844_v7 = vmin.f32 %v772_v62, 6.0  ;;  %v1162_v9 = vmul.f32 %v1425_v45, %v3556_v21 }
 0x19b   : > { %v1493_v8 = vadd.f32 %v1461_v55, %v1393_v0  ;;  %v842_v12 = vmin.f32 %v770_v3, 6.0  ;;  %v1163_v16 = vmul.f32 %v1426_v46, %v3556_v21  ;;  %v1262_v23 = vmul.f32 %v1525_v47, %v3559_v22  ;;  %v3676_v3 = vld [vmem:[%s4622_s4] ss:$0 sm:$0xff] }
 0x19c   : > { %v771_v14 = vmax.f32 %v523_v4, 0.0  ;;  %v1594_v15 = vadd.f32 %v1562_v1, %v1494_v5  ;;  %916 = vst [vmem:[#allocation4 + $0x70] sm:$0xff] %v844_v7  ;;  %v1194_v19 = vadd.f32 %v1162_v9, %v1062_v48  ;;  %v1263_v29 = vmul.f32 %v1526_v57, %v3559_v22 }
 0x19d   : > { %v1593_v18 = vadd.f32 %v1561_v58, %v1493_v8  ;;  %995 = vst [vmem:[#allocation4 + $0x71] sm:$0x1] %v3330_v43  ;;  %914 = vst [vmem:[#allocation4 + $0x60] sm:$0xff] %v842_v12  ;;  %v2891_v25 = vpop.f32.mrb[16].mxu0  ;;  %v3641_v26 = vld [vmem:[#allocation4 + $0x40] sm:$0xff]  ;;  %v1195_v28 = vadd.f32 %v1163_v16, %v1063_v33  ;;  %v3644_v13 = vpop.f32.mrb[16].mxu1  ;;  %v1364_v4 = vmul.f32 %v3577_v53, %v3607_v35 }
 0x19e   : > { %v3639_v24 = vmin.f32 %v771_v14, 6.0  ;;  %v1695_v27 = vadd.f32 %v1663_v6, %v1594_v15  ;;  %977 = vst [vmem:[#allocation4 + $0x60] sm:$0x1] %v3330_v43  ;;  %v544_v30 = vadd.f32 %v2891_v25, %v3536_v54  ;;  %v535_v31 = vpop.f32.mrb[17].mxu0  ;;  %v1662_v32 = vmul.f32 %v3596_v10, %v3641_v26  ;;  %v3658_v41 = vpop.f32.mrb[17].mxu1 }
 0x19f   : > { %v3650_v34 = vld [vmem:[#allocation4 + $0x41] sm:$0xff]  ;;  %v3652_v36 = vld [vmem:[#allocation4 + $0x49] sm:$0xff]  ;;  %v1294_v38 = vadd.f32 %v1262_v23, %v1194_v19  ;;  %v1363_v33 = vmul.f32 %v3641_v26, %v3577_v53  ;;  %v536_v42 = vadd.f32 %v3536_v54, %v535_v31  ;;  %v2892_v44 = vpop.f32.mrb[18].mxu0  ;;  %v2944_v49 = vpop.f32.mrb[18].mxu1  ;;  %v1295_v63 = vadd.f32 %v1263_v29, %v1195_v28 }
 0x1a0   : > { %v3654_v37 = vld [vmem:[#allocation4 + $0x42] sm:$0xff]  ;;  %915 = vst [vmem:[#allocation4 + $0x68] sm:$0xff] %v3639_v24  ;;  %v1762_v45 = vmul.f32 %v3599_v11, %v3650_v34  ;;  %v1763_v46 = vmul.f32 %v3599_v11, %v3652_v36  ;;  %v3666_v47 = vld [vmem:[#allocation4 + $0x4a] sm:$0xff]  ;;  %v776_v51 = vmax.f32 %v544_v30, 0.0  ;;  %v538_v52 = vpop.f32.mrb[19].mxu0  ;;  %v1694_v55 = vadd.f32 %v1662_v32, %v1593_v18  ;;  %v746_v57 = vpop.f32.mrb[19].mxu1 }
 0x1a1   : > { %v1862_v48 = vmul.f32 %v3635_v17, %v3654_v37  ;;  %v1863_v56 = vmul.f32 %v3635_v17, %v3666_v47  ;;  %v774_v58 = vmax.f32 %v536_v42, 0.0  ;;  %v539_v61 = vadd.f32 %v3536_v54, %v538_v52 }
 0x1a2   : > { %v1795_v62 = vadd.f32 %v1763_v46, %v1695_v27  ;;  %v848_v0 = vmin.f32 %v776_v51, 6.0  ;;  %v1794_v1 = vadd.f32 %v1762_v45, %v1694_v55  ;;  %v1395_v8 = vadd.f32 %v1363_v33, %v1294_v38 }
 0x1a3   : > { %v846_v5 = vmin.f32 %v774_v58, 6.0  ;;  %v775_v6 = vmax.f32 %v539_v61, 0.0  ;;  %v1396_v12 = vadd.f32 %v1364_v4, %v1295_v63  ;;  %v1463_v14 = vmul.f32 %v3650_v34, %v3581_v59 }
 0x1a4   : > { %v1895_v7 = vadd.f32 %v1863_v56, %v1795_v62  ;;  %920 = vst [vmem:[#allocation4 + $0x90] sm:$0xff] %v848_v0  ;;  %v1894_v9 = vadd.f32 %v1862_v48, %v1794_v1  ;;  %v1464_v19 = vmul.f32 %v3652_v36, %v3581_v59  ;;  %v1563_v23 = vmul.f32 %v3654_v37, %v3584_v60 }
 0x1a5   : > { %996 = vst [vmem:[#allocation4 + $0x91] sm:$0x1] %v3330_v43  ;;  %918 = vst [vmem:[#allocation4 + $0x80] sm:$0xff] %v846_v5  ;;  %v3683_v15 = vmin.f32 %v775_v6, 6.0  ;;  %v2895_v16 = vpop.f32.mrb[20].mxu0  ;;  %v3690_v25 = vld [vmem:[#allocation4 + $0x60] sm:$0xff]  ;;  %v1495_v30 = vadd.f32 %v1463_v14, %v1395_v8  ;;  %v1564_v31 = vmul.f32 %v3666_v47, %v3584_v60  ;;  %v1665_v63 = vmul.f32 %v3596_v10, %v3639_v24 }
 0x1a6   : > { %v1934_v18 = vadd.f32 %v3676_v3, %v1895_v7  ;;  %978 = vst [vmem:[#allocation4 + $0x80] sm:$0x1] %v3330_v43  ;;  %v560_v27 = vadd.f32 %v2895_v16, %v3536_v54  ;;  %v551_v28 = vpop.f32.mrb[21].mxu0  ;;  %v1933_v29 = vadd.f32 %v3676_v3, %v1894_v9  ;;  %v1496_v42 = vadd.f32 %v1464_v19, %v1396_v12 }
 0x1a7   : > { %919 = vst [vmem:[#allocation4 + $0x88] sm:$0xff] %v3683_v15  ;;  %v552_v32 = vadd.f32 %v3536_v54, %v551_v28  ;;  %v2896_v38 = vpop.f32.mrb[22].mxu0  ;;  %v1664_v44 = vmul.f32 %v3596_v10, %v3690_v25  ;;  %v1595_v49 = vadd.f32 %v1563_v23, %v1495_v30  ;;  %v3701_v51 = vld [vmem:[#allocation4 + $0x61] sm:$0xff]  ;;  %v3704_v58 = vld [vmem:[#allocation4 + $0x69] sm:$0xff]  ;;  %v1064_v30 = vmul.f32 %v3641_v26, %v3553_v20 }
 0x1a8   : > { %v1966_v33 = vmax.f32 %v1934_v18, 0.0  ;;  %v780_v45 = vmax.f32 %v560_v27, 0.0  ;;  %v554_v46 = vpop.f32.mrb[23].mxu0  ;;  %v1965_v48 = vmax.f32 %v1933_v29, 0.0  ;;  %v1596_v57 = vadd.f32 %v1564_v31, %v1496_v42  ;;  %v3708_v0 = vld [vmem:[#allocation4 + $0x62] sm:$0xff]  ;;  %v3710_v1 = vld [vmem:[#allocation4 + $0x6a] sm:$0xff] }
 0x1a9   : > { %v778_v52 = vmax.f32 %v552_v32, 0.0  ;;  %v555_v55 = vadd.f32 %v3536_v54, %v554_v46  ;;  %v1696_v6 = vadd.f32 %v1664_v44, %v1595_v49  ;;  %v1764_v7 = vmul.f32 %v3599_v11, %v3701_v51 }
 0x1aa   : > { %v1998_v56 = vmin.f32 %v1966_v33, 6.0  ;;  %v852_v61 = vmin.f32 %v780_v45, 6.0  ;;  %v1997_v62 = vmin.f32 %v1965_v48, 6.0  ;;  %v1697_v9 = vadd.f32 %v1665_v63, %v1596_v57 }
 0x1ab   : > { %v850_v4 = vmin.f32 %v778_v52, 6.0  ;;  %v779_v5 = vmax.f32 %v555_v55, 0.0  ;;  %v1765_v12 = vmul.f32 %v3599_v11, %v3704_v58  ;;  %v1796_v18 = vadd.f32 %v1764_v7, %v1696_v6 }
 0x1ac   : > { %924 = vst [vmem:[#allocation4 + $0xb0] sm:$0xff] %v852_v61  ;;  %v2029_v8 = vpack.c.bf16 %v1998_v56, %v1997_v62  ;;  %v1864_v19 = vmul.f32 %v3635_v17, %v3708_v0  ;;  %v1865_v23 = vmul.f32 %v3635_v17, %v3710_v1  ;;  %v1065_v31 = vmul.f32 %v3553_v20, %v3607_v35 }
 0x1ad   : > { %997 = vst [vmem:[#allocation4 + $0xb1] sm:$0x1] %v3330_v43  ;;  %922 = vst [vmem:[#allocation4 + $0xa0] sm:$0xff] %v850_v4  ;;  %v3717_v14 = vmin.f32 %v779_v5, 6.0  ;;  %v2899_v16 = vpop.f32.mrb[24].mxu0  ;;  %v1797_v29 = vadd.f32 %v1765_v12, %v1697_v9  ;;  %v1164_v42 = vmul.f32 %v3650_v34, %v3556_v21  ;;  %v1165_v44 = vmul.f32 %v3652_v36, %v3556_v21 }
 0x1ae   : > { %979 = vst [vmem:[#allocation4 + $0xa0] sm:$0x1] %v3330_v43  ;;  %v576_v27 = vadd.f32 %v2899_v16, %v3536_v54  ;;  %v567_v28 = vpop.f32.mrb[25].mxu0  ;;  %2961 = vmatprep.mubr.bf16.mxu1 %v2029_v8  ;;  %v1896_v33 = vadd.f32 %v1864_v19, %v1796_v18  ;;  %v1264_v26 = vmul.f32 %v3654_v37, %v3559_v22 }
 0x1af   : > { %923 = vst [vmem:[#allocation4 + $0xa8] sm:$0xff] %v3717_v14  ;;  %v568_v32 = vadd.f32 %v3536_v54, %v567_v28  ;;  %v2900_v38 = vpop.f32.mrb[26].mxu0  ;;  %v1897_v48 = vadd.f32 %v1865_v23, %v1797_v29  ;;  %v1196_v55 = vadd.f32 %v1164_v42, %v1064_v30  ;;  %v1197_v61 = vadd.f32 %v1165_v44, %v1065_v31 }
 0x1b0   : > { %v784_v45 = vmax.f32 %v576_v27, 0.0  ;;  %v570_v46 = vpop.f32.mrb[27].mxu0  ;;  %v1935_v52 = vadd.f32 %v3676_v3, %v1896_v33  ;;  %v1265_v36 = vmul.f32 %v3666_v47, %v3559_v22  ;;  %v1365_v37 = vmul.f32 %v3690_v25, %v3577_v53 }
 0x1b1   : > { %v782_v49 = vmax.f32 %v568_v32, 0.0  ;;  %v571_v35 = vadd.f32 %v3536_v54, %v570_v46  ;;  %v1936_v57 = vadd.f32 %v3676_v3, %v1897_v48  ;;  %v1296_v5 = vadd.f32 %v1264_v26, %v1196_v55  ;;  %v3759_v32 = vld [vmem:[#allocation4 + $0x80] sm:$0xff] }
 0x1b2   : > { %v856_v56 = vmin.f32 %v784_v45, 6.0  ;;  %v1967_v63 = vmax.f32 %v1935_v52, 0.0  ;;  %v1297_v9 = vadd.f32 %v1265_v36, %v1197_v61  ;;  %v1366_v12 = vmul.f32 %v3577_v53, %v3639_v24  ;;  %v3772_v61 = vld [vmem:[#allocation4 + $0x8a] sm:$0xff] }
 0x1b3   : > { %v854_v34 = vmin.f32 %v782_v49, 6.0  ;;  %v783_v62 = vmax.f32 %v571_v35, 0.0  ;;  %v1968_v4 = vmax.f32 %v1936_v57, 0.0  ;;  %v1397_v19 = vadd.f32 %v1365_v37, %v1296_v5  ;;  %v3764_v49 = vld [vmem:[#allocation4 + $0x81] sm:$0xff]  ;;  %v3766_v35 = vld [vmem:[#allocation4 + $0x89] sm:$0xff] }
 0x1b4   : > { %928 = vst [vmem:[#allocation4 + $0xd0] sm:$0xff] %v856_v56  ;;  %v1999_v8 = vmin.f32 %v1967_v63, 6.0  ;;  %v1465_v23 = vmul.f32 %v3701_v51, %v3581_v59  ;;  %v1398_v29 = vadd.f32 %v1366_v12, %v1297_v9  ;;  %v1466_v30 = vmul.f32 %v3704_v58, %v3581_v59  ;;  %v3770_v57 = vld [vmem:[#allocation4 + $0x82] sm:$0xff] }
 0x1b5   : > { %998 = vst [vmem:[#allocation4 + $0xd1] sm:$0x1] %v3330_v43  ;;  %926 = vst [vmem:[#allocation4 + $0xc0] sm:$0xff] %v854_v34  ;;  %v3745_v6 = vmin.f32 %v783_v62, 6.0  ;;  %v2903_v7 = vpop.f32.mrb[28].mxu0  ;;  %v2000_v18 = vmin.f32 %v1968_v4, 6.0  ;;  %v1565_v31 = vmul.f32 %v3708_v0, %v3584_v60  ;;  %v1566_v26 = vmul.f32 %v3710_v1, %v3584_v60 }
 0x1b6   : > { %980 = vst [vmem:[#allocation4 + $0xc0] sm:$0x1] %v3330_v43  ;;  %v592_v47 = vadd.f32 %v2903_v7, %v3536_v54  ;;  %v583_v16 = vpop.f32.mrb[29].mxu0  ;;  %v1497_v44 = vadd.f32 %v1465_v23, %v1397_v19  ;;  %v1498_v48 = vadd.f32 %v1466_v30, %v1398_v29  ;;  %v1666_v56 = vmul.f32 %v3596_v10, %v3759_v32 }
 0x1b7   : > { %927 = vst [vmem:[#allocation4 + $0xc8] sm:$0xff] %v3745_v6  ;;  %v584_v27 = vadd.f32 %v3536_v54, %v583_v16  ;;  %v2904_v28 = vpop.f32.mrb[30].mxu0  ;;  %v2030_v33 = vpack.c.bf16 %v2000_v18, %v1999_v8  ;;  %v1667_v36 = vmul.f32 %v3596_v10, %v3683_v15  ;;  %v1766_v5 = vmul.f32 %v3599_v11, %v3764_v49 }
 0x1b8   : > { %v788_v38 = vmax.f32 %v592_v47, 0.0  ;;  %v586_v42 = vpop.f32.mrb[31].mxu0  ;;  %v1597_v55 = vadd.f32 %v1565_v31, %v1497_v44  ;;  %v1598_v63 = vadd.f32 %v1566_v26, %v1498_v48  ;;  %v1767_v37 = vmul.f32 %v3599_v11, %v3766_v35 }
 0x1b9   : > { %v786_v45 = vmax.f32 %v584_v27, 0.0  ;;  %v587_v46 = vadd.f32 %v3536_v54, %v586_v42  ;;  %2962 = vmatmul.mubr.bf16.vlgmr.msra.gmra.mrb[20].mxu1 %v2030_v33  ;;  %v1866_v12 = vmul.f32 %v3635_v17, %v3770_v57  ;;  %v1867_v47 = vmul.f32 %v3635_v17, %v3772_v61 }
 0x1ba   : > { %v860_v52 = vmin.f32 %v788_v38, 6.0  ;;  %v1698_v4 = vadd.f32 %v1666_v56, %v1597_v55  ;;  %v1699_v9 = vadd.f32 %v1667_v36, %v1598_v63  ;;  %v1066_v23 = vmul.f32 %v3690_v25, %v3553_v20 }
 0x1bb   : > { %v858_v34 = vmin.f32 %v786_v45, 6.0  ;;  %v787_v62 = vmax.f32 %v587_v46, 0.0  ;;  %v1067_v27 = vmul.f32 %v3553_v20, %v3639_v24  ;;  %v1166_v31 = vmul.f32 %v3701_v51, %v3556_v21 }
 0x1bc   : > { %932 = vst [vmem:[#allocation4 + $0xf0] sm:$0xff] %v860_v52  ;;  %v1798_v19 = vadd.f32 %v1766_v5, %v1698_v4  ;;  %v1799_v30 = vadd.f32 %v1767_v37, %v1699_v9  ;;  %v1167_v38 = vmul.f32 %v3704_v58, %v3556_v21  ;;  %v1266_v25 = vmul.f32 %v3708_v0, %v3559_v22 }
 0x1bd   : > { %999 = vst [vmem:[#allocation4 + $0xf1] sm:$0x1] %v3330_v43  ;;  %930 = vst [vmem:[#allocation4 + $0xe0] sm:$0xff] %v858_v34  ;;  %v3781_v7 = vmin.f32 %v787_v62, 6.0  ;;  %v2907_v8 = vpop.f32.mrb[32].mxu0  ;;  %v1198_v48 = vadd.f32 %v1166_v31, %v1066_v23  ;;  %v1267_v58 = vmul.f32 %v3710_v1, %v3559_v22  ;;  %v1367_v0 = vmul.f32 %v3759_v32, %v3577_v53 }
 0x1be   : > { %981 = vst [vmem:[#allocation4 + $0xe0] sm:$0x1] %v3330_v43  ;;  %v608_v16 = vadd.f32 %v2907_v8, %v3536_v54  ;;  %v599_v18 = vpop.f32.mrb[33].mxu0  ;;  %v1898_v42 = vadd.f32 %v1866_v12, %v1798_v19  ;;  %v1899_v24 = vadd.f32 %v1867_v47, %v1799_v30  ;;  %v1199_v55 = vadd.f32 %v1167_v38, %v1067_v27 }
 0x1bf   : > { %931 = vst [vmem:[#allocation4 + $0xe8] sm:$0xff] %v3781_v7  ;;  %v600_v28 = vadd.f32 %v3536_v54, %v599_v18  ;;  %v2908_v29 = vpop.f32.mrb[34].mxu0  ;;  %v1298_v63 = vadd.f32 %v1266_v25, %v1198_v48  ;;  %v1368_v8 = vmul.f32 %v3577_v53, %v3683_v15  ;;  %v1567_v38 = vmul.f32 %v3770_v57, %v3584_v60  ;;  %v3831_v48 = vld [vmem:[#allocation4 + $0xa2] sm:$0xff] }
 0x1c0   : > { %v792_v33 = vmax.f32 %v608_v16, 0.0  ;;  %v602_v44 = vpop.f32.mrb[35].mxu0  ;;  %v1937_v52 = vadd.f32 %v3676_v3, %v1898_v42  ;;  %v1938_v51 = vadd.f32 %v3676_v3, %v1899_v24  ;;  %v1299_v37 = vadd.f32 %v1267_v58, %v1199_v55  ;;  %v3821_v29 = vld [vmem:[#allocation4 + $0xa0] sm:$0xff] }
 0x1c1   : > { %v790_v45 = vmax.f32 %v600_v28, 0.0  ;;  %v603_v46 = vadd.f32 %v3536_v54, %v602_v44  ;;  %v1399_v47 = vadd.f32 %v1367_v0, %v1298_v63  ;;  %v1467_v16 = vmul.f32 %v3764_v49, %v3581_v59 }
 0x1c2   : > { %v864_v26 = vmin.f32 %v792_v33, 6.0  ;;  %v1969_v62 = vmax.f32 %v1937_v52, 0.0  ;;  %v1970_v36 = vmax.f32 %v1938_v51, 0.0  ;;  %v1400_v27 = vadd.f32 %v1368_v8, %v1299_v37  ;;  %v3825_v33 = vld [vmem:[#allocation4 + $0xa1] sm:$0xff] }
 0x1c3   : > { %v862_v56 = vmin.f32 %v790_v45, 6.0  ;;  %v791_v34 = vmax.f32 %v603_v46, 0.0  ;;  %v1468_v28 = vmul.f32 %v3766_v35, %v3581_v59  ;;  %v1499_v31 = vadd.f32 %v1467_v16, %v1399_v47  ;;  %v3829_v46 = vld [vmem:[#allocation4 + $0xa9] sm:$0xff] }
 0x1c4   : > { %936 = vst [vmem:[#allocation4 + $0x110] sm:$0xff] %v864_v26  ;;  %v2001_v1 = vmin.f32 %v1969_v62, 6.0  ;;  %v2002_v18 = vmin.f32 %v1970_v36, 6.0  ;;  %v1568_v24 = vmul.f32 %v3772_v61, %v3584_v60  ;;  %v1668_v55 = vmul.f32 %v3596_v10, %v3821_v29 }
 0x1c5   : > { %1000 = vst [vmem:[#allocation4 + $0x111] sm:$0x1] %v3330_v43  ;;  %934 = vst [vmem:[#allocation4 + $0x100] sm:$0xff] %v862_v56  ;;  %v3809_v4 = vmin.f32 %v791_v34, 6.0  ;;  %v2911_v5 = vpop.f32.mrb[36].mxu0  ;;  %v1500_v45 = vadd.f32 %v1468_v28, %v1400_v27  ;;  %v1599_v52 = vadd.f32 %v1567_v38, %v1499_v31  ;;  %v3835_v56 = vld [vmem:[#allocation4 + $0xaa] sm:$0xff]  ;;  %v1669_v58 = vmul.f32 %v3596_v10, %v3717_v14 }
 0x1c6   : > { %982 = vst [vmem:[#allocation4 + $0x100] sm:$0x1] %v3330_v43  ;;  %v624_v9 = vadd.f32 %v2911_v5, %v3536_v54  ;;  %v615_v12 = vpop.f32.mrb[37].mxu0  ;;  %v2031_v44 = vpack.c.bf16 %v2002_v18, %v2001_v1  ;;  %v1768_v62 = vmul.f32 %v3599_v11, %v3825_v33  ;;  %v1769_v0 = vmul.f32 %v3599_v11, %v3829_v46 }
 0x1c7   : > { %935 = vst [vmem:[#allocation4 + $0x108] sm:$0xff] %v3809_v4  ;;  %v616_v19 = vadd.f32 %v3536_v54, %v615_v12  ;;  %v2912_v23 = vpop.f32.mrb[38].mxu0  ;;  %v1600_v34 = vadd.f32 %v1568_v24, %v1500_v45  ;;  %v1700_v63 = vadd.f32 %v1668_v55, %v1599_v52  ;;  %v1868_v36 = vmul.f32 %v3635_v17, %v3831_v48  ;;  %v3851_v12 = vld [vmem:[#allocation4 + $0x18] sm:$0xff] }
 0x1c8   : > { %v796_v30 = vmax.f32 %v624_v9, 0.0  ;;  %v618_v42 = vpop.f32.mrb[39].mxu0  ;;  %2965 = vmatprep.mubr.bf16.mxu1 %v2031_v44  ;;  %v1869_v37 = vmul.f32 %v3635_v17, %v3835_v56  ;;  %v1068_v9 = vmul.f32 %v3759_v32, %v3553_v20  ;;  %v1169_v32 = vmul.f32 %v3766_v35, %v3556_v21 }
 0x1c9   : > { %v794_v25 = vmax.f32 %v616_v19, 0.0  ;;  %v1701_v5 = vadd.f32 %v1669_v58, %v1600_v34  ;;  %v619_v8 = vadd.f32 %v3536_v54, %v618_v42  ;;  %v1800_v47 = vadd.f32 %v1768_v62, %v1700_v63  ;;  %v3875_v63 = vld [vmem:[#allocation4 + $0xc0] sm:$0xff] }
 0x1ca   : > { %v868_v26 = vmin.f32 %v796_v30, 6.0  ;;  %v1168_v19 = vmul.f32 %v3764_v49, %v3556_v21  ;;  %v1268_v52 = vmul.f32 %v3770_v57, %v3559_v22  ;;  %v1269_v55 = vmul.f32 %v3772_v61, %v3559_v22 }
 0x1cb   : > { %v866_v51 = vmin.f32 %v794_v25, 6.0  ;;  %v1801_v23 = vadd.f32 %v1769_v0, %v1701_v5  ;;  %v795_v27 = vmax.f32 %v619_v8, 0.0  ;;  %v1900_v31 = vadd.f32 %v1868_v36, %v1800_v47  ;;  %v3882_v5 = vld [vmem:[#allocation4 + $0xc1] sm:$0xff] }
 0x1cc   : > { %940 = vst [vmem:[#allocation4 + $0x130] sm:$0xff] %v868_v26  ;;  %v1200_v42 = vadd.f32 %v1168_v19, %v1068_v9  ;;  %v1370_v62 = vmul.f32 %v3577_v53, %v3717_v14  ;;  %v1469_v36 = vmul.f32 %v3825_v33, %v3581_v59  ;;  %v1470_v61 = vmul.f32 %v3829_v46, %v3581_v59  ;;  %v3886_v8 = vld [vmem:[#allocation4 + $0xc2] sm:$0xff] }
 0x1cd   : > { %1001 = vst [vmem:[#allocation4 + $0x131] sm:$0x1] %v3330_v43  ;;  %938 = vst [vmem:[#allocation4 + $0x120] sm:$0xff] %v866_v51  ;;  %v2915_v1 = vpop.f32.mrb[40].mxu0  ;;  %v1069_v43 = vmul.f32 %v3553_v20, %v3683_v15  ;;  %v1901_v25 = vadd.f32 %v1869_v37, %v1801_v23  ;;  %v3862_v45 = vmin.f32 %v795_v27, 6.0  ;;  %v1939_v26 = vadd.f32 %v3676_v3, %v1900_v31  ;;  %v3884_v37 = vld [vmem:[#allocation4 + $0xc9] sm:$0xff] }
 0x1ce   : > { %983 = vst [vmem:[#allocation4 + $0x120] sm:$0x1] %v3851_v12  ;;  %v640_v16 = vadd.f32 %v2915_v1, %v3536_v54  ;;  %v631_v18 = vpop.f32.mrb[41].mxu0  ;;  %v1369_v51 = vmul.f32 %v3821_v29, %v3577_v53  ;;  %v1300_v58 = vadd.f32 %v1268_v52, %v1200_v42  ;;  %v1569_v47 = vmul.f32 %v3831_v48, %v3584_v60  ;;  %v3912_v52 = vld [vmem:[%s4620_s2] ss:$0 sm:$0xff] }
 0x1cf   : > { %v632_v28 = vadd.f32 %v3536_v54, %v631_v18  ;;  %v2916_v30 = vpop.f32.mrb[42].mxu0  ;;  %v1201_v15 = vadd.f32 %v1169_v32, %v1069_v43  ;;  %v1940_v54 = vadd.f32 %v3676_v3, %v1901_v25  ;;  %939 = vst [vmem:[#allocation4 + $0x128] sm:$0xff] %v3862_v45  ;;  %v1971_v34 = vmax.f32 %v1939_v26, 0.0  ;;  %v3893_v18 = vld [vmem:[#allocation4 + $0xca] sm:$0xff] }
 0x1d0   : > { %v800_v38 = vmax.f32 %v640_v16, 0.0  ;;  %v634_v44 = vpop.f32.mrb[43].mxu0  ;;  %v1401_v9 = vadd.f32 %v1369_v51, %v1300_v58  ;;  %v1570_v16 = vmul.f32 %v3835_v56, %v3584_v60  ;;  %v1670_v27 = vmul.f32 %v3596_v10, %v3875_v63  ;;  %v1035_v25 = vld [vmem:[#allocation4 + $0xa8] sm:$0xff] }
 0x1d1   : > { %v798_v24 = vmax.f32 %v632_v28, 0.0  ;;  %v1972_v57 = vmax.f32 %v1940_v54, 0.0  ;;  %v1301_v0 = vadd.f32 %v1269_v55, %v1201_v15  ;;  %v2003_v1 = vmin.f32 %v1971_v34, 6.0 }
 0x1d2   : > { %v872_v49 = vmin.f32 %v800_v38, 6.0  ;;  %v1671_v28 = vmul.f32 %v3596_v10, %v3745_v6  ;;  %v1501_v32 = vadd.f32 %v1469_v36, %v1401_v9  ;;  %v1770_v31 = vmul.f32 %v3599_v11, %v3882_v5 }
 0x1d3   : > { %v870_v35 = vmin.f32 %v798_v24, 6.0  ;;  %v2004_v19 = vmin.f32 %v1972_v57, 6.0  ;;  %v1402_v23 = vadd.f32 %v1370_v62, %v1301_v0  ;;  %v1771_v38 = vmul.f32 %v3599_v11, %v3884_v37 }
 0x1d4   : > { %944 = vst [vmem:[#allocation4 + $0x150] sm:$0xff] %v872_v49  ;;  %v1870_v42 = vmul.f32 %v3635_v17, %v3886_v8  ;;  %v1871_v49 = vmul.f32 %v3635_v17, %v3893_v18  ;;  %v635_v54 = vadd.f32 %v3912_v52, %v634_v44  ;;  %v1070_v62 = vmul.f32 %v3821_v29, %v3553_v20 }
 0x1d5   : > { %1002 = vst [vmem:[#allocation4 + $0x151] sm:$0x1] %v3851_v12  ;;  %942 = vst [vmem:[#allocation4 + $0x140] sm:$0xff] %v870_v35  ;;  %v2919_v14 = vpop.f32.mrb[44].mxu0  ;;  %v2032_v15 = vpack.c.bf16 %v2004_v19, %v2003_v1  ;;  %v1502_v26 = vadd.f32 %v1470_v61, %v1402_v23  ;;  %v1601_v35 = vadd.f32 %v1569_v47, %v1501_v32 }
 0x1d6   : > { %984 = vst [vmem:[#allocation4 + $0x140] sm:$0x1] %v3851_v12  ;;  %v647_v43 = vpop.f32.mrb[45].mxu0  ;;  %v656_v55 = vadd.f32 %v3912_v52, %v2919_v14  ;;  %v799_v58 = vmax.f32 %v635_v54, 0.0  ;;  %v1071_v57 = vmul.f32 %v3553_v20, %v1035_v25  ;;  %v1170_v44 = vmul.f32 %v3825_v33, %v3556_v21  ;;  %v3945_v54 = vld [vmem:[#allocation4 + $0xe1] sm:$0xff] }
 0x1d7   : > { %v2920_v30 = vpop.f32.mrb[46].mxu0  ;;  %v648_v51 = vadd.f32 %v3912_v52, %v647_v43  ;;  %2966 = vmatmul.mubr.bf16.gmra.mrb[24].mxu1 %v2032_v15  ;;  %v1602_v34 = vadd.f32 %v1570_v16, %v1502_v26  ;;  %v1702_v0 = vadd.f32 %v1670_v27, %v1601_v35  ;;  %v1171_v14 = vmul.f32 %v3829_v46, %v3556_v21  ;;  %v3947_v35 = vld [vmem:[#allocation4 + $0xe9] sm:$0xff] }
 0x1d8   : > { %v3905_v24 = vpop.f32.mrb[47].mxu0  ;;  %v804_v36 = vmax.f32 %v656_v55, 0.0  ;;  %v3920_v9 = vmin.f32 %v799_v58, 6.0  ;;  %v1202_v27 = vadd.f32 %v1170_v44, %v1070_v62  ;;  %v1271_v33 = vmul.f32 %v3835_v56, %v3559_v22  ;;  %v3954_v58 = vld [vmem:[#allocation4 + $0xe2] sm:$0xff]  ;;  %v3956_v62 = vld [vmem:[#allocation4 + $0xea] sm:$0xff] }
 0x1d9   : > { %v802_v61 = vmax.f32 %v648_v51, 0.0  ;;  %v1703_v1 = vadd.f32 %v1671_v28, %v1602_v34  ;;  %v1802_v16 = vadd.f32 %v1770_v31, %v1702_v0  ;;  %v1203_v30 = vadd.f32 %v1171_v14, %v1071_v57 }
 0x1da   : > { %4649 = vst [vmem:[#allocation24_spill] sm:$0xff] %v3920_v9  ;;  %v876_v43 = vmin.f32 %v804_v36, 6.0  ;;  %943 = vst [vmem:[#allocation4 + $0x148] sm:$0xff] %v3920_v9  ;;  %v1270_v28 = vmul.f32 %v3831_v48, %v3559_v22  ;;  %v1371_v46 = vmul.f32 %v3875_v63, %v3577_v53  ;;  %v1372_v31 = vmul.f32 %v3577_v53, %v3745_v6 }
 0x1db   : > { %v874_v19 = vmin.f32 %v802_v61, 6.0  ;;  %v1803_v29 = vadd.f32 %v1771_v38, %v1703_v1  ;;  %v1902_v25 = vadd.f32 %v1870_v42, %v1802_v16  ;;  %v3935_v38 = vld [vmem:[#allocation4 + $0xe0] sm:$0xff]  ;;  %v1471_v42 = vmul.f32 %v3882_v5, %v3581_v59 }
 0x1dc   : > { %948 = vst [vmem:[#allocation4 + $0x170] sm:$0xff] %v876_v43  ;;  %v1302_v48 = vadd.f32 %v1270_v28, %v1202_v27  ;;  %v1472_v56 = vmul.f32 %v3884_v37, %v3581_v59  ;;  %v1303_v51 = vadd.f32 %v1271_v33, %v1203_v30  ;;  %v1572_v34 = vmul.f32 %v3893_v18, %v3584_v60 }
 0x1dd   : > { %v2923_v47 = vpop.f32.mrb[48].mxu0  ;;  %946 = vst [vmem:[#allocation4 + $0x160] sm:$0xff] %v874_v19  ;;  %v1903_v26 = vadd.f32 %v1871_v49, %v1803_v29  ;;  %1003 = vst [vmem:[#allocation4 + $0x171] sm:$0x1] %v3851_v12  ;;  %v1941_v55 = vadd.f32 %v3676_v3, %v1902_v25  ;;  %v1571_v49 = vmul.f32 %v3886_v8, %v3584_v60 }
 0x1de   : > { %v663_v23 = vpop.f32.mrb[49].mxu0  ;;  %985 = vst [vmem:[#allocation4 + $0x160] sm:$0x1] %v3851_v12  ;;  %v1403_v0 = vadd.f32 %v1371_v46, %v1302_v48  ;;  %v1672_v36 = vmul.f32 %v3596_v10, %v3935_v38  ;;  %v1673_v61 = vmul.f32 %v3596_v10, %v3781_v7  ;;  %v1404_v44 = vadd.f32 %v1372_v31, %v1303_v51 }
 0x1df   : > { %v2924_v32 = vpop.f32.mrb[50].mxu0  ;;  %v1942_v57 = vadd.f32 %v3676_v3, %v1903_v26  ;;  %v1973_v1 = vmax.f32 %v1941_v55, 0.0  ;;  %v1772_v14 = vmul.f32 %v3599_v11, %v3945_v54  ;;  %v1773_v16 = vmul.f32 %v3599_v11, %v3947_v35 }
 0x1e0   : > { %v3937_v15 = vpop.f32.mrb[51].mxu0  ;;  %v1503_v19 = vadd.f32 %v1471_v42, %v1403_v0  ;;  %v1872_v29 = vmul.f32 %v3635_v17, %v3954_v58  ;;  %v1873_v27 = vmul.f32 %v3635_v17, %v3956_v62  ;;  %v1504_v28 = vadd.f32 %v1472_v56, %v1404_v44 }
 0x1e1   : > { %v1974_v43 = vmax.f32 %v1942_v57, 0.0  ;;  %v2005_v30 = vmin.f32 %v1973_v1, 6.0  ;;  %v651_v32 = vadd.f32 %v3912_v52, %v3905_v24  ;;  %v819_v46 = vmax.f32 %v3610_v39, 0.0 }
 0x1e2   : > { %v1603_v33 = vadd.f32 %v1571_v49, %v1503_v19  ;;  %v672_v31 = vadd.f32 %v3912_v52, %v2923_v47  ;;  %v1604_v26 = vadd.f32 %v1572_v34, %v1504_v28  ;;  %v664_v42 = vadd.f32 %v3912_v52, %v663_v23 }
 0x1e3   : > { %v2006_v25 = vmin.f32 %v1974_v43, 6.0  ;;  %v803_v48 = vmax.f32 %v651_v32, 0.0  ;;  %v891_v57 = vmin.f32 %v819_v46, 6.0  ;;  %v736_v39 = vadd.f32 %v3912_v52, %v3612_v40  ;;  %v4009_v46 = vld [vmem:[#allocation4 + $0x109] sm:$0xff] }
 0x1e4   : > { %v1704_v51 = vadd.f32 %v1672_v36, %v1603_v33  ;;  %v808_v0 = vmax.f32 %v672_v31, 0.0  ;;  %v1705_v9 = vadd.f32 %v1673_v61, %v1604_v26  ;;  %v806_v56 = vmax.f32 %v664_v42, 0.0  ;;  %v4007_v33 = vld [vmem:[#allocation4 + $0x101] sm:$0xff] }
 0x1e5   : > { %v2033_v55 = vpack.c.bf16 %v2006_v25, %v2005_v30  ;;  %v3976_v1 = vmin.f32 %v803_v48, 6.0  ;;  %963 = vst [vmem:[#allocation4 + $0x1e8] sm:$0xff] %v891_v57  ;;  %v1072_v47 = vmul.f32 %v3875_v63, %v3553_v20  ;;  %v1073_v36 = vmul.f32 %v3553_v20, %v3745_v6  ;;  %v4011_v31 = vld [vmem:[#allocation4 + $0x102] sm:$0xff] }
 0x1e6   : > { %v1804_v24 = vadd.f32 %v1772_v14, %v1704_v51  ;;  %v880_v49 = vmin.f32 %v808_v0, 6.0  ;;  %v1805_v34 = vadd.f32 %v1773_v16, %v1705_v9  ;;  %v878_v23 = vmin.f32 %v806_v56, 6.0 }
 0x1e7   : > { %2969 = vmatprep.mubr.bf16.mxu1 %v2033_v55  ;;  %947 = vst [vmem:[#allocation4 + $0x168] sm:$0xff] %v3976_v1  ;;  %v824_v44 = vmax.f32 %v736_v39, 0.0  ;;  %v1172_v14 = vmul.f32 %v3882_v5, %v3556_v21  ;;  %v1173_v43 = vmul.f32 %v3884_v37, %v3556_v21  ;;  %v1272_v63 = vmul.f32 %v3886_v8, %v3559_v22  ;;  %v4020_v55 = vld [vmem:[#allocation4 + $0x10a] sm:$0xff] }
 0x1e8   : > { %v1904_v61 = vadd.f32 %v1872_v29, %v1804_v24  ;;  %952 = vst [vmem:[#allocation4 + $0x190] sm:$0xff] %v880_v49  ;;  %v1905_v40 = vadd.f32 %v1873_v27, %v1805_v34  ;;  %950 = vst [vmem:[#allocation4 + $0x180] sm:$0xff] %v878_v23  ;;  %v1273_v9 = vmul.f32 %v3893_v18, %v3559_v22  ;;  %v3996_v29 = vld [vmem:[#allocation4 + $0x100] sm:$0xff] }
 0x1e9   : > { %1004 = vst [vmem:[#allocation4 + $0x191] sm:$0x1] %v3851_v12  ;;  %986 = vst [vmem:[#allocation4 + $0x180] sm:$0x1] %v3851_v12  ;;  %v896_v16 = vmin.f32 %v824_v44, 6.0  ;;  %v1204_v19 = vadd.f32 %v1172_v14, %v1072_v47  ;;  %v1205_v5 = vadd.f32 %v1173_v43, %v1073_v36  ;;  %v1373_v27 = vmul.f32 %v3935_v38, %v3577_v53 }
 0x1ea   : > { %v1943_v6 = vadd.f32 %v3676_v3, %v1904_v61  ;;  %v1944_v37 = vadd.f32 %v3676_v3, %v1905_v40  ;;  %v1374_v8 = vmul.f32 %v3577_v53, %v3781_v7  ;;  %v1473_v18 = vmul.f32 %v3945_v54, %v3581_v59 }
 0x1eb   : > { %968 = vst [vmem:[#allocation4 + $0x210] sm:$0xff] %v896_v16  ;;  %v1304_v28 = vadd.f32 %v1272_v63, %v1204_v19  ;;  %v1305_v32 = vadd.f32 %v1273_v9, %v1205_v5  ;;  %v1474_v25 = vmul.f32 %v3947_v35, %v3581_v59  ;;  %v1573_v7 = vmul.f32 %v3954_v58, %v3584_v60 }
 0x1ec   : > { %v1975_v30 = vmax.f32 %v1943_v6, 0.0  ;;  %v1976_v26 = vmax.f32 %v1944_v37, 0.0  ;;  %1008 = vst [vmem:[#allocation4 + $0x211] sm:$0x1] %v3851_v12  ;;  %v1574_v48 = vmul.f32 %v3956_v62, %v3584_v60  ;;  %v1674_v42 = vmul.f32 %v3596_v10, %v3996_v29 }
 0x1ed   : > { %v1405_v57 = vadd.f32 %v1373_v27, %v1304_v28  ;;  %v1406_v0 = vadd.f32 %v1374_v8, %v1305_v32  ;;  %v1675_v56 = vmul.f32 %v3596_v10, %v3809_v4  ;;  %v1774_v49 = vmul.f32 %v3599_v11, %v4007_v33  ;;  %v1039_v27 = vld [vmem:[#allocation4 + $0xe8] sm:$0xff] }
 0x1ee   : > { %v2007_v51 = vmin.f32 %v1975_v30, 6.0  ;;  %v2008_v24 = vmin.f32 %v1976_v26, 6.0  ;;  %v1775_v39 = vmul.f32 %v3599_v11, %v4009_v46  ;;  %v1874_v47 = vmul.f32 %v3635_v17, %v4011_v31 }
 0x1ef   : > { %v1505_v34 = vadd.f32 %v1473_v18, %v1405_v57  ;;  %v1506_v23 = vadd.f32 %v1474_v25, %v1406_v0  ;;  %v1875_v36 = vmul.f32 %v3635_v17, %v4020_v55  ;;  %v667_v61 = vadd.f32 %v3912_v52, %v3937_v15  ;;  %v4065_v0 = vld [vmem:[#allocation4 + $0x120] sm:$0xff] }
 0x1f0   : > { %v2034_v44 = vpack.c.bf16 %v2008_v24, %v2007_v51  ;;  %v728_v14 = vadd.f32 %v3912_v52, %v3619_v50  ;;  %v731_v43 = vadd.f32 %v3912_v52, %v3627_v2  ;;  %v752_v6 = vadd.f32 %v3912_v52, %v3644_v13 }
 0x1f1   : > { %v1605_v40 = vadd.f32 %v1573_v7, %v1505_v34  ;;  %v1606_v63 = vadd.f32 %v1574_v48, %v1506_v23  ;;  %v807_v9 = vmax.f32 %v667_v61, 0.0  ;;  %v744_v17 = vadd.f32 %v3912_v52, %v3658_v41  ;;  %v4085_v61 = vld [vmem:[#allocation4 + $0x12a] sm:$0xff] }
 0x1f2   : > { %2970 = vmatmul.mubr.bf16.gmra.mrb[28].mxu1 %v2034_v44  ;;  %v822_v16 = vmax.f32 %v728_v14, 0.0  ;;  %v823_v19 = vmax.f32 %v731_v43, 0.0  ;;  %v828_v50 = vmax.f32 %v752_v6, 0.0  ;;  %v1074_v32 = vmul.f32 %v3935_v38, %v3553_v20 }
 0x1f3   : > { %v1706_v15 = vadd.f32 %v1674_v42, %v1605_v40  ;;  %v1707_v5 = vadd.f32 %v1675_v56, %v1606_v63  ;;  %v4042_v37 = vmin.f32 %v807_v9, 6.0  ;;  %v826_v18 = vmax.f32 %v744_v17, 0.0  ;;  %v4095_v17 = vld [vmem:[#allocation8 + $0x8] ss:$0 sm:$0xff] }
 0x1f4   : > { %v894_v8 = vmin.f32 %v822_v16, 6.0  ;;  %v4044_v2 = vmin.f32 %v823_v19, 6.0  ;;  %v900_v13 = vmin.f32 %v828_v50, 6.0  ;;  %v1075_v52 = vmul.f32 %v3553_v20, %v1039_v27 }
 0x1f5   : > { %v1806_v30 = vadd.f32 %v1774_v49, %v1706_v15  ;;  %v1807_v28 = vadd.f32 %v1775_v39, %v1707_v5  ;;  %951 = vst [vmem:[#allocation4 + $0x188] sm:$0xff] %v4042_v37  ;;  %v898_v41 = vmin.f32 %v826_v18, 6.0  ;;  %v1174_v25 = vmul.f32 %v3945_v54, %v3556_v21  ;;  %v4074_v49 = vld [vmem:[#allocation4 + $0x121] sm:$0xff]  ;;  %v4076_v39 = vld [vmem:[#allocation4 + $0x129] sm:$0xff] }
 0x1f6   : > { %966 = vst [vmem:[#allocation4 + $0x200] sm:$0xff] %v894_v8  ;;  %967 = vst [vmem:[#allocation4 + $0x208] sm:$0xff] %v4044_v2  ;;  %v1175_v26 = vmul.f32 %v3947_v35, %v3556_v21  ;;  %v1274_v38 = vmul.f32 %v3954_v58, %v3559_v22  ;;  %v1275_v42 = vmul.f32 %v3956_v62, %v3559_v22 }
 0x1f7   : > { %v1906_v7 = vadd.f32 %v1874_v47, %v1806_v30  ;;  %v1907_v48 = vadd.f32 %v1875_v36, %v1807_v28  ;;  %990 = vst [vmem:[#allocation4 + $0x200] sm:$0x1] %v3851_v12  ;;  %972 = vst [vmem:[#allocation4 + $0x230] sm:$0xff] %v900_v13  ;;  %v1206_v51 = vadd.f32 %v1174_v25, %v1074_v32  ;;  %v4083_v36 = vld [vmem:[#allocation4 + $0x122] sm:$0xff] }
 0x1f8   : > { %1009 = vst [vmem:[#allocation4 + $0x231] sm:$0x1] %v3851_v12  ;;  %970 = vst [vmem:[#allocation4 + $0x220] sm:$0xff] %v898_v41  ;;  %v1207_v57 = vadd.f32 %v1175_v26, %v1075_v52  ;;  %v1375_v54 = vmul.f32 %v3996_v29, %v3577_v53  ;;  %v1376_v35 = vmul.f32 %v3577_v53, %v3809_v4  ;;  %v4115_v26 = vld [vmem:[#allocation4 + $0x140] sm:$0xff] }
 0x1f9   : > { %v1945_v56 = vadd.f32 %v3676_v3, %v1906_v7  ;;  %v1946_v58 = vadd.f32 %v3676_v3, %v1907_v48  ;;  %1020 = vst [vmem:[#allocation4 + $0x230] sm:$0xff] %v3851_v12  ;;  %v1475_v62 = vmul.f32 %v4007_v33, %v3581_v59  ;;  %v1476_v24 = vmul.f32 %v4009_v46, %v3581_v59 }
 0x1fa   : > { %1018 = vst [vmem:[#allocation4 + $0x220] sm:$0xff] %v3851_v12  ;;  %v1306_v47 = vadd.f32 %v1274_v38, %v1206_v51  ;;  %v1307_v34 = vadd.f32 %v1275_v42, %v1207_v57  ;;  %v1575_v23 = vmul.f32 %v4011_v31, %v3584_v60  ;;  %v1576_v3 = vmul.f32 %v4020_v55, %v3584_v60  ;;  %v4127_v51 = vld [vmem:[#allocation4 + $0x149] sm:$0xff] }
 0x1fb   : > { %v1977_v44 = vmax.f32 %v1945_v56, 0.0  ;;  %v1978_v14 = vmax.f32 %v1946_v58, 0.0  ;;  %v1676_v43 = vmul.f32 %v3596_v10, %v4065_v0  ;;  %v1677_v12 = vmul.f32 %v3596_v10, %v3862_v45  ;;  %v4129_v57 = vld [vmem:[#allocation4 + $0x142] sm:$0xff] }
 0x1fc   : > { %v1407_v40 = vadd.f32 %v1375_v54, %v1306_v47  ;;  %v1408_v63 = vadd.f32 %v1376_v35, %v1307_v34  ;;  %v1776_v9 = vmul.f32 %v3599_v11, %v4074_v49  ;;  %v1777_v6 = vmul.f32 %v3599_v11, %v4076_v39  ;;  %v4650_v34 = vld [vmem:[#allocation24_spill] sm:$0xff] }
 0x1fd   : > { %v2009_v16 = vmin.f32 %v1977_v44, 6.0  ;;  %v2010_v19 = vmin.f32 %v1978_v14, 6.0  ;;  %v1876_v15 = vmul.f32 %v4095_v17, %v4083_v36  ;;  %v1877_v5 = vmul.f32 %v4095_v17, %v4085_v61 }
 0x1fe   : > { %v1507_v50 = vadd.f32 %v1475_v62, %v1407_v40  ;;  %v1508_v27 = vadd.f32 %v1476_v24, %v1408_v63  ;;  %v1076_v8 = vmul.f32 %v3996_v29, %v3553_v20  ;;  %v1077_v18 = vmul.f32 %v3553_v20, %v3809_v4  ;;  %v4135_v62 = vld [vmem:[#allocation4 + $0x14a] sm:$0xff] }
 0x1ff   : > { %v2035_v30 = vpack.c.bf16 %v2010_v19, %v2009_v16  ;;  %v1176_v28 = vmul.f32 %v4007_v33, %v3556_v21  ;;  %v1177_v13 = vmul.f32 %v4009_v46, %v3556_v21  ;;  %v1276_v32 = vmul.f32 %v4011_v31, %v3559_v22  ;;  %v4121_v31 = vld [vmem:[#allocation4 + $0x141] sm:$0xff] }
 0x200   : > { %v1607_v41 = vadd.f32 %v1575_v23, %v1507_v50  ;;  %v1608_v52 = vadd.f32 %v1576_v3, %v1508_v27  ;;  %v1277_v25 = vmul.f32 %v4020_v55, %v3559_v22  ;;  %v1377_v29 = vmul.f32 %v4065_v0, %v3577_v53 }
 0x201   : > { %2973 = vmatprep.mubr.bf16.mxu1 %v2035_v30  ;;  %v1208_v4 = vadd.f32 %v1176_v28, %v1076_v8  ;;  %v1209_v7 = vadd.f32 %v1177_v13, %v1077_v18  ;;  %v1378_v33 = vmul.f32 %v3577_v53, %v3862_v45  ;;  %v1477_v46 = vmul.f32 %v4074_v49, %v3581_v59  ;;  %v4156_v8 = vld [vmem:[%s4622_s4] ss:$0 sm:$0xff] }
 0x202   : > { %v1708_v48 = vadd.f32 %v1676_v43, %v1607_v41  ;;  %v1709_v38 = vadd.f32 %v1677_v12, %v1608_v52  ;;  %v1478_v55 = vmul.f32 %v4076_v39, %v3581_v59  ;;  %v1577_v42 = vmul.f32 %v4083_v36, %v3584_v60 }
 0x203   : > { %v1308_v54 = vadd.f32 %v1276_v32, %v1208_v4  ;;  %v1309_v35 = vadd.f32 %v1277_v25, %v1209_v7  ;;  %v1578_v56 = vmul.f32 %v4085_v61, %v3584_v60  ;;  %v1678_v58 = vmul.f32 %v3596_v10, %v4115_v26 }
 0x204   : > { %v1808_v24 = vadd.f32 %v1776_v9, %v1708_v48  ;;  %v1809_v47 = vadd.f32 %v1777_v6, %v1709_v38  ;;  %v1679_v23 = vmul.f32 %v3596_v10, %v4650_v34  ;;  %v1778_v3 = vmul.f32 %v3599_v11, %v4121_v31  ;;  %v4172_v48 = vld [vmem:[#allocation4 + $0x160] sm:$0xff] }
 0x205   : > { %v1409_v44 = vadd.f32 %v1377_v29, %v1308_v54  ;;  %v1410_v14 = vadd.f32 %v1378_v33, %v1309_v35  ;;  %v1779_v43 = vmul.f32 %v3599_v11, %v4127_v51  ;;  %v1878_v12 = vmul.f32 %v4095_v17, %v4129_v57  ;;  %v4176_v54 = vld [vmem:[#allocation4 + $0x161] sm:$0xff]  ;;  %v4178_v35 = vld [vmem:[#allocation4 + $0x169] sm:$0xff] }
 0x206   : > { %v1908_v40 = vadd.f32 %v1876_v15, %v1808_v24  ;;  %v1909_v63 = vadd.f32 %v1877_v5, %v1809_v47  ;;  %v1879_v9 = vmul.f32 %v4095_v17, %v4135_v62  ;;  %v1078_v6 = vmul.f32 %v4065_v0, %v3553_v20 }
 0x207   : > { %v1509_v16 = vadd.f32 %v1477_v46, %v1409_v44  ;;  %v1510_v19 = vadd.f32 %v1478_v55, %v1410_v14  ;;  %v1079_v50 = vmul.f32 %v3553_v20, %v3862_v45  ;;  %v1178_v27 = vmul.f32 %v4074_v49, %v3556_v21 }
 0x208   : > { %v1947_v15 = vadd.f32 %v4156_v8, %v1908_v40  ;;  %v1948_v5 = vadd.f32 %v4156_v8, %v1909_v63  ;;  %v1179_v0 = vmul.f32 %v4076_v39, %v3556_v21  ;;  %v1278_v18 = vmul.f32 %v4083_v36, %v3559_v22  ;;  %v4188_v40 = vld [vmem:[#allocation4 + $0x16a] sm:$0xff] }
 0x209   : > { %v1609_v30 = vadd.f32 %v1577_v42, %v1509_v16  ;;  %v1610_v45 = vadd.f32 %v1578_v56, %v1510_v19  ;;  %v1210_v28 = vadd.f32 %v1178_v27, %v1078_v6  ;;  %v1279_v49 = vmul.f32 %v4085_v61, %v3559_v22 }
 0x20a   : > { %v1979_v13 = vmax.f32 %v1947_v15, 0.0  ;;  %v1980_v32 = vmax.f32 %v1948_v5, 0.0  ;;  %v1211_v41 = vadd.f32 %v1179_v0, %v1079_v50  ;;  %v1379_v52 = vmul.f32 %v4115_v26, %v3577_v53 }
 0x20b   : > { %v1710_v25 = vadd.f32 %v1678_v58, %v1609_v30  ;;  %v1711_v29 = vadd.f32 %v1679_v23, %v1610_v45  ;;  %v1310_v4 = vadd.f32 %v1278_v18, %v1210_v28  ;;  %v1380_v39 = vmul.f32 %v3577_v53, %v4650_v34  ;;  %v4184_v23 = vld [vmem:[#allocation4 + $0x162] sm:$0xff] }
 0x20c   : > { %v2011_v7 = vmin.f32 %v1979_v13, 6.0  ;;  %v2012_v36 = vmin.f32 %v1980_v32, 6.0  ;;  %v1311_v33 = vadd.f32 %v1279_v49, %v1211_v41  ;;  %v1479_v46 = vmul.f32 %v4121_v31, %v3581_v59 }
 0x20d   : > { %v1810_v61 = vadd.f32 %v1778_v3, %v1710_v25  ;;  %v1811_v38 = vadd.f32 %v1779_v43, %v1711_v29  ;;  %v1411_v55 = vadd.f32 %v1379_v52, %v1310_v4  ;;  %v1480_v42 = vmul.f32 %v4127_v51, %v3581_v59 }
 0x20e   : > { %v2036_v56 = vpack.c.bf16 %v2012_v36, %v2011_v7  ;;  %v1412_v58 = vadd.f32 %v1380_v39, %v1311_v33  ;;  %v1579_v24 = vmul.f32 %v4129_v57, %v3584_v60  ;;  %v1580_v47 = vmul.f32 %v4135_v62, %v3584_v60  ;;  %v4218_v36 = vld [vmem:[#allocation4 + $0x180] sm:$0xff] }
 0x20f   : > { %v1910_v3 = vadd.f32 %v1878_v12, %v1810_v61  ;;  %v1911_v44 = vadd.f32 %v1879_v9, %v1811_v38  ;;  %v1511_v14 = vadd.f32 %v1479_v46, %v1411_v55  ;;  %v1680_v43 = vmul.f32 %v3596_v10, %v4172_v48  ;;  %v4222_v46 = vld [vmem:[#allocation4 + $0x181] sm:$0xff] }
 0x210   : > { %2974 = vmatmul.mubr.bf16.gmra.mrb[32].mxu1 %v2036_v56  ;;  %v1512_v63 = vadd.f32 %v1480_v42, %v1412_v58  ;;  %v1681_v6 = vmul.f32 %v3596_v10, %v3976_v1  ;;  %v1780_v16 = vmul.f32 %v3599_v11, %v4176_v54  ;;  %v1781_v19 = vmul.f32 %v3599_v11, %v4178_v35  ;;  %v4228_v56 = vld [vmem:[#allocation4 + $0x189] sm:$0xff] }
 0x211   : > { %v1949_v12 = vadd.f32 %v4156_v8, %v1910_v3  ;;  %v1950_v9 = vadd.f32 %v4156_v8, %v1911_v44  ;;  %v1611_v50 = vadd.f32 %v1579_v24, %v1511_v14  ;;  %v1880_v27 = vmul.f32 %v4095_v17, %v4184_v23  ;;  %v4230_v58 = vld [vmem:[#allocation4 + $0x182] sm:$0xff]  ;;  %v4237_v14 = vld [vmem:[#allocation4 + $0x18a] sm:$0xff] }
 0x212   : > { %v1612_v15 = vadd.f32 %v1580_v47, %v1512_v63  ;;  %v1881_v5 = vmul.f32 %v4095_v17, %v4188_v40  ;;  %v1080_v0 = vmul.f32 %v4115_v26, %v3553_v20  ;;  %v1081_v18 = vmul.f32 %v3553_v20, %v4650_v34 }
 0x213   : > { %v1981_v30 = vmax.f32 %v1949_v12, 0.0  ;;  %v1982_v45 = vmax.f32 %v1950_v9, 0.0  ;;  %v1712_v28 = vadd.f32 %v1680_v43, %v1611_v50  ;;  %v1180_v49 = vmul.f32 %v4121_v31, %v3556_v21 }
 0x214   : > { %v1713_v13 = vadd.f32 %v1681_v6, %v1612_v15  ;;  %v1181_v32 = vmul.f32 %v4127_v51, %v3556_v21  ;;  %v1280_v41 = vmul.f32 %v4129_v57, %v3559_v22  ;;  %v1281_v52 = vmul.f32 %v4135_v62, %v3559_v22 }
 0x215   : > { %v2013_v26 = vmin.f32 %v1981_v30, 6.0  ;;  %v2014_v25 = vmin.f32 %v1982_v45, 6.0  ;;  %v1812_v29 = vadd.f32 %v1780_v16, %v1712_v28  ;;  %v1212_v34 = vadd.f32 %v1180_v49, %v1080_v0 }
 0x216   : > { %v1813_v4 = vadd.f32 %v1781_v19, %v1713_v13  ;;  %v1213_v39 = vadd.f32 %v1181_v32, %v1081_v18  ;;  %v1381_v7 = vmul.f32 %v4172_v48, %v3577_v53  ;;  %v1382_v31 = vmul.f32 %v3577_v53, %v3976_v1 }
 0x217   : > { %v2037_v51 = vpack.c.bf16 %v2014_v25, %v2013_v26  ;;  %v1912_v33 = vadd.f32 %v1880_v27, %v1812_v29  ;;  %v1312_v57 = vadd.f32 %v1280_v41, %v1212_v34  ;;  %v1481_v62 = vmul.f32 %v4176_v54, %v3581_v59 }
 0x218   : > { %v1913_v61 = vadd.f32 %v1881_v5, %v1813_v4  ;;  %v1313_v38 = vadd.f32 %v1281_v52, %v1213_v39  ;;  %v1482_v55 = vmul.f32 %v4178_v35, %v3581_v59  ;;  %v1581_v42 = vmul.f32 %v4184_v23, %v3584_v60 }
 0x219   : > { %2977 = vmatprep.mubr.bf16.mxu1 %v2037_v51  ;;  %v1951_v24 = vadd.f32 %v4156_v8, %v1912_v33  ;;  %v1413_v47 = vadd.f32 %v1381_v7, %v1312_v57  ;;  %v1582_v3 = vmul.f32 %v4188_v40, %v3584_v60  ;;  %v1682_v44 = vmul.f32 %v3596_v10, %v4218_v36  ;;  %v4270_v7 = vld [vmem:[#allocation4 + $0x1a0] sm:$0xff]  ;;  %v4276_v57 = vld [vmem:[#allocation4 + $0x1a8] sm:$0xff] }
 0x21a   : > { %v1952_v43 = vadd.f32 %v4156_v8, %v1913_v61  ;;  %v1414_v63 = vadd.f32 %v1382_v31, %v1313_v38  ;;  %v1683_v6 = vmul.f32 %v3596_v10, %v4042_v37  ;;  %v1782_v16 = vmul.f32 %v3599_v11, %v4222_v46  ;;  %v4280_v61 = vld [vmem:[#allocation4 + $0x1aa] sm:$0xff] }
 0x21b   : > { %v1983_v19 = vmax.f32 %v1951_v24, 0.0  ;;  %v1513_v12 = vadd.f32 %v1481_v62, %v1413_v47  ;;  %v1783_v9 = vmul.f32 %v3599_v11, %v4228_v56  ;;  %v1882_v50 = vmul.f32 %v4095_v17, %v4230_v58  ;;  %v4278_v62 = vld [vmem:[#allocation4 + $0x1a2] sm:$0xff] }
 0x21c   : > { %v1984_v27 = vmax.f32 %v1952_v43, 0.0  ;;  %v1514_v15 = vadd.f32 %v1482_v55, %v1414_v63  ;;  %v1883_v5 = vmul.f32 %v4095_v17, %v4237_v14  ;;  %v1082_v0 = vmul.f32 %v4172_v48, %v3553_v20  ;;  %v4286_v47 = vld [vmem:[#allocation4 + $0x1a1] sm:$0xff] }
 0x21d   : > { %v2015_v18 = vmin.f32 %v1983_v19, 6.0  ;;  %v1613_v30 = vadd.f32 %v1581_v42, %v1513_v12  ;;  %v1083_v45 = vmul.f32 %v3553_v20, %v3976_v1  ;;  %v1182_v28 = vmul.f32 %v4176_v54, %v3556_v21 }
 0x21e   : > { %v2016_v49 = vmin.f32 %v1984_v27, 6.0  ;;  %v1614_v13 = vadd.f32 %v1582_v3, %v1514_v15  ;;  %v1183_v32 = vmul.f32 %v4178_v35, %v3556_v21  ;;  %v1282_v41 = vmul.f32 %v4184_v23, %v3559_v22  ;;  %v4288_v3 = vld [vmem:[#allocation4 + $0x1a9] sm:$0xff] }
 0x21f   : > { %v1714_v52 = vadd.f32 %v1682_v44, %v1613_v30  ;;  %v1214_v26 = vadd.f32 %v1182_v28, %v1082_v0  ;;  %v1283_v48 = vmul.f32 %v4188_v40, %v3559_v22  ;;  %v1383_v25 = vmul.f32 %v4218_v36, %v3577_v53 }
 0x220   : > { %v2038_v1 = vpack.c.bf16 %v2016_v49, %v2015_v18  ;;  %v1715_v29 = vadd.f32 %v1683_v6, %v1614_v13  ;;  %v1215_v34 = vadd.f32 %v1183_v32, %v1083_v45  ;;  %v1384_v54 = vmul.f32 %v3577_v53, %v4042_v37 }
 0x221   : > { %v1814_v4 = vadd.f32 %v1782_v16, %v1714_v52  ;;  %v1314_v39 = vadd.f32 %v1282_v41, %v1214_v26  ;;  %v1483_v35 = vmul.f32 %v4222_v46, %v3581_v59  ;;  %v1484_v23 = vmul.f32 %v4228_v56, %v3581_v59 }
 0x222   : > { %2978 = vmatmul.mubr.bf16.gmra.mrb[36].mxu1 %v2038_v1  ;;  %v1815_v40 = vadd.f32 %v1783_v9, %v1715_v29  ;;  %v1315_v31 = vadd.f32 %v1283_v48, %v1215_v34  ;;  %v1583_v51 = vmul.f32 %v4230_v58, %v3584_v60  ;;  %v1584_v33 = vmul.f32 %v4237_v14, %v3584_v60 }
 0x223   : > { %v1914_v38 = vadd.f32 %v1882_v50, %v1814_v4  ;;  %v1415_v55 = vadd.f32 %v1383_v25, %v1314_v39  ;;  %v1684_v42 = vmul.f32 %v3596_v10, %v4270_v7  ;;  %v1685_v24 = vmul.f32 %v3596_v10, %v4276_v57 }
 0x224   : > { %v1915_v44 = vadd.f32 %v1883_v5, %v1815_v40  ;;  %v1416_v43 = vadd.f32 %v1384_v54, %v1315_v31  ;;  %v1784_v63 = vmul.f32 %v3599_v11, %v4286_v47  ;;  %v1785_v6 = vmul.f32 %v3599_v11, %v4288_v3  ;;  %v4324_v31 = vld [vmem:[#allocation4 + $0x1c0] sm:$0xff] }
 0x225   : > { %v1953_v16 = vadd.f32 %v4156_v8, %v1914_v38  ;;  %v1515_v19 = vadd.f32 %v1483_v35, %v1415_v55  ;;  %v1884_v12 = vmul.f32 %v4095_v17, %v4278_v62  ;;  %v1885_v9 = vmul.f32 %v4095_v17, %v4280_v61 }
 0x226   : > { %v1954_v50 = vadd.f32 %v4156_v8, %v1915_v44  ;;  %v1516_v27 = vadd.f32 %v1484_v23, %v1416_v43  ;;  %v1084_v15 = vmul.f32 %v4218_v36, %v3553_v20  ;;  %v1085_v5 = vmul.f32 %v3553_v20, %v4042_v37 }
 0x227   : > { %v1985_v0 = vmax.f32 %v1953_v16, 0.0  ;;  %v1615_v18 = vadd.f32 %v1583_v51, %v1515_v19  ;;  %v1184_v30 = vmul.f32 %v4222_v46, %v3556_v21  ;;  %v1185_v45 = vmul.f32 %v4228_v56, %v3556_v21  ;;  %v4326_v51 = vld [vmem:[#allocation4 + $0x1c8] sm:$0xff] }
 0x228   : > { %v1986_v28 = vmax.f32 %v1954_v50, 0.0  ;;  %v1616_v49 = vadd.f32 %v1584_v33, %v1516_v27  ;;  %v1284_v13 = vmul.f32 %v4230_v58, %v3559_v22  ;;  %v1285_v32 = vmul.f32 %v4237_v14, %v3559_v22  ;;  %v4328_v33 = vld [vmem:[#allocation4 + $0x1c1] sm:$0xff] }
 0x229   : > { %v2017_v36 = vmin.f32 %v1985_v0, 6.0  ;;  %v1716_v41 = vadd.f32 %v1684_v42, %v1615_v18  ;;  %v1216_v52 = vadd.f32 %v1184_v30, %v1084_v15  ;;  %v1217_v37 = vadd.f32 %v1185_v45, %v1085_v5  ;;  %v4341_v19 = vld [vmem:[#allocation4 + $0x1c2] sm:$0xff] }
 0x22a   : > { %v2018_v26 = vmin.f32 %v1986_v28, 6.0  ;;  %v1717_v48 = vadd.f32 %v1685_v24, %v1616_v49  ;;  %v1385_v46 = vmul.f32 %v4270_v7, %v3577_v53  ;;  %v1386_v56 = vmul.f32 %v4276_v57, %v3577_v53  ;;  %v4334_v24 = vld [vmem:[#allocation4 + $0x1c9] sm:$0xff] }
 0x22b   : > { %v1816_v25 = vadd.f32 %v1784_v63, %v1716_v41  ;;  %v1316_v1 = vadd.f32 %v1284_v13, %v1216_v52  ;;  %v1317_v29 = vadd.f32 %v1285_v32, %v1217_v37  ;;  %v1485_v58 = vmul.f32 %v4286_v47, %v3581_v59 }
 0x22c   : > { %v2039_v34 = vpack.c.bf16 %v2018_v26, %v2017_v36  ;;  %v1817_v14 = vadd.f32 %v1785_v6, %v1717_v48  ;;  %v1486_v54 = vmul.f32 %v4288_v3, %v3581_v59  ;;  %v1585_v4 = vmul.f32 %v4278_v62, %v3584_v60 }
 0x22d   : > { %v1916_v39 = vadd.f32 %v1884_v12, %v1816_v25  ;;  %v1417_v35 = vadd.f32 %v1385_v46, %v1316_v1  ;;  %v1418_v23 = vadd.f32 %v1386_v56, %v1317_v29  ;;  %v1586_v40 = vmul.f32 %v4280_v61, %v3584_v60  ;;  %v4343_v12 = vld [vmem:[#allocation4 + $0x1ca] sm:$0xff]  ;;  %v4368_v46 = vld [vmem:[#allocation4 + $0x1e0] sm:$0xff] }
 0x22e   : > { %2981 = vmatprep.mubr.bf16.mxu1 %v2039_v34  ;;  %v1917_v38 = vadd.f32 %v1885_v9, %v1817_v14  ;;  %v1686_v55 = vmul.f32 %v3596_v10, %v4324_v31  ;;  %v1687_v42 = vmul.f32 %v3596_v10, %v4326_v51  ;;  %v1786_v44 = vmul.f32 %v3599_v11, %v4328_v33  ;;  %v4370_v56 = vld [vmem:[#allocation4 + $0x1e8] sm:$0xff] }
 0x22f   : > { %v1955_v43 = vadd.f32 %v4156_v8, %v1916_v39  ;;  %v1517_v63 = vadd.f32 %v1485_v58, %v1417_v35  ;;  %v1518_v6 = vadd.f32 %v1486_v54, %v1418_v23  ;;  %v1787_v16 = vmul.f32 %v3599_v11, %v4334_v24  ;;  %v4374_v58 = vld [vmem:[#allocation4 + $0x1e1] sm:$0xff]  ;;  %v4376_v34 = vld [vmem:[#allocation4 + $0x1e9] sm:$0xff] }
 0x230   : > { %v1956_v9 = vadd.f32 %v4156_v8, %v1917_v38  ;;  %v1886_v50 = vmul.f32 %v4095_v17, %v4341_v19  ;;  %v1887_v27 = vmul.f32 %v4095_v17, %v4343_v12  ;;  %v1086_v15 = vmul.f32 %v4270_v7, %v3553_v20  ;;  %v4382_v35 = vld [vmem:[#allocation4 + $0x1e2] sm:$0xff]  ;;  %v4384_v23 = vld [vmem:[#allocation4 + $0x1ea] sm:$0xff] }
 0x231   : > { %v1987_v5 = vmax.f32 %v1955_v43, 0.0  ;;  %v1617_v0 = vadd.f32 %v1585_v4, %v1517_v63  ;;  %v1618_v18 = vadd.f32 %v1586_v40, %v1518_v6  ;;  %v1087_v30 = vmul.f32 %v4276_v57, %v3553_v20 }
 0x232   : > { %v1988_v45 = vmax.f32 %v1956_v9, 0.0  ;;  %v1186_v28 = vmul.f32 %v4286_v47, %v3556_v21  ;;  %v1187_v49 = vmul.f32 %v4288_v3, %v3556_v21  ;;  %v1286_v13 = vmul.f32 %v4278_v62, %v3559_v22 }
 0x233   : > { %v2019_v32 = vmin.f32 %v1987_v5, 6.0  ;;  %v1718_v36 = vadd.f32 %v1686_v55, %v1617_v0  ;;  %v1719_v41 = vadd.f32 %v1687_v42, %v1618_v18  ;;  %v1287_v7 = vmul.f32 %v4280_v61, %v3559_v22 }
 0x234   : > { %v2020_v52 = vmin.f32 %v1988_v45, 6.0  ;;  %v1218_v37 = vadd.f32 %v1186_v28, %v1086_v15  ;;  %v1219_v26 = vadd.f32 %v1187_v49, %v1087_v30  ;;  %v1387_v57 = vmul.f32 %v4324_v31, %v3577_v53 }
 0x235   : > { %v1818_v48 = vadd.f32 %v1786_v44, %v1718_v36  ;;  %v1819_v47 = vadd.f32 %v1787_v16, %v1719_v41  ;;  %v1388_v3 = vmul.f32 %v4326_v51, %v3577_v53  ;;  %v1487_v62 = vmul.f32 %v4328_v33, %v3581_v59 }
 0x236   : > { %v2040_v25 = vpack.c.bf16 %v2020_v52, %v2019_v32  ;;  %v1318_v61 = vadd.f32 %v1286_v13, %v1218_v37  ;;  %v1319_v1 = vadd.f32 %v1287_v7, %v1219_v26  ;;  %v1488_v29 = vmul.f32 %v4334_v24, %v3581_v59  ;;  %v1654_v37 = vld [vmem:[#allocation4 + $0x200] sm:$0xff] }
 0x237   : > { %v1918_v14 = vadd.f32 %v1886_v50, %v1818_v48  ;;  %v1919_v54 = vadd.f32 %v1887_v27, %v1819_v47  ;;  %v1587_v4 = vmul.f32 %v4341_v19, %v3584_v60  ;;  %v1588_v39 = vmul.f32 %v4343_v12, %v3584_v60 }
 0x238   : > { %2982 = vmatmul.mubr.bf16.gmra.mrb[40].mxu1 %v2040_v25  ;;  %v1419_v40 = vadd.f32 %v1387_v57, %v1318_v61  ;;  %v1420_v38 = vadd.f32 %v1388_v3, %v1319_v1  ;;  %v1688_v55 = vmul.f32 %v3596_v10, %v4368_v46  ;;  %v1689_v42 = vmul.f32 %v3596_v10, %v4370_v56  ;;  %v1854_v25 = vld [vmem:[#allocation4 + $0x202] sm:$0xff] }
 0x239   : > { %v1957_v44 = vadd.f32 %v4156_v8, %v1918_v14  ;;  %v1958_v43 = vadd.f32 %v4156_v8, %v1919_v54  ;;  %v1788_v63 = vmul.f32 %v3599_v11, %v4374_v58  ;;  %v1789_v6 = vmul.f32 %v3599_v11, %v4376_v34 }
 0x23a   : > { %v1519_v16 = vadd.f32 %v1487_v62, %v1419_v40  ;;  %v1520_v9 = vadd.f32 %v1488_v29, %v1420_v38  ;;  %v1888_v50 = vmul.f32 %v4095_v17, %v4382_v35  ;;  %v1889_v27 = vmul.f32 %v4095_v17, %v4384_v23  ;;  %v1755_v62 = vld [vmem:[#allocation4 + $0x209] sm:$0xff] }
 0x23b   : > { %v1989_v15 = vmax.f32 %v1957_v44, 0.0  ;;  %v1990_v5 = vmax.f32 %v1958_v43, 0.0  ;;  %v1088_v0 = vmul.f32 %v4324_v31, %v3553_v20  ;;  %v1089_v18 = vmul.f32 %v4326_v51, %v3553_v20  ;;  %v1855_v38 = vld [vmem:[#allocation4 + $0x20a] sm:$0xff] }
 0x23c   : > { %v1619_v30 = vadd.f32 %v1587_v4, %v1519_v16  ;;  %v1620_v45 = vadd.f32 %v1588_v39, %v1520_v9  ;;  %v1188_v28 = vmul.f32 %v4328_v33, %v3556_v21  ;;  %v1189_v49 = vmul.f32 %v4334_v24, %v3556_v21 }
 0x23d   : > { %v2021_v13 = vmin.f32 %v1989_v15, 6.0  ;;  %v2022_v32 = vmin.f32 %v1990_v5, 6.0  ;;  %v1288_v36 = vmul.f32 %v4341_v19, %v3559_v22  ;;  %v1289_v41 = vmul.f32 %v4343_v12, %v3559_v22  ;;  %v1754_v12 = vld [vmem:[#allocation4 + $0x201] sm:$0xff] }
 0x23e   : > { %v1720_v31 = vadd.f32 %v1688_v55, %v1619_v30  ;;  %v1721_v7 = vadd.f32 %v1689_v42, %v1620_v45  ;;  %v1220_v52 = vadd.f32 %v1188_v28, %v1088_v0  ;;  %v1221_v51 = vadd.f32 %v1189_v49, %v1089_v18  ;;  %v1356_v45 = vld [vmem:[#allocation4 + $0x208] sm:$0xff] }
 0x23f   : > { %v2041_v26 = vpack.c.bf16 %v2022_v32, %v2021_v13  ;;  %v1389_v33 = vmul.f32 %v4368_v46, %v3577_v53  ;;  %v1390_v24 = vmul.f32 %v4370_v56, %v3577_v53  ;;  %v1489_v57 = vmul.f32 %v4374_v58, %v3581_v59 }
 0x240   : > { %v1820_v48 = vadd.f32 %v1788_v63, %v1720_v31  ;;  %v1821_v19 = vadd.f32 %v1789_v6, %v1721_v7  ;;  %v1320_v47 = vadd.f32 %v1288_v36, %v1220_v52  ;;  %v1321_v3 = vadd.f32 %v1289_v41, %v1221_v51 }
 0x241   : > { %2985 = vmatprep.mubr.bf16.mxu1 %v2041_v26  ;;  %v1490_v61 = vmul.f32 %v4376_v34, %v3581_v59  ;;  %v1589_v1 = vmul.f32 %v4382_v35, %v3584_v60  ;;  %v1590_v29 = vmul.f32 %v4384_v23, %v3584_v60  ;;  %v1690_v14 = vmul.f32 %v3596_v10, %v1654_v37 }
 0x242   : > { %v1920_v54 = vadd.f32 %v1888_v50, %v1820_v48  ;;  %v1921_v4 = vadd.f32 %v1889_v27, %v1821_v19  ;;  %v1421_v39 = vadd.f32 %v1389_v33, %v1320_v47  ;;  %v1422_v40 = vadd.f32 %v1390_v24, %v1321_v3 }
 0x243   : > { %v1691_v55 = vmul.f32 %v3596_v10, %v4044_v2  ;;  %v1790_v42 = vmul.f32 %v3599_v11, %v1754_v12  ;;  %v1791_v44 = vmul.f32 %v3599_v11, %v1755_v62  ;;  %v1890_v43 = vmul.f32 %v4095_v17, %v1854_v25 }
 0x244   : > { %v1959_v63 = vadd.f32 %v4156_v8, %v1920_v54  ;;  %v1960_v6 = vadd.f32 %v4156_v8, %v1921_v4  ;;  %v1521_v16 = vadd.f32 %v1489_v57, %v1421_v39  ;;  %v1522_v9 = vadd.f32 %v1490_v61, %v1422_v40  ;;  %v1756_v57 = vld [vmem:[#allocation4 + $0x221] sm:$0xff]  ;;  %v1757_v61 = vld [vmem:[#allocation4 + $0x229] sm:$0xff] }
 0x245   : > { %v1891_v50 = vmul.f32 %v4095_v17, %v1855_v38  ;;  %v1090_v27 = vmul.f32 %v4368_v46, %v3553_v20  ;;  %v1091_v2 = vmul.f32 %v4370_v56, %v3553_v20  ;;  %v1190_v15 = vmul.f32 %v4374_v58, %v3556_v21  ;;  %v1857_v54 = vld [vmem:[#allocation4 + $0x22a] sm:$0xff] }
 0x246   : > { %v1991_v5 = vmax.f32 %v1959_v63, 0.0  ;;  %v1992_v0 = vmax.f32 %v1960_v6, 0.0  ;;  %v1621_v18 = vadd.f32 %v1589_v1, %v1521_v16  ;;  %v1622_v30 = vadd.f32 %v1590_v29, %v1522_v9  ;;  %v1856_v1 = vld [vmem:[#allocation4 + $0x222] sm:$0xff] }
 0x247   : > { %v1191_v28 = vmul.f32 %v4376_v34, %v3556_v21  ;;  %v1222_v49 = vadd.f32 %v1190_v15, %v1090_v27  ;;  %v1290_v13 = vmul.f32 %v4382_v35, %v3559_v22  ;;  %v1291_v46 = vmul.f32 %v4384_v23, %v3559_v22 }
 0x248   : > { %v2023_v32 = vmin.f32 %v1991_v5, 6.0  ;;  %v2024_v20 = vmin.f32 %v1992_v0, 6.0  ;;  %v1722_v56 = vadd.f32 %v1690_v14, %v1621_v18  ;;  %v1723_v36 = vadd.f32 %v1691_v55, %v1622_v30  ;;  %v2750_v0 = vld [vmem:[#allocation2 + $0x20] sm:$0xff]  ;;  %v2748_v18 = vld [vmem:[#allocation2 + $0x10] sm:$0xff]  ;;  %v2751_v30 = vld [vmem:[#allocation2 + $0x28] sm:$0x1] }
 0x249   : > { %v1223_v58 = vadd.f32 %v1191_v28, %v1091_v2  ;;  %v1322_v41 = vadd.f32 %v1290_v13, %v1222_v49  ;;  %v1391_v31 = vmul.f32 %v1654_v37, %v3577_v53  ;;  %v1392_v7 = vmul.f32 %v3577_v53, %v1356_v45  ;;  %v3123_v53 = vld [vmem:[#allocation4 + $0x18] sm:$0xff] }
 0x24a   : > { %v2042_v52 = vpack.c.bf16 %v2024_v20, %v2023_v32  ;;  %v1822_v51 = vadd.f32 %v1790_v42, %v1722_v56  ;;  %v1823_v21 = vadd.f32 %v1791_v44, %v1723_v36  ;;  %v1491_v34 = vmul.f32 %v1754_v12, %v3581_v59  ;;  %v2749_v28 = vld [vmem:[#allocation2 + $0x18] sm:$0x1] }
 0x24b   : > { %v1323_v26 = vadd.f32 %v1291_v46, %v1223_v58  ;;  %v1423_v35 = vadd.f32 %v1391_v31, %v1322_v41  ;;  %v1492_v33 = vmul.f32 %v1755_v62, %v3581_v59  ;;  %v1591_v22 = vmul.f32 %v1854_v25, %v3584_v60  ;;  %v4463_v58 = vld [vmem:[%s4624_s6] ss:$0 sm:$0xff] }
 0x24c   : > { %2986 = vmatmul.mubr.bf16.gmra.mrb[44].mxu1 %v2042_v52  ;;  %v1922_v23 = vadd.f32 %v1890_v43, %v1822_v51  ;;  %v1923_v24 = vadd.f32 %v1891_v50, %v1823_v21  ;;  %v1592_v37 = vmul.f32 %v1855_v38, %v3584_v60  ;;  %v1692_v47 = vmul.f32 %v3123_v53, %v3596_v10 }
 0x24d   : > { %v1424_v48 = vadd.f32 %v1392_v7, %v1323_v26  ;;  %v1523_v19 = vadd.f32 %v1491_v34, %v1423_v35  ;;  %v1792_v25 = vmul.f32 %v3599_v11, %v1756_v57  ;;  %v1793_v60 = vmul.f32 %v3599_v11, %v1757_v61 }
 0x24e   : > { %v1961_v3 = vadd.f32 %v4156_v8, %v1922_v23  ;;  %v1962_v12 = vadd.f32 %v4156_v8, %v1923_v24  ;;  %v1892_v40 = vmul.f32 %v4095_v17, %v1856_v1  ;;  %v1893_v44 = vmul.f32 %v4095_v17, %v1857_v54 }
 0x24f   : > { %v1524_v59 = vadd.f32 %v1492_v33, %v1424_v48  ;;  %v1623_v62 = vadd.f32 %v1591_v22, %v1523_v19  ;;  %v2315_v45 = vunpack.c.l.bf16 %v2750_v0  ;;  %v2316_v17 = vunpack.c.h.bf16 %v2750_v0 }
 0x250   : > { %v1993_v29 = vmax.f32 %v1961_v3, 0.0  ;;  %v1994_v14 = vmax.f32 %v1962_v12, 0.0  ;;  %v2312_v49 = vunpack.c.l.bf16 %v2748_v18  ;;  %v2313_v13 = vunpack.c.h.bf16 %v2748_v18  ;;  %v2752_v3 = vld [vmem:[#allocation2 + $0x30] sm:$0xff]  ;;  %v2755_v12 = vld [vmem:[#allocation2 + $0x48] sm:$0x1]  ;;  %v2758_v18 = vld [vmem:[#allocation2 + $0x60] sm:$0xff] }
 0x251   : > { %v1624_v4 = vadd.f32 %v1592_v37, %v1524_v59  ;;  %v1724_v39 = vadd.f32 %v1692_v47, %v1623_v62  ;;  %v2317_v46 = vunpack.c.l.bf16 %v2751_v30  ;;  %v2314_v32 = vunpack.c.l.bf16 %v2749_v28  ;;  %v2753_v59 = vld [vmem:[#allocation2 + $0x38] sm:$0x1]  ;;  %v2756_v30 = vld [vmem:[#allocation2 + $0x50] sm:$0xff] }
 0x252   : > { %v2025_v10 = vmin.f32 %v1993_v29, 6.0  ;;  %v2026_v38 = vmin.f32 %v1994_v14, 6.0  ;;  %v2414_v20 = vrot.slane %v2315_v45, 1  ;;  %v2415_v56 = vrot.slane %v2316_v17, 1  ;;  %v2759_v45 = vld [vmem:[#allocation2 + $0x68] sm:$0x1] }
 0x253   : > { %v1725_v55 = vadd.f32 %v1692_v47, %v1624_v4  ;;  %v1824_v42 = vadd.f32 %v1792_v25, %v1724_v39  ;;  %v2410_v36 = vrot.slane %v2313_v13, 1  ;;  %v2417_v41 = vrot.slane %v2317_v46, 1  ;;  %v2754_v47 = vld [vmem:[#allocation2 + $0x40] sm:$0xff] }
 0x254   : > { %v2043_v43 = vpack.c.bf16 %v2026_v38, %v2025_v10  ;;  %v2412_v31 = vrot.slane %v2314_v32, 1  ;;  %v2416_v52 = vsel %vm2408_vm0, %v2414_v20, %v2415_v56  ;;  %v2321_v61 = vunpack.c.l.bf16 %v2754_v47 }
 0x255   : > { %v1825_v63 = vadd.f32 %v1793_v60, %v1725_v55  ;;  %v1924_v6 = vadd.f32 %v1892_v40, %v1824_v42  ;;  %v2418_v33 = vsel %vm2408_vm0, %v2415_v56, %v2417_v41  ;;  %v2322_v1 = vunpack.c.h.bf16 %v2754_v47 }
 0x256   : > { %2989 = vmatprep.mubr.bf16.mxu1 %v2043_v43  ;;  %v2413_v57 = vsel %vm2408_vm0, %v2410_v36, %v2412_v31  ;;  %v2318_v62 = vunpack.c.l.bf16 %v2752_v3  ;;  %v2319_v25 = vunpack.c.h.bf16 %v2752_v3  ;;  %v2323_v29 = vunpack.c.l.bf16 %v2755_v12  ;;  %v2762_v3 = vld [vmem:[#allocation2 + $0x80] sm:$0xff]  ;;  %v2760_v12 = vld [vmem:[#allocation2 + $0x70] sm:$0xff] }
 0x257   : > { %v1925_v16 = vadd.f32 %v1893_v44, %v1825_v63  ;;  %v1963_v9 = vadd.f32 %v4156_v8, %v1924_v6  ;;  %v2320_v14 = vunpack.c.l.bf16 %v2753_v59  ;;  %v2424_v54 = vrot.slane %v2321_v61, 1  ;;  %v2763_v61 = vld [vmem:[#allocation2 + $0x88] sm:$0x1] }
 0x258   : > { %v2425_v4 = vrot.slane %v2322_v1, 1  ;;  %v2419_v39 = vrot.slane %v2318_v62, 1  ;;  %v2420_v60 = vrot.slane %v2319_v25, 1  ;;  %v2427_v40 = vrot.slane %v2323_v29, 1  ;;  %v2761_v62 = vld [vmem:[#allocation2 + $0x78] sm:$0x1] }
 0x259   : > { %v1964_v50 = vadd.f32 %v4156_v8, %v1925_v16  ;;  %v1995_v27 = vmax.f32 %v1963_v9, 0.0  ;;  %v2409_v8 = vrot.slane %v2312_v49, 1  ;;  %v2422_v10 = vrot.slane %v2320_v14, 1  ;;  %v2757_v49 = vld [vmem:[#allocation2 + $0x58] sm:$0x1] }
 0x25a   : > { %v2426_v55 = vsel %vm2408_vm0, %v2424_v54, %v2425_v4  ;;  %v2421_v43 = vsel %vm2408_vm0, %v2419_v39, %v2420_v60  ;;  %v2428_v16 = vsel %vm2408_vm0, %v2425_v4, %v2427_v40  ;;  %v2327_v17 = vunpack.c.l.bf16 %v2758_v18 }
 0x25b   : > { %v1996_v2 = vmax.f32 %v1964_v50, 0.0  ;;  %v2027_v11 = vmin.f32 %v1995_v27, 6.0  ;;  %v2411_v34 = vsel %vm2408_vm0, %v2409_v8, %v2410_v36  ;;  %v2328_v28 = vunpack.c.h.bf16 %v2758_v18 }
 0x25c   : > { %v2324_v13 = vunpack.c.l.bf16 %v2756_v30  ;;  %v2325_v46 = vunpack.c.h.bf16 %v2756_v30  ;;  %v2329_v32 = vunpack.c.l.bf16 %v2759_v45  ;;  %v2326_v20 = vunpack.c.l.bf16 %v2757_v49  ;;  %v2766_v30 = vld [vmem:[#allocation2 + $0xa0] sm:$0xff]  ;;  %v2764_v45 = vld [vmem:[#allocation2 + $0x90] sm:$0xff] }
 0x25d   : > { %v2028_v15 = vmin.f32 %v1996_v2, 6.0  ;;  %v2423_v2 = vsel %vm2408_vm0, %v2420_v60, %v2422_v10  ;;  %v2434_v56 = vrot.slane %v2327_v17, 1  ;;  %v2435_v8 = vrot.slane %v2328_v28, 1  ;;  %v2767_v17 = vld [vmem:[#allocation2 + $0xa8] sm:$0x1] }
 0x25e   : > { %v2429_v36 = vrot.slane %v2324_v13, 1  ;;  %v2430_v41 = vrot.slane %v2325_v46, 1  ;;  %v2437_v31 = vrot.slane %v2329_v32, 1  ;;  %v2333_v1 = vunpack.c.l.bf16 %v2762_v3  ;;  %v2765_v13 = vld [vmem:[#allocation2 + $0x98] sm:$0x1] }
 0x25f   : > { %v2044_v5 = vpack.c.bf16 %v2028_v15, %v2027_v11  ;;  %v2334_v59 = vunpack.c.h.bf16 %v2762_v3  ;;  %v2330_v25 = vunpack.c.l.bf16 %v2760_v12  ;;  %v2331_v29 = vunpack.c.h.bf16 %v2760_v12  ;;  %v2770_v12 = vld [vmem:[#allocation2 + $0xc0] sm:$0xff] }
 0x260   : > { %v2335_v14 = vunpack.c.l.bf16 %v2763_v61  ;;  %v2332_v54 = vunpack.c.l.bf16 %v2761_v62  ;;  %v2444_v4 = vrot.slane %v2333_v1, 1  ;;  %v2339_v28 = vunpack.c.l.bf16 %v2766_v30  ;;  %v2768_v61 = vld [vmem:[#allocation2 + $0xb0] sm:$0xff]  ;;  %v2771_v1 = vld [vmem:[#allocation2 + $0xc8] sm:$0x1] }
 0x261   : > { %2990 = vmatmul.mubr.bf16.gmra.mrb[48].mxu1 %v2044_v5  ;;  %v2445_v39 = vrot.slane %v2334_v59, 1  ;;  %v2439_v60 = vrot.slane %v2330_v25, 1  ;;  %v2440_v40 = vrot.slane %v2331_v29, 1  ;;  %v2340_v49 = vunpack.c.h.bf16 %v2766_v30  ;;  %v2769_v25 = vld [vmem:[#allocation2 + $0xb8] sm:$0x1] }
 0x262   : > { %v2447_v10 = vrot.slane %v2335_v14, 1  ;;  %v2336_v46 = vunpack.c.l.bf16 %v2764_v45  ;;  %v2337_v32 = vunpack.c.h.bf16 %v2764_v45  ;;  %v2345_v59 = vunpack.c.l.bf16 %v2770_v12  ;;  %v2774_v45 = vld [vmem:[#allocation2 + $0xe0] sm:$0xff] }
 0x263   : > { %v2346_v62 = vunpack.c.h.bf16 %v2770_v12  ;;  %v2342_v29 = vunpack.c.l.bf16 %v2768_v61  ;;  %v2343_v14 = vunpack.c.h.bf16 %v2768_v61  ;;  %v2778_v61 = vld [vmem:[#allocation2 + $0x100] sm:$0xff] }
 0x28c   : > { %v2963_v7 = vpop.f32.mrb[20].mxu1 }
 0x28d   : > { %v2159_v51 = vadd.f32 %v2963_v7, %v4463_v58  ;;  %v2150_v21 = vpop.f32.mrb[21].mxu1  ;;  %v2432_v7 = vrot.slane %v2326_v20, 1  ;;  %v2341_v20 = vunpack.c.l.bf16 %v2767_v17  ;;  %v2772_v17 = vld [vmem:[#allocation2 + $0xd0] sm:$0xff] }
 0x28e   : > { %v2151_v26 = vadd.f32 %v4463_v58, %v2150_v21  ;;  %v2964_v35 = vpop.f32.mrb[22].mxu1 }
 0x28f   : > { %v2523_v22 = vadd.f32 %v2416_v52, %v2159_v51  ;;  %v2162_v23 = vadd.f32 %v2964_v35, %v4463_v58  ;;  %v2153_v24 = vpop.f32.mrb[23].mxu1  ;;  %v2436_v51 = vsel %vm2408_vm0, %v2434_v56, %v2435_v8  ;;  %v2338_v56 = vunpack.c.l.bf16 %v2765_v13 }
 0x290   : > { %v2521_v48 = vadd.f32 %v2411_v34, %v2151_v26  ;;  %v2154_v19 = vadd.f32 %v4463_v58, %v2153_v24  ;;  %v2431_v26 = vsel %vm2408_vm0, %v2429_v36, %v2430_v41  ;;  %v2455_v36 = vrot.slane %v2340_v49, 1 }
 0x291   : > { %2555 = vst [vmem:[%s3528_s26 + $0x10] sm:$0xff] %v2523_v22  ;;  %v2524_v37 = vadd.f32 %v2418_v33, %v2162_v23  ;;  %v2438_v22 = vsel %vm2408_vm0, %v2435_v8, %v2437_v31  ;;  %v2454_v8 = vrot.slane %v2339_v28, 1  ;;  %v2450_v31 = vrot.slane %v2337_v32, 1  ;;  %v2775_v28 = vld [vmem:[#allocation2 + $0xe8] sm:$0x1] }
 0x292   : > { %2553 = vst [vmem:[%s3528_s26] sm:$0xff] %v2521_v48  ;;  %v2522_v53 = vadd.f32 %v2413_v57, %v2154_v19  ;;  %v2433_v48 = vsel %vm2408_vm0, %v2430_v41, %v2432_v7  ;;  %v2449_v41 = vrot.slane %v2336_v46, 1  ;;  %v2457_v7 = vrot.slane %v2341_v20, 1  ;;  %v2773_v46 = vld [vmem:[#allocation2 + $0xd8] sm:$0x1] }
 0x293   : > { %2556 = vst [vmem:[%s3528_s26 + $0x18] sm:$0xff] %v2524_v37  ;;  %v2351_v49 = vunpack.c.l.bf16 %v2774_v45  ;;  %v2352_v13 = vunpack.c.h.bf16 %v2774_v45  ;;  %v2348_v32 = vunpack.c.l.bf16 %v2772_v17  ;;  %v2349_v20 = vunpack.c.h.bf16 %v2772_v17 }
 0x294   : > { %2554 = vst [vmem:[%s3528_s26 + $0x8] sm:$0xff] %v2522_v53 }
 0x2aa   : > { %v2967_v38 = vpop.f32.mrb[24].mxu1 }
 0x2ab   : > { %v2175_v42 = vadd.f32 %v2967_v38, %v4463_v58  ;;  %v2166_v44 = vpop.f32.mrb[25].mxu1  ;;  %v2442_v38 = vrot.slane %v2332_v54, 1  ;;  %v2347_v54 = vunpack.c.l.bf16 %v2771_v1  ;;  %v2776_v1 = vld [vmem:[#allocation2 + $0xf0] sm:$0xff] }
 0x2ac   : > { %v2167_v63 = vadd.f32 %v4463_v58, %v2166_v44  ;;  %v2968_v6 = vpop.f32.mrb[26].mxu1 }
 0x2ad   : > { %v2527_v9 = vadd.f32 %v2426_v55, %v2175_v42  ;;  %v2178_v50 = vadd.f32 %v2968_v6, %v4463_v58  ;;  %v2169_v27 = vpop.f32.mrb[27].mxu1  ;;  %v2446_v42 = vsel %vm2408_vm0, %v2444_v4, %v2445_v39  ;;  %v2344_v4 = vunpack.c.l.bf16 %v2769_v25 }
 0x2ae   : > { %v2525_v11 = vadd.f32 %v2421_v43, %v2167_v63  ;;  %v2170_v15 = vadd.f32 %v4463_v58, %v2169_v27  ;;  %v2441_v63 = vsel %vm2408_vm0, %v2439_v60, %v2440_v40  ;;  %v2465_v60 = vrot.slane %v2346_v62, 1 }
 0x2af   : > { %2559 = vst [vmem:[%s3528_s26 + $0x30] sm:$0xff] %v2527_v9  ;;  %v2528_v5 = vadd.f32 %v2428_v16, %v2178_v50  ;;  %v2448_v9 = vsel %vm2408_vm0, %v2445_v39, %v2447_v10  ;;  %v2464_v39 = vrot.slane %v2345_v59, 1  ;;  %v2460_v10 = vrot.slane %v2343_v14, 1  ;;  %v2779_v59 = vld [vmem:[#allocation2 + $0x108] sm:$0x1] }
 0x2b0   : > { %2557 = vst [vmem:[%s3528_s26 + $0x20] sm:$0xff] %v2525_v11  ;;  %v2526_v0 = vadd.f32 %v2423_v2, %v2170_v15  ;;  %v2443_v11 = vsel %vm2408_vm0, %v2440_v40, %v2442_v38  ;;  %v2459_v40 = vrot.slane %v2342_v29, 1  ;;  %v2467_v38 = vrot.slane %v2347_v54, 1  ;;  %v2777_v29 = vld [vmem:[#allocation2 + $0xf8] sm:$0x1] }
 0x2b1   : > { %2560 = vst [vmem:[%s3528_s26 + $0x38] sm:$0xff] %v2528_v5  ;;  %v2357_v62 = vunpack.c.l.bf16 %v2778_v61  ;;  %v2358_v25 = vunpack.c.h.bf16 %v2778_v61  ;;  %v2354_v14 = vunpack.c.l.bf16 %v2776_v1  ;;  %v2355_v54 = vunpack.c.h.bf16 %v2776_v1 }
 0x2b2   : > { %2558 = vst [vmem:[%s3528_s26 + $0x28] sm:$0xff] %v2526_v0 }
 0x2c5   : > { %v2971_v52 = vpop.f32.mrb[28].mxu1 }
 0x2c6   : > { %v2191_v21 = vadd.f32 %v2971_v52, %v4463_v58  ;;  %v2182_v34 = vpop.f32.mrb[29].mxu1  ;;  %v2452_v52 = vrot.slane %v2338_v56, 1  ;;  %v2353_v56 = vunpack.c.l.bf16 %v2775_v28 }
 0x2c7   : > { %v2183_v35 = vadd.f32 %v4463_v58, %v2182_v34  ;;  %v2972_v33 = vpop.f32.mrb[30].mxu1 }
 0x2c8   : > { %v2531_v23 = vadd.f32 %v2436_v51, %v2191_v21  ;;  %v2194_v24 = vadd.f32 %v2972_v33, %v4463_v58  ;;  %v2185_v57 = vpop.f32.mrb[31].mxu1  ;;  %v2456_v21 = vsel %vm2408_vm0, %v2454_v8, %v2455_v36  ;;  %v2350_v8 = vunpack.c.l.bf16 %v2773_v46 }
 0x2c9   : > { %v2529_v19 = vadd.f32 %v2431_v26, %v2183_v35  ;;  %v2186_v37 = vadd.f32 %v4463_v58, %v2185_v57  ;;  %v2451_v35 = vsel %vm2408_vm0, %v2449_v41, %v2450_v31  ;;  %v2475_v41 = vrot.slane %v2352_v13, 1 }
 0x2ca   : > { %2563 = vst [vmem:[%s3528_s26 + $0x50] sm:$0xff] %v2531_v23  ;;  %v2532_v53 = vadd.f32 %v2438_v22, %v2194_v24  ;;  %v2458_v23 = vsel %vm2408_vm0, %v2455_v36, %v2457_v7  ;;  %v2474_v36 = vrot.slane %v2351_v49, 1  ;;  %v2470_v7 = vrot.slane %v2349_v20, 1 }
 0x2cb   : > { %2561 = vst [vmem:[%s3528_s26 + $0x40] sm:$0xff] %v2529_v19  ;;  %v2530_v47 = vadd.f32 %v2433_v48, %v2186_v37  ;;  %v2453_v19 = vsel %vm2408_vm0, %v2450_v31, %v2452_v52  ;;  %v2469_v31 = vrot.slane %v2348_v32, 1  ;;  %v2477_v52 = vrot.slane %v2353_v56, 1 }
 0x2cc   : > { %2564 = vst [vmem:[%s3528_s26 + $0x58] sm:$0xff] %v2532_v53 }
 0x2cd   : > { %2562 = vst [vmem:[%s3528_s26 + $0x48] sm:$0xff] %v2530_v47 }
 0x2e3   : > { %v2975_v55 = vpop.f32.mrb[32].mxu1 }
 0x2e4   : > { %v2207_v44 = vadd.f32 %v2975_v55, %v4463_v58  ;;  %v2198_v43 = vpop.f32.mrb[33].mxu1  ;;  %v2462_v55 = vrot.slane %v2344_v4, 1  ;;  %v2359_v4 = vunpack.c.l.bf16 %v2779_v59 }
 0x2e5   : > { %v2199_v6 = vadd.f32 %v4463_v58, %v2198_v43  ;;  %v2976_v16 = vpop.f32.mrb[34].mxu1 }
 0x2e6   : > { %v2535_v50 = vadd.f32 %v2446_v42, %v2207_v44  ;;  %v2210_v27 = vadd.f32 %v2976_v16, %v4463_v58  ;;  %v2201_v2 = vpop.f32.mrb[35].mxu1  ;;  %v2466_v44 = vsel %vm2408_vm0, %v2464_v39, %v2465_v60  ;;  %v2356_v39 = vunpack.c.l.bf16 %v2777_v29 }
 0x2e7   : > { %v2533_v15 = vadd.f32 %v2441_v63, %v2199_v6  ;;  %v2202_v5 = vadd.f32 %v4463_v58, %v2201_v2  ;;  %v2461_v6 = vsel %vm2408_vm0, %v2459_v40, %v2460_v10  ;;  %v2485_v40 = vrot.slane %v2358_v25, 1 }
 0x2e8   : > { %2567 = vst [vmem:[%s3528_s26 + $0x70] sm:$0xff] %v2535_v50  ;;  %v2536_v0 = vadd.f32 %v2448_v9, %v2210_v27  ;;  %v2468_v50 = vsel %vm2408_vm0, %v2465_v60, %v2467_v38  ;;  %v2484_v60 = vrot.slane %v2357_v62, 1  ;;  %v2480_v38 = vrot.slane %v2355_v54, 1 }
 0x2e9   : > { %2565 = vst [vmem:[%s3528_s26 + $0x60] sm:$0xff] %v2533_v15  ;;  %v2534_v18 = vadd.f32 %v2443_v11, %v2202_v5  ;;  %v2463_v15 = vsel %vm2408_vm0, %v2460_v10, %v2462_v55  ;;  %v2479_v10 = vrot.slane %v2354_v14, 1  ;;  %v2487_v55 = vrot.slane %v2359_v4, 1 }
 0x2ea   : > { %2568 = vst [vmem:[%s3528_s26 + $0x78] sm:$0xff] %v2536_v0 }
 0x2eb   : > { %2566 = vst [vmem:[%s3528_s26 + $0x68] sm:$0xff] %v2534_v18 }
 0x2f5   : > { %v2979_v51 = vpop.f32.mrb[36].mxu1 }
 0x2f6   : > { %v2223_v34 = vadd.f32 %v2979_v51, %v4463_v58  ;;  %v2214_v26 = vpop.f32.mrb[37].mxu1  ;;  %v2472_v51 = vrot.slane %v2350_v8, 1 }
 0x2f7   : > { %v2215_v33 = vadd.f32 %v4463_v58, %v2214_v26  ;;  %v2980_v22 = vpop.f32.mrb[38].mxu1 }
 0x2f8   : > { %v2539_v24 = vadd.f32 %v2456_v21, %v2223_v34  ;;  %v2226_v57 = vadd.f32 %v2980_v22, %v4463_v58  ;;  %v2217_v48 = vpop.f32.mrb[39].mxu1  ;;  %v2476_v34 = vsel %vm2408_vm0, %v2474_v36, %v2475_v41 }
 0x2f9   : > { %v2537_v37 = vadd.f32 %v2451_v35, %v2215_v33  ;;  %v2218_v53 = vadd.f32 %v4463_v58, %v2217_v48  ;;  %v2471_v33 = vsel %vm2408_vm0, %v2469_v31, %v2470_v7 }
 0x2fa   : > { %2571 = vst [vmem:[%s3528_s26 + $0x90] sm:$0xff] %v2539_v24  ;;  %v2540_v47 = vadd.f32 %v2458_v23, %v2226_v57  ;;  %v2478_v24 = vsel %vm2408_vm0, %v2475_v41, %v2477_v52 }
 0x2fb   : > { %2569 = vst [vmem:[%s3528_s26 + $0x80] sm:$0xff] %v2537_v37  ;;  %v2538_v3 = vadd.f32 %v2453_v19, %v2218_v53  ;;  %v2473_v37 = vsel %vm2408_vm0, %v2470_v7, %v2472_v51 }
 0x2fc   : > { %2572 = vst [vmem:[%s3528_s26 + $0x98] sm:$0xff] %v2540_v47 }
 0x2fd   : > { %2570 = vst [vmem:[%s3528_s26 + $0x88] sm:$0xff] %v2538_v3 }
 0x30b   : > { %v2983_v42 = vpop.f32.mrb[40].mxu1 }
 0x30c   : > { %v2239_v43 = vadd.f32 %v2983_v42, %v4463_v58  ;;  %v2230_v63 = vpop.f32.mrb[41].mxu1  ;;  %v2482_v42 = vrot.slane %v2356_v39, 1 }
 0x30d   : > { %v2231_v16 = vadd.f32 %v4463_v58, %v2230_v63  ;;  %v2984_v9 = vpop.f32.mrb[42].mxu1 }
 0x30e   : > { %v2543_v27 = vadd.f32 %v2466_v44, %v2239_v43  ;;  %v2242_v2 = vadd.f32 %v2984_v9, %v4463_v58  ;;  %v2233_v11 = vpop.f32.mrb[43].mxu1  ;;  %v2486_v43 = vsel %vm2408_vm0, %v2484_v60, %v2485_v40 }
 0x30f   : > { %v2541_v5 = vadd.f32 %v2461_v6, %v2231_v16  ;;  %v2234_v0 = vadd.f32 %v4463_v58, %v2233_v11  ;;  %v2481_v16 = vsel %vm2408_vm0, %v2479_v10, %v2480_v38 }
 0x310   : > { %2575 = vst [vmem:[%s3528_s26 + $0xb0] sm:$0xff] %v2543_v27  ;;  %v2544_v18 = vadd.f32 %v2468_v50, %v2242_v2  ;;  %v2488_v27 = vsel %vm2408_vm0, %v2485_v40, %v2487_v55 }
 0x311   : > { %2573 = vst [vmem:[%s3528_s26 + $0xa0] sm:$0xff] %v2541_v5  ;;  %v2542_v30 = vadd.f32 %v2463_v15, %v2234_v0  ;;  %v2483_v5 = vsel %vm2408_vm0, %v2480_v38, %v2482_v42 }
 0x312   : > { %2576 = vst [vmem:[%s3528_s26 + $0xb8] sm:$0xff] %v2544_v18 }
 0x313   : > { %2574 = vst [vmem:[%s3528_s26 + $0xa8] sm:$0xff] %v2542_v30 }
 0x31f   : > { %v2987_v21 = vpop.f32.mrb[44].mxu1 }
 0x320   : > { %v2255_v26 = vadd.f32 %v2987_v21, %v4463_v58  ;;  %v2246_v35 = vpop.f32.mrb[45].mxu1 }
 0x321   : > { %v2247_v22 = vadd.f32 %v4463_v58, %v2246_v35  ;;  %v2988_v23 = vpop.f32.mrb[46].mxu1 }
 0x322   : > { %v2547_v57 = vadd.f32 %v2476_v34, %v2255_v26  ;;  %v2258_v48 = vadd.f32 %v2988_v23, %v4463_v58  ;;  %v2249_v19 = vpop.f32.mrb[47].mxu1 }
 0x323   : > { %v2545_v53 = vadd.f32 %v2471_v33, %v2247_v22  ;;  %v2250_v47 = vadd.f32 %v4463_v58, %v2249_v19 }
 0x324   : > { %2579 = vst [vmem:[%s3528_s26 + $0xd0] sm:$0xff] %v2547_v57  ;;  %v2548_v3 = vadd.f32 %v2478_v24, %v2258_v48 }
 0x325   : > { %2577 = vst [vmem:[%s3528_s26 + $0xc0] sm:$0xff] %v2545_v53  ;;  %v2546_v12 = vadd.f32 %v2473_v37, %v2250_v47 }
 0x326   : > { %2580 = vst [vmem:[%s3528_s26 + $0xd8] sm:$0xff] %v2548_v3 }
 0x327   : > { %2578 = vst [vmem:[%s3528_s26 + $0xc8] sm:$0xff] %v2546_v12 }
 0x334   : > { %v2991_v44 = vpop.f32.mrb[48].mxu1 }
 0x335   : > { %v2271_v63 = vadd.f32 %v2991_v44, %v4463_v58  ;;  %v2262_v6 = vpop.f32.mrb[49].mxu1 }
 0x336   : > { %v2263_v9 = vadd.f32 %v4463_v58, %v2262_v6  ;;  %v2992_v50 = vpop.f32.mrb[50].mxu1 }
 0x337   : > { %v2551_v2 = vadd.f32 %v2486_v43, %v2271_v63  ;;  %v2274_v11 = vadd.f32 %v2992_v50, %v4463_v58  ;;  %v2265_v15 = vpop.f32.mrb[51].mxu1 }
 0x338   : > { %v2549_v0 = vadd.f32 %v2481_v16, %v2263_v9  ;;  %v2266_v18 = vadd.f32 %v4463_v58, %v2265_v15 }
 0x339   : > { %2583 = vst [vmem:[%s3528_s26 + $0xf0] sm:$0xff] %v2551_v2  ;;  %v2552_v30 = vadd.f32 %v2488_v27, %v2274_v11 }
 0x33a   : > { %2581 = vst [vmem:[%s3528_s26 + $0xe0] sm:$0xff] %v2549_v0  ;;  %v2550_v45 = vadd.f32 %v2483_v5, %v2266_v18 }
 0x33b   : > { %2584 = vst [vmem:[%s3528_s26 + $0xf8] sm:$0xff] %v2552_v30 }
 0x33c   : > { %2582 = vst [vmem:[%s3528_s26 + $0xe8] sm:$0xff] %v2550_v45 }
 0x33d   : > { %3245 = shalt.err (!%p3242_p2)
}
 0x33e   : > { %s3246_s3 = scalar_lea.hbm %s4563_s9, 4096  ;;  %s3250_s28 = scalar_lea.hbm %s4625_s7, 8192 }
 0x33f   : > { %p3247_p3 = scmp.ne.s32.totalorder %s4563_s9, %s3246_s3  ;;  %p3251_p7 = scmp.lt.u32.totalorder %s4563_s9, %s4625_s7 }
 0x340   : > { %p3252_p9 = scmp.lt.u32.totalorder %s3250_s28, %s3246_s3  ;;  %p3254_p4 = scmp.lt.u32.totalorder %s3246_s3, %s4563_s9 }
 0x341   : > { %p3248_p5 = pnand %p3247_p3, %p4651_p8 }
 0x342   : > { %p3253_p12 = por %p3252_p9, %p3251_p7 }
 0x343   : > { %p3249_p6 = pneg %p3248_p5 }
 0x344   : > { %p3255_p13 = por %p3254_p4, %p3253_p12 }
 0x346   : > { %p3256_p1 = pnand %p3255_p13, %p3249_p6 }
 0x348   : > { %3259 = shalt.err (!%p3256_p1)
}
 0x349   : > { %s3332_s23 = smov 128   ;;  %s3333_s30 = smov 8  }
 0x34a   : > { %3021 = dma.vmem_to_hbm [thread:$0]  (%p4651_p8), %s4565_s16, 4096, %s4563_s9, %s4572_s27, %s3332_s23, %s3332_s23, %s3333_s30  }
 0x34b PF: > { %p3043_p10 = scmp.ge.s32.totalorder %s3320_s29, 2  ;;  %s2617_s8 = sand.u32 1, %s3300_s24  }
 0x34c   : > { %p4652_p11 = scmp.ne.s32.totalorder %s4640_s13, 0  ;;  %s2618_s10 = scalar_lea.sflag [#allocation7], %s2617_s8 }
 0x34e   : > { %p3034_p0 = pnand %p3043_p10, %p4652_p11 }
 0x350   : > { %3295 = dma.done.wait (!%p3034_p0), %s2618_s10, 4096  }
 0x351   : > { %3297 = vsyncadd (!%p3034_p0), %s2618_s10, 4294963200  ;;  %s22_s29 = sadd.s32 1, %s3320_s29   ;;  %s4653_s17 = sld [smem:[#allocation20_spill]] }
 0x352   : > { %p19_p2 = scmp.ge.s32.totalorder %s22_s29, 4   ;;  %s4654_s26 = sld [smem:[#allocation23_spill]] }
 0x353   : > { %s4655_s27 = sld [smem:[#allocation21_spill]]  ;;  %s4656_s28 = sld [smem:[#allocation22_spill]] }
 0x354   : > { %s4657_s24 = smov %s3304_s25  ;;  %21 = sbr.rel (!%p19_p2) target bundleno = 8 (0x8), region = 109 }
 0x357   : > { %s4658_s25 = smov %s4653_s17 }
 0x35b   :  { %2623 = vsyncpa [#allocation6], 1 }
 0x35c   :  { %2625 = vsyncpa [#allocation6 + $0x1], 1 }
 0x35d   :  { %2626 = vsyncpa [#allocation9], 1 }
 0x35e   :  { %2627 = vsyncpa [#allocation7], 1 }
 0x35f   :  { %2629 = vsyncpa [#allocation7 + $0x1], 1 }
 0x360   :  { %2630 = vsyncmov [#allocation3] }
 0x363   :  { %s2631_s11 = vpop.sfrf %2630 }
 0x364   :  { %p2785_p8 = scmp.ne.s32.totalorder %s2631_s11, 0 }
 0x366   :  { %2635 = shalt.err (%p2785_p8)  }
 0x367   :  { %2637 = vsyncmov [#allocation3 + $0x1] }
 0x36a   :  { %s2638_s13 = vpop.sfrf %2637 }
 0x36b   :  { %p2786_p3 = scmp.ne.s32.totalorder %s2638_s13, 0 }
 0x36d   :  { %2642 = shalt.err (%p2786_p3)  }

</bundles_post_ra>
